<compile_context>
chip_gen: v7x
topology: tpu7x:2x2x1
jax: 0.10.0
libtpu: 0.0.40
codegen_flags: <defaults>
</compile_context>

<pallas_src>
import functools

import jax
import jax.numpy as jnp
from jax.experimental import pallas as pl
from jax.experimental.pallas import tpu as pltpu

BN_EPS = 1e-5


# --------------------------------------------------------------------------
# small helpers
# --------------------------------------------------------------------------
def _const_spec(shape):
    """Full-array BlockSpec whose block index is constant across the grid."""
    zeros = (0,) * len(shape)
    return pl.BlockSpec(shape, lambda b, _z=zeros: _z)


def _silu(v):
    return v * jax.nn.sigmoid(v)


def _zero_halo(pad_ref, H, W, P):
    """Zero only the leading/trailing halo strips of a flat padded scratch of
    shape (C, (H+2P)*W + 2P); the interior is fully overwritten before use."""
    rows = pad_ref.shape[0]
    off = P * W + P
    pad_ref[:, 0:off] = jnp.zeros((rows, off), pad_ref.dtype)
    pad_ref[:, off + H * W:off + H * W + off] = jnp.zeros((rows, off),
                                                          pad_ref.dtype)


def _conv_same_flat(pad_ref, wtap, cout, H, W, K, masks):
    """'same' KxK conv in CHW-flat layout via K*K accumulating MXU matmuls.

    pad_ref: (Cin, (H+2P)*W + 2P) zero-halo scratch; the input is written at
             flat offset P*W+P in row-major (h*W+w) order.  Tap (kh, kw) is
             the contiguous lane slice starting at kh*W+kw; columns that would
             wrap across an image row are masked to zero (masks[dw], dw=kw-P).
    wtap(t): (cout, Cin) weight for tap t = kh*K + kw (cross-correlation, same
             orientation as F.conv2d)."""
    HW = H * W
    P = K // 2
    acc = jnp.zeros((cout, HW), jnp.float32)
    for kh in range(K):
        for kw in range(K):
            sl = pad_ref[:, kh * W + kw:kh * W + kw + HW]
            if kw != P:
                sl = sl * masks[kw - P]
            acc = acc + jnp.dot(wtap(kh * K + kw), sl,
                                preferred_element_type=jnp.float32)
    return acc


def _dwconv5_flat(pad_ref, w25, H, W, masks):
    """Depthwise 5x5 'same' conv in CHW-flat layout (pure VPU tap loop, f32).
    pad_ref: (Ch, (H+4)*W + 4) f32; w25: (Ch, 25) f32, column t = kh*5 + kw."""
    HW = H * W
    acc = jnp.zeros((w25.shape[0], HW), jnp.float32)
    for kh in range(5):
        for kw in range(5):
            sl = pad_ref[:, kh * W + kw:kh * W + kw + HW]
            if kw != 2:
                sl = sl * masks[kw - 2]
            acc = acc + sl * w25[:, kh * 5 + kw:kh * 5 + kw + 1]
    return acc


# --------------------------------------------------------------------------
# fused Bottleneck_OD body (runs inside the single C2f_OD kernel)
#   GhostConv(3x3 conv+BN+SiLU, depthwise 5x5+BN+SiLU, channel concat)
#   -> ODConv2d attention (avgpool -> fc -> relu -> 4 fused heads)
#   -> per-image aggregated dynamic 3x3 conv * filter attention (+ shortcut)
# --------------------------------------------------------------------------
def _bottleneck_od_body(b_in, refs, pad3_ref, pad5_ref, masks_b, masks_f,
                        H, W, add_shortcut):
    (g1w_ref, g1b_ref, g2w_ref, g2b_ref,
     fcw_ref, hdw_ref, hdb_ref, odw_ref) = refs
    HW = H * W
    bf16 = jnp.bfloat16
    Ch = g1b_ref.shape[0]                       # GhostConv hidden channels
    Cg = 2 * Ch                                 # ghost output == ODConv in
    Kn = odw_ref.shape[0]
    Co = odw_ref.shape[2]
    off3 = W + 1                                # flat interior offset, pad=1
    off5 = 2 * W + 2                            # flat interior offset, pad=2

    # ---- GhostConv.cv1: 3x3 conv (+folded BN) + SiLU -----------------------
    pad3_ref[:, off3:off3 + HW] = b_in.astype(bf16)      # cast activation once
    g1w = g1w_ref[...]                                   # (9, Ch, Cin) bf16
    g1 = _silu(_conv_same_flat(pad3_ref, lambda t: g1w[t], Ch, H, W, 3,
                               masks_b) + g1b_ref[...])  # (Ch, HW) f32

    # ---- GhostConv.cv2: depthwise 5x5 (+folded BN) + SiLU (VPU, f32) -------
    pad5_ref[:, off5:off5 + HW] = g1
    g2 = _silu(_dwconv5_flat(pad5_ref, g2w_ref[...], H, W, masks_f)
               + g2b_ref[...])                           # (Ch, HW) f32
    # ghost output = concat([g1, g2], channel); kept as two halves (no concat)

    # ---- ODConv attention: global avgpool -> fc -> relu -> 4 fused heads ---
    # (torch Attention.forward never applies self.bn, so it is omitted here)
    pooled = jnp.concatenate([jnp.mean(g1, axis=1, keepdims=True),
                              jnp.mean(g2, axis=1, keepdims=True)],
                             axis=0)                     # (Cg, 1) f32
    h = jnp.maximum(jnp.dot(fcw_ref[...], pooled,
                            preferred_element_type=jnp.float32), 0.0)  # (A,1)
    att = jnp.dot(hdw_ref[...], h,
                  preferred_element_type=jnp.float32) + hdb_ref[...]   # (Nt,1)
    ch_att = jax.nn.sigmoid(att[0:Cg, :])                       # (Cg, 1)
    fl_att = jax.nn.sigmoid(att[Cg:Cg + Co, :])                 # (Co, 1)
    sp_att = jax.nn.sigmoid(att[Cg + Co:Cg + Co + 9, :])        # (9, 1)
    kn_att = jax.nn.softmax(att[Cg + Co + 9:, :], axis=0)       # (Kn, 1)

    # ---- dynamic 3x3 conv on (ghost * channel attention) -------------------
    # reuse the shared bf16 pad scratch; interior overwritten, halo stays zero
    pad3_ref[0:Ch, off3:off3 + HW] = (g1 * ch_att[0:Ch, :]).astype(bf16)
    pad3_ref[Ch:Cg, off3:off3 + HW] = (g2 * ch_att[Ch:Cg, :]).astype(bf16)

    def od_wtap(t):
        # aggregated weight: sp[t] * sum_k kn[k] * W[k, t], computed in f32
        w = kn_att[0:1, :] * odw_ref[0, t].astype(jnp.float32)
        for k in range(1, Kn):
            w = w + kn_att[k:k + 1, :] * odw_ref[k, t].astype(jnp.float32)
        return (w * sp_att[t:t + 1, :]).astype(bf16)

    out = _conv_same_flat(pad3_ref, od_wtap, Co, H, W, 3, masks_b) * fl_att
    if add_shortcut:
        out = out + b_in
    return out                                           # (Co, HW) f32


# --------------------------------------------------------------------------
# the single fused C2f_OD kernel: one image per grid step
# --------------------------------------------------------------------------
def _c2f_od_kernel(x_ref, cv1w_ref, cv1b_ref, cv2w_ref, cv2b_ref, *rest,
                   n, H, W, c, shortcut):
    m_refs = rest[:8 * n]
    o_ref = rest[8 * n]
    pad3_ref = rest[8 * n + 1]
    pad5_ref = rest[8 * n + 2]
    HW = H * W
    bf16 = jnp.bfloat16

    # horizontal-shift validity masks (shared by every conv in the chain)
    w_idx = jax.lax.broadcasted_iota(jnp.int32, (1, HW), 1) % W
    masks_f = {dw: ((w_idx + dw >= 0) & (w_idx + dw < W)).astype(jnp.float32)
               for dw in (-2, -1, 1, 2)}
    masks_b = {dw: masks_f[dw].astype(bf16) for dw in (-1, 1)}

    # zero only the halo strips (interiors are fully rewritten before use)
    _zero_halo(pad3_ref, H, W, 1)
    _zero_halo(pad5_ref, H, W, 2)

    x = x_ref[0]                                         # (C1, HW) f32

    # ---- C2f cv1: 1x1 conv (+folded BN) + SiLU, then chunk(2, channels) ----
    y = _silu(jnp.dot(cv1w_ref[...], x.astype(bf16),
                      preferred_element_type=jnp.float32) + cv1b_ref[...])
    pieces = [y[0:c, :], y[c:2 * c, :]]

    # ---- n fused Bottleneck_OD blocks ---------------------------------------
    for i in range(n):
        refs = m_refs[8 * i:8 * (i + 1)]
        add = bool(shortcut) and pieces[-1].shape[0] == refs[7].shape[2]
        pieces.append(_bottleneck_od_body(pieces[-1], refs, pad3_ref, pad5_ref,
                                          masks_b, masks_f, H, W, add))

    # ---- C2f cv2: 1x1 conv over the virtual channel-concat of the pieces ---
    C2 = cv2w_ref.shape[0]
    acc = jnp.zeros((C2, HW), jnp.float32)
    for j, piece in enumerate(pieces):
        acc = acc + jnp.dot(cv2w_ref[:, j * c:(j + 1) * c], piece.astype(bf16),
                            preferred_element_type=jnp.float32)
    o_ref[0] = _silu(acc + cv2b_ref[...]).astype(o_ref.dtype)   # lane-dense


# --------------------------------------------------------------------------
# module composition: a single pallas_call; wrapper does only free reshapes
# --------------------------------------------------------------------------
def c2f_od_forward(x_nchw, params, shortcut=False):
    B, C1, H, W = x_nchw.shape
    HW = H * W
    c = params['c']
    n = len(params['m'])
    assert n >= 1 and c % 2 == 0
    C2 = params['cv2_w'].shape[0]
    Ch = params['m'][0]['g1_b'].shape[0]
    assert 2 * Ch == c, "GhostConv output channels must equal bottleneck width"

    operands = [x_nchw.reshape(B, C1, HW)]       # free contiguous reshape
    in_specs = [pl.BlockSpec((1, C1, HW), lambda b: (b, 0, 0))]
    for name in ('cv1_w', 'cv1_b', 'cv2_w', 'cv2_b'):
        operands.append(params[name])
        in_specs.append(_const_spec(params[name].shape))
    for mp in params['m']:
        for name in ('g1_w', 'g1_b', 'g2_w', 'g2_b',
                     'fc_w', 'hd_w', 'hd_b', 'od_w'):
            operands.append(mp[name])
            in_specs.append(_const_spec(mp[name].shape))

    kernel = functools.partial(_c2f_od_kernel, n=n, H=H, W=W, c=c,
                               shortcut=bool(shortcut))
    out = pl.pallas_call(
        kernel,
        out_shape=jax.ShapeDtypeStruct((B, C2, HW), jnp.float32),
        grid=(B,),
        in_specs=in_specs,
        out_specs=pl.BlockSpec((1, C2, HW), lambda b: (b, 0, 0)),
        scratch_shapes=[
            # shared bf16 zero-halo scratch for both 3x3 convs (ghost & ODConv)
            pltpu.VMEM((c, (H + 2) * W + 2), jnp.bfloat16),
            # f32 zero-halo scratch for the depthwise 5x5
            pltpu.VMEM((Ch, (H + 4) * W + 4), jnp.float32),
        ],
        compiler_params=pltpu.CompilerParams(
            dimension_semantics=("parallel",)),
    )(*operands)
    return out.reshape(B, C2, H, W)              # free contiguous reshape


# --------------------------------------------------------------------------
# deterministic synthetic parameters (eval-mode BN folded, bf16 MXU weights)
# --------------------------------------------------------------------------
def _rand_bn(key, ch):
    kg, kb, km, kv = jax.random.split(key, 4)
    gamma = 1.0 + 0.1 * jax.random.normal(kg, (ch,), jnp.float32)
    beta = 0.1 * jax.random.normal(kb, (ch,), jnp.float32)
    mean = 0.1 * jax.random.normal(km, (ch,), jnp.float32)
    var = jax.random.uniform(kv, (ch,), jnp.float32, 0.5, 1.5)
    return gamma, beta, mean, var


def _fold_bn(w, out_axis, gamma, beta, mean, var):
    """Fold an eval-mode BatchNorm into the preceding bias-free conv weight."""
    scale = gamma / jnp.sqrt(var + BN_EPS)
    bias = beta - scale * mean
    shape = [1] * w.ndim
    shape[out_axis] = w.shape[out_axis]
    return w * scale.reshape(shape), bias.reshape(-1, 1)


def _conv1x1_bn(key, cin, cout):
    kw, kb = jax.random.split(key)
    w = jax.random.normal(kw, (cout, cin), jnp.float32) * (2.0 / cout) ** 0.5
    w, b = _fold_bn(w, 0, *_rand_bn(kb, cout))
    return w.astype(jnp.bfloat16), b


def init_bottleneck_od_params(key, c1, c2, kernel_num=4, reduction=0.0625,
                              min_channel=16):
    # Bottleneck_OD(c1, c2, e=1.0): GhostConv(c1, c2, 3) -> ODConv2d(c2, c2, 3)
    ch = c2 // 2                                  # GhostConv hidden channels
    a = max(int(c2 * reduction), min_channel)     # attention channels
    k = jax.random.split(key, 7)

    # GhostConv.cv1 weight, kernel layout (9, ch, c1), tap t = kh*3 + kw
    #   (from torch (ch, c1, 3, 3): w.permute(2, 3, 0, 1).reshape(9, ch, c1))
    g1 = jax.random.normal(k[0], (9, ch, c1), jnp.float32) * (2. / (9 * ch)) ** .5
    g1_w, g1_b = _fold_bn(g1, 1, *_rand_bn(k[1], ch))

    # GhostConv.cv2 depthwise weight, layout (ch, 25), column t = kh*5 + kw
    #   (from torch (ch, 1, 5, 5): w.reshape(ch, 25))
    g2 = jax.random.normal(k[2], (ch, 25), jnp.float32) * (2. / 25) ** .5
    g2_w, g2_b = _fold_bn(g2, 0, *_rand_bn(k[3], ch))

    # ODConv attention: fc (a, c2); four heads fused into one matvec with
    # output rows ordered [channel(c2) | filter(c2) | spatial(9) | kernel(Kn)]
    fc_w = jax.random.normal(k[4], (a, c2), jnp.float32) * (2. / a) ** .5
    ntot = c2 + c2 + 9 + kernel_num
    hd_w = jax.random.normal(k[5], (ntot, a), jnp.float32) * (2. / ntot) ** .5
    hd_b = jnp.zeros((ntot, 1), jnp.float32)      # torch inits head biases to 0

    # ODConv candidate weights, kernel layout (Kn, 9, cout, cin), t = kh*3 + kw
    #   (from torch (Kn, cout, cin, 3, 3): w.transpose(0,3,4,1,2).reshape(Kn,9,cout,cin))
    od_w = (jax.random.normal(k[6], (kernel_num, 9, c2, c2), jnp.float32)
            * (2. / (9 * c2)) ** .5)

    return dict(g1_w=g1_w.astype(jnp.bfloat16), g1_b=g1_b,
                g2_w=g2_w, g2_b=g2_b,
                fc_w=fc_w, hd_w=hd_w, hd_b=hd_b,
                od_w=od_w.astype(jnp.bfloat16))


def init_c2f_od_params(key, c1, c2, n=1, e=0.5):
    c = int(c2 * e)
    k = jax.random.split(key, 2 + n)
    cv1_w, cv1_b = _conv1x1_bn(k[0], c1, 2 * c)
    cv2_w, cv2_b = _conv1x1_bn(k[1], (2 + n) * c, c2)
    return dict(
        c=c,
        cv1_w=cv1_w, cv1_b=cv1_b,
        cv2_w=cv2_w, cv2_b=cv2_b,
        m=[init_bottleneck_od_params(k[2 + i], c, c) for i in range(n)],
    )


# --------------------------------------------------------------------------
if __name__ == "__main__":
    key = jax.random.PRNGKey(0)
    kx, kp = jax.random.split(key)

    B, C1, H, W = 2, 16, 16, 16
    C2, N = 16, 1

    x = jax.random.normal(kx, (B, C1, H, W), jnp.float32)   # NCHW like PyTorch
    params = init_c2f_od_params(kp, C1, C2, n=N, e=0.5)

    fwd = jax.jit(lambda a: c2f_od_forward(a, params, shortcut=False))
    out = jax.block_until_ready(fwd(x))

    assert out.shape == (B, C2, H, W), out.shape
    assert bool(jnp.all(jnp.isfinite(out)))
    print("KERNEL_OK")
</pallas_src>

<mosaic_0001>
module attributes {stable_mosaic.version = 11 : i64} {
  func.func @_c2f_od_kernel(%arg0: i32, %arg1: memref<1x16x256xf32, #tpu.memory_space<vmem>>, %arg2: memref<16x16xbf16, #tpu.memory_space<vmem>>, %arg3: memref<16x1xf32, #tpu.memory_space<vmem>>, %arg4: memref<16x24xbf16, #tpu.memory_space<vmem>>, %arg5: memref<16x1xf32, #tpu.memory_space<vmem>>, %arg6: memref<9x4x8xbf16, #tpu.memory_space<vmem>>, %arg7: memref<4x1xf32, #tpu.memory_space<vmem>>, %arg8: memref<4x25xf32, #tpu.memory_space<vmem>>, %arg9: memref<4x1xf32, #tpu.memory_space<vmem>>, %arg10: memref<16x8xf32, #tpu.memory_space<vmem>>, %arg11: memref<29x16xf32, #tpu.memory_space<vmem>>, %arg12: memref<29x1xf32, #tpu.memory_space<vmem>>, %arg13: memref<4x9x8x8xbf16, #tpu.memory_space<vmem>>, %arg14: memref<1x16x256xf32, #tpu.memory_space<vmem>>, %arg15: memref<8x290xbf16, #tpu.memory_space<vmem>>, %arg16: memref<4x324xf32, #tpu.memory_space<vmem>>) attributes {dimension_semantics = [#tpu.dimension_semantics<parallel>], iteration_bounds = array<i64: 2>, scalar_prefetch = 0 : i64, scratch_operands = 2 : i64, tpu.core_type = #tpu.core_type<tc>, window_params = [{transform_indices = @transform_0, window_bounds = array<i64: 1, 16, 256>}, {pipeline_mode = #tpu.pipeline_mode<synchronous>, transform_indices = @transform_1, window_bounds = array<i64: 16, 16>}, {pipeline_mode = #tpu.pipeline_mode<synchronous>, transform_indices = @transform_2, window_bounds = array<i64: 16, 1>}, {pipeline_mode = #tpu.pipeline_mode<synchronous>, transform_indices = @transform_3, window_bounds = array<i64: 16, 24>}, {pipeline_mode = #tpu.pipeline_mode<synchronous>, transform_indices = @transform_4, window_bounds = array<i64: 16, 1>}, {pipeline_mode = #tpu.pipeline_mode<synchronous>, transform_indices = @transform_5, window_bounds = array<i64: 9, 4, 8>}, {pipeline_mode = #tpu.pipeline_mode<synchronous>, transform_indices = @transform_6, window_bounds = array<i64: 4, 1>}, {pipeline_mode = #tpu.pipeline_mode<synchronous>, transform_indices = @transform_7, window_bounds = array<i64: 4, 25>}, {pipeline_mode = #tpu.pipeline_mode<synchronous>, transform_indices = @transform_8, window_bounds = array<i64: 4, 1>}, {pipeline_mode = #tpu.pipeline_mode<synchronous>, transform_indices = @transform_9, window_bounds = array<i64: 16, 8>}, {pipeline_mode = #tpu.pipeline_mode<synchronous>, transform_indices = @transform_10, window_bounds = array<i64: 29, 16>}, {pipeline_mode = #tpu.pipeline_mode<synchronous>, transform_indices = @transform_11, window_bounds = array<i64: 29, 1>}, {pipeline_mode = #tpu.pipeline_mode<synchronous>, transform_indices = @transform_12, window_bounds = array<i64: 4, 9, 8, 8>}, {transform_indices = @transform_13, window_bounds = array<i64: 1, 16, 256>}]} {
    %0 = tpu.iota {dimensions = array<i32: 1>} : vector<1x256xi32>
    %c16_i32 = arith.constant 16 : i32
    %c0_i32 = arith.constant 0 : i32
    %1 = arith.cmpi eq, %c16_i32, %c0_i32 : i32
    %c1_i32 = arith.constant 1 : i32
    %2 = arith.select %1, %c1_i32, %c16_i32 : i32
    %3 = vector.broadcast %2 : i32 to vector<1x256xi32>
    %4 = arith.remsi %0, %3 : vector<1x256xi32>
    %c0_i32_0 = arith.constant 0 : i32
    %5 = vector.broadcast %c0_i32_0 : i32 to vector<1x256xi32>
    %6 = arith.cmpi ne, %4, %5 : vector<1x256xi32>
    %c0_i32_1 = arith.constant 0 : i32
    %7 = vector.broadcast %c0_i32_1 : i32 to vector<1x256xi32>
    %8 = arith.cmpi slt, %4, %7 : vector<1x256xi32>
    %c0_i32_2 = arith.constant 0 : i32
    %9 = arith.cmpi slt, %2, %c0_i32_2 : i32
    %10 = vector.broadcast %9 : i1 to vector<1x256xi1>
    %11 = vector.broadcast %10 : vector<1x256xi1> to vector<1x256xi1>
    %12 = arith.xori %8, %11 : vector<1x256xi1>
    %13 = arith.andi %12, %6 : vector<1x256xi1>
    %14 = vector.broadcast %2 : i32 to vector<1x256xi32>
    %15 = arith.addi %4, %14 : vector<1x256xi32>
    %16 = arith.select %13, %15, %4 : vector<1x256xi1>, vector<1x256xi32>
    %c-2_i32 = arith.constant -2 : i32
    %17 = vector.broadcast %c-2_i32 : i32 to vector<1x256xi32>
    %18 = arith.addi %16, %17 : vector<1x256xi32>
    %c0_i32_3 = arith.constant 0 : i32
    %19 = vector.broadcast %c0_i32_3 : i32 to vector<1x256xi32>
    %20 = arith.cmpi sge, %18, %19 : vector<1x256xi32>
    %c-2_i32_4 = arith.constant -2 : i32
    %21 = vector.broadcast %c-2_i32_4 : i32 to vector<1x256xi32>
    %22 = arith.addi %16, %21 : vector<1x256xi32>
    %c16_i32_5 = arith.constant 16 : i32
    %23 = vector.broadcast %c16_i32_5 : i32 to vector<1x256xi32>
    %24 = arith.cmpi slt, %22, %23 : vector<1x256xi32>
    %25 = arith.andi %20, %24 : vector<1x256xi1>
    %26 = arith.extui %25 : vector<1x256xi1> to vector<1x256xi32>
    %27 = arith.sitofp %26 : vector<1x256xi32> to vector<1x256xf32>
    %c-1_i32 = arith.constant -1 : i32
    %28 = vector.broadcast %c-1_i32 : i32 to vector<1x256xi32>
    %29 = arith.addi %16, %28 : vector<1x256xi32>
    %c0_i32_6 = arith.constant 0 : i32
    %30 = vector.broadcast %c0_i32_6 : i32 to vector<1x256xi32>
    %31 = arith.cmpi sge, %29, %30 : vector<1x256xi32>
    %c-1_i32_7 = arith.constant -1 : i32
    %32 = vector.broadcast %c-1_i32_7 : i32 to vector<1x256xi32>
    %33 = arith.addi %16, %32 : vector<1x256xi32>
    %c16_i32_8 = arith.constant 16 : i32
    %34 = vector.broadcast %c16_i32_8 : i32 to vector<1x256xi32>
    %35 = arith.cmpi slt, %33, %34 : vector<1x256xi32>
    %36 = arith.andi %31, %35 : vector<1x256xi1>
    %37 = arith.extui %36 : vector<1x256xi1> to vector<1x256xi32>
    %38 = arith.sitofp %37 : vector<1x256xi32> to vector<1x256xf32>
    %c1_i32_9 = arith.constant 1 : i32
    %39 = vector.broadcast %c1_i32_9 : i32 to vector<1x256xi32>
    %40 = arith.addi %16, %39 : vector<1x256xi32>
    %c0_i32_10 = arith.constant 0 : i32
    %41 = vector.broadcast %c0_i32_10 : i32 to vector<1x256xi32>
    %42 = arith.cmpi sge, %40, %41 : vector<1x256xi32>
    %c1_i32_11 = arith.constant 1 : i32
    %43 = vector.broadcast %c1_i32_11 : i32 to vector<1x256xi32>
    %44 = arith.addi %16, %43 : vector<1x256xi32>
    %c16_i32_12 = arith.constant 16 : i32
    %45 = vector.broadcast %c16_i32_12 : i32 to vector<1x256xi32>
    %46 = arith.cmpi slt, %44, %45 : vector<1x256xi32>
    %47 = arith.andi %42, %46 : vector<1x256xi1>
    %48 = arith.extui %47 : vector<1x256xi1> to vector<1x256xi32>
    %49 = arith.sitofp %48 : vector<1x256xi32> to vector<1x256xf32>
    %c2_i32 = arith.constant 2 : i32
    %50 = vector.broadcast %c2_i32 : i32 to vector<1x256xi32>
    %51 = arith.addi %16, %50 : vector<1x256xi32>
    %c0_i32_13 = arith.constant 0 : i32
    %52 = vector.broadcast %c0_i32_13 : i32 to vector<1x256xi32>
    %53 = arith.cmpi sge, %51, %52 : vector<1x256xi32>
    %c2_i32_14 = arith.constant 2 : i32
    %54 = vector.broadcast %c2_i32_14 : i32 to vector<1x256xi32>
    %55 = arith.addi %16, %54 : vector<1x256xi32>
    %c16_i32_15 = arith.constant 16 : i32
    %56 = vector.broadcast %c16_i32_15 : i32 to vector<1x256xi32>
    %57 = arith.cmpi slt, %55, %56 : vector<1x256xi32>
    %58 = arith.andi %53, %57 : vector<1x256xi1>
    %59 = arith.extui %58 : vector<1x256xi1> to vector<1x256xi32>
    %60 = arith.sitofp %59 : vector<1x256xi32> to vector<1x256xf32>
    %61 = arith.truncf %38 : vector<1x256xf32> to vector<1x256xbf16>
    %62 = arith.truncf %49 : vector<1x256xf32> to vector<1x256xbf16>
    %cst = arith.constant 0.000000e+00 : bf16
    %63 = vector.broadcast %cst : bf16 to vector<8x17xbf16>
    %c0 = arith.constant 0 : index
    %c0_16 = arith.constant 0 : index
    %64 = vector.load %arg15[%c0, %c0_16] : memref<8x290xbf16, #tpu.memory_space<vmem>>, vector<8x17xbf16>
    tpu.vector_store %arg15[%c0, %c0_16], %63 {strides = array<i32>} : memref<8x290xbf16, #tpu.memory_space<vmem>>, vector<8x17xbf16>,
    %cst_17 = arith.constant 0.000000e+00 : bf16
    %65 = vector.broadcast %cst_17 : bf16 to vector<8x17xbf16>
    %c0_18 = arith.constant 0 : index
    %c273 = arith.constant 273 : index
    %66 = vector.load %arg15[%c0_18, %c273] : memref<8x290xbf16, #tpu.memory_space<vmem>>, vector<8x17xbf16>
    tpu.vector_store %arg15[%c0_18, %c273], %65 {strides = array<i32>} : memref<8x290xbf16, #tpu.memory_space<vmem>>, vector<8x17xbf16>,
    %cst_19 = arith.constant 0.000000e+00 : f32
    %67 = vector.broadcast %cst_19 : f32 to vector<4x34xf32>
    %c0_20 = arith.constant 0 : index
    %c0_21 = arith.constant 0 : index
    %68 = vector.load %arg16[%c0_20, %c0_21] : memref<4x324xf32, #tpu.memory_space<vmem>>, vector<4x34xf32>
    tpu.vector_store %arg16[%c0_20, %c0_21], %67 {strides = array<i32>} : memref<4x324xf32, #tpu.memory_space<vmem>>, vector<4x34xf32>,
    %cst_22 = arith.constant 0.000000e+00 : f32
    %69 = vector.broadcast %cst_22 : f32 to vector<4x34xf32>
    %c0_23 = arith.constant 0 : index
    %c290 = arith.constant 290 : index
    %70 = vector.load %arg16[%c0_23, %c290] : memref<4x324xf32, #tpu.memory_space<vmem>>, vector<4x34xf32>
    tpu.vector_store %arg16[%c0_23, %c290], %69 {strides = array<i32>} : memref<4x324xf32, #tpu.memory_space<vmem>>, vector<4x34xf32>,
    %c0_24 = arith.constant 0 : index
    %c0_25 = arith.constant 0 : index
    %c0_26 = arith.constant 0 : index
    %71 = vector.load %arg1[%c0_24, %c0_25, %c0_26] : memref<1x16x256xf32, #tpu.memory_space<vmem>>, vector<1x16x256xf32>
    %72 = vector.shape_cast %71 : vector<1x16x256xf32> to vector<16x256xf32>
    %c0_27 = arith.constant 0 : index
    %c0_28 = arith.constant 0 : index
    %73 = vector.load %arg2[%c0_27, %c0_28] : memref<16x16xbf16, #tpu.memory_space<vmem>>, vector<16x16xbf16>
    %74 = arith.truncf %72 : vector<16x256xf32> to vector<16x256xbf16>
    %cst_29 = arith.constant dense<0.000000e+00> : vector<16x256xf32>
    %75 = tpu.matmul %73, %74, %cst_29 {dimension_numbers = #tpu.dot_dimension_numbers<[1], [0], [0], [1], [0, 0, 1, 1], [], []>} : vector<16x16xbf16>, vector<16x256xbf16>, vector<16x256xf32> -> vector<16x256xf32>
    %c0_30 = arith.constant 0 : index
    %c0_31 = arith.constant 0 : index
    %76 = vector.load %arg3[%c0_30, %c0_31] : memref<16x1xf32, #tpu.memory_space<vmem>>, vector<16x1xf32>
    %77 = vector.broadcast %76 : vector<16x1xf32> to vector<16x256xf32>
    %78 = arith.addf %75, %77 : vector<16x256xf32>
    %79 = arith.negf %78 : vector<16x256xf32>
    %80 = math.exp %79 : vector<16x256xf32>
    %cst_32 = arith.constant 1.000000e+00 : f32
    %81 = vector.broadcast %cst_32 : f32 to vector<16x256xf32>
    %82 = arith.addf %81, %80 : vector<16x256xf32>
    %83 = arith.divf %81, %82 : vector<16x256xf32>
    %84 = arith.mulf %78, %83 : vector<16x256xf32>
    %85 = vector.extract_strided_slice %84 {offsets = [0, 0], sizes = [8, 256], strides = [1, 1]} : vector<16x256xf32> to vector<8x256xf32>
    %86 = vector.extract_strided_slice %84 {offsets = [8, 0], sizes = [8, 256], strides = [1, 1]} : vector<16x256xf32> to vector<8x256xf32>
    %87 = arith.truncf %86 : vector<8x256xf32> to vector<8x256xbf16>
    %c0_33 = arith.constant 0 : index
    %c17 = arith.constant 17 : index
    %88 = vector.load %arg15[%c0_33, %c17] : memref<8x290xbf16, #tpu.memory_space<vmem>>, vector<8x256xbf16>
    tpu.vector_store %arg15[%c0_33, %c17], %87 {strides = array<i32>} : memref<8x290xbf16, #tpu.memory_space<vmem>>, vector<8x256xbf16>,
    %c0_34 = arith.constant 0 : index
    %c0_35 = arith.constant 0 : index
    %c0_36 = arith.constant 0 : index
    %89 = vector.load %arg6[%c0_34, %c0_35, %c0_36] : memref<9x4x8xbf16, #tpu.memory_space<vmem>>, vector<9x4x8xbf16>
    %cst_37 = arith.constant 0.000000e+00 : f32
    %90 = vector.broadcast %cst_37 : f32 to vector<4x256xf32>
    %c0_38 = arith.constant 0 : index
    %c0_39 = arith.constant 0 : index
    %91 = vector.load %arg15[%c0_38, %c0_39] : memref<8x290xbf16, #tpu.memory_space<vmem>>, vector<8x256xbf16>
    %92 = vector.broadcast %61 : vector<1x256xbf16> to vector<8x256xbf16>
    %93 = arith.mulf %91, %92 : vector<8x256xbf16>
    %94 = vector.extract_strided_slice %89 {offsets = [0, 0, 0], sizes = [1, 4, 8], strides = [1, 1, 1]} : vector<9x4x8xbf16> to vector<1x4x8xbf16>
    %95 = vector.shape_cast %94 : vector<1x4x8xbf16> to vector<4x8xbf16>
    %cst_40 = arith.constant dense<0.000000e+00> : vector<4x256xf32>
    %96 = tpu.matmul %95, %93, %cst_40 {dimension_numbers = #tpu.dot_dimension_numbers<[1], [0], [0], [1], [0, 0, 1, 1], [], []>} : vector<4x8xbf16>, vector<8x256xbf16>, vector<4x256xf32> -> vector<4x256xf32>
    %97 = arith.addf %90, %96 : vector<4x256xf32>
    %c0_41 = arith.constant 0 : index
    %c1 = arith.constant 1 : index
    %98 = vector.load %arg15[%c0_41, %c1] : memref<8x290xbf16, #tpu.memory_space<vmem>>, vector<8x256xbf16>
    %99 = vector.extract_strided_slice %89 {offsets = [1, 0, 0], sizes = [1, 4, 8], strides = [1, 1, 1]} : vector<9x4x8xbf16> to vector<1x4x8xbf16>
    %100 = vector.shape_cast %99 : vector<1x4x8xbf16> to vector<4x8xbf16>
    %cst_42 = arith.constant dense<0.000000e+00> : vector<4x256xf32>
    %101 = tpu.matmul %100, %98, %cst_42 {dimension_numbers = #tpu.dot_dimension_numbers<[1], [0], [0], [1], [0, 0, 1, 1], [], []>} : vector<4x8xbf16>, vector<8x256xbf16>, vector<4x256xf32> -> vector<4x256xf32>
    %102 = arith.addf %97, %101 : vector<4x256xf32>
    %c0_43 = arith.constant 0 : index
    %c2 = arith.constant 2 : index
    %103 = vector.load %arg15[%c0_43, %c2] : memref<8x290xbf16, #tpu.memory_space<vmem>>, vector<8x256xbf16>
    %104 = vector.broadcast %62 : vector<1x256xbf16> to vector<8x256xbf16>
    %105 = arith.mulf %103, %104 : vector<8x256xbf16>
    %106 = vector.extract_strided_slice %89 {offsets = [2, 0, 0], sizes = [1, 4, 8], strides = [1, 1, 1]} : vector<9x4x8xbf16> to vector<1x4x8xbf16>
    %107 = vector.shape_cast %106 : vector<1x4x8xbf16> to vector<4x8xbf16>
    %cst_44 = arith.constant dense<0.000000e+00> : vector<4x256xf32>
    %108 = tpu.matmul %107, %105, %cst_44 {dimension_numbers = #tpu.dot_dimension_numbers<[1], [0], [0], [1], [0, 0, 1, 1], [], []>} : vector<4x8xbf16>, vector<8x256xbf16>, vector<4x256xf32> -> vector<4x256xf32>
    %109 = arith.addf %102, %108 : vector<4x256xf32>
    %c0_45 = arith.constant 0 : index
    %c16 = arith.constant 16 : index
    %110 = vector.load %arg15[%c0_45, %c16] : memref<8x290xbf16, #tpu.memory_space<vmem>>, vector<8x256xbf16>
    %111 = vector.broadcast %61 : vector<1x256xbf16> to vector<8x256xbf16>
    %112 = arith.mulf %110, %111 : vector<8x256xbf16>
    %113 = vector.extract_strided_slice %89 {offsets = [3, 0, 0], sizes = [1, 4, 8], strides = [1, 1, 1]} : vector<9x4x8xbf16> to vector<1x4x8xbf16>
    %114 = vector.shape_cast %113 : vector<1x4x8xbf16> to vector<4x8xbf16>
    %cst_46 = arith.constant dense<0.000000e+00> : vector<4x256xf32>
    %115 = tpu.matmul %114, %112, %cst_46 {dimension_numbers = #tpu.dot_dimension_numbers<[1], [0], [0], [1], [0, 0, 1, 1], [], []>} : vector<4x8xbf16>, vector<8x256xbf16>, vector<4x256xf32> -> vector<4x256xf32>
    %116 = arith.addf %109, %115 : vector<4x256xf32>
    %c0_47 = arith.constant 0 : index
    %c17_48 = arith.constant 17 : index
    %117 = vector.load %arg15[%c0_47, %c17_48] : memref<8x290xbf16, #tpu.memory_space<vmem>>, vector<8x256xbf16>
    %118 = vector.extract_strided_slice %89 {offsets = [4, 0, 0], sizes = [1, 4, 8], strides = [1, 1, 1]} : vector<9x4x8xbf16> to vector<1x4x8xbf16>
    %119 = vector.shape_cast %118 : vector<1x4x8xbf16> to vector<4x8xbf16>
    %cst_49 = arith.constant dense<0.000000e+00> : vector<4x256xf32>
    %120 = tpu.matmul %119, %117, %cst_49 {dimension_numbers = #tpu.dot_dimension_numbers<[1], [0], [0], [1], [0, 0, 1, 1], [], []>} : vector<4x8xbf16>, vector<8x256xbf16>, vector<4x256xf32> -> vector<4x256xf32>
    %121 = arith.addf %116, %120 : vector<4x256xf32>
    %c0_50 = arith.constant 0 : index
    %c18 = arith.constant 18 : index
    %122 = vector.load %arg15[%c0_50, %c18] : memref<8x290xbf16, #tpu.memory_space<vmem>>, vector<8x256xbf16>
    %123 = vector.broadcast %62 : vector<1x256xbf16> to vector<8x256xbf16>
    %124 = arith.mulf %122, %123 : vector<8x256xbf16>
    %125 = vector.extract_strided_slice %89 {offsets = [5, 0, 0], sizes = [1, 4, 8], strides = [1, 1, 1]} : vector<9x4x8xbf16> to vector<1x4x8xbf16>
    %126 = vector.shape_cast %125 : vector<1x4x8xbf16> to vector<4x8xbf16>
    %cst_51 = arith.constant dense<0.000000e+00> : vector<4x256xf32>
    %127 = tpu.matmul %126, %124, %cst_51 {dimension_numbers = #tpu.dot_dimension_numbers<[1], [0], [0], [1], [0, 0, 1, 1], [], []>} : vector<4x8xbf16>, vector<8x256xbf16>, vector<4x256xf32> -> vector<4x256xf32>
    %128 = arith.addf %121, %127 : vector<4x256xf32>
    %c0_52 = arith.constant 0 : index
    %c32 = arith.constant 32 : index
    %129 = vector.load %arg15[%c0_52, %c32] : memref<8x290xbf16, #tpu.memory_space<vmem>>, vector<8x256xbf16>
    %130 = vector.broadcast %61 : vector<1x256xbf16> to vector<8x256xbf16>
    %131 = arith.mulf %129, %130 : vector<8x256xbf16>
    %132 = vector.extract_strided_slice %89 {offsets = [6, 0, 0], sizes = [1, 4, 8], strides = [1, 1, 1]} : vector<9x4x8xbf16> to vector<1x4x8xbf16>
    %133 = vector.shape_cast %132 : vector<1x4x8xbf16> to vector<4x8xbf16>
    %cst_53 = arith.constant dense<0.000000e+00> : vector<4x256xf32>
    %134 = tpu.matmul %133, %131, %cst_53 {dimension_numbers = #tpu.dot_dimension_numbers<[1], [0], [0], [1], [0, 0, 1, 1], [], []>} : vector<4x8xbf16>, vector<8x256xbf16>, vector<4x256xf32> -> vector<4x256xf32>
    %135 = arith.addf %128, %134 : vector<4x256xf32>
    %c0_54 = arith.constant 0 : index
    %c33 = arith.constant 33 : index
    %136 = vector.load %arg15[%c0_54, %c33] : memref<8x290xbf16, #tpu.memory_space<vmem>>, vector<8x256xbf16>
    %137 = vector.extract_strided_slice %89 {offsets = [7, 0, 0], sizes = [1, 4, 8], strides = [1, 1, 1]} : vector<9x4x8xbf16> to vector<1x4x8xbf16>
    %138 = vector.shape_cast %137 : vector<1x4x8xbf16> to vector<4x8xbf16>
    %cst_55 = arith.constant dense<0.000000e+00> : vector<4x256xf32>
    %139 = tpu.matmul %138, %136, %cst_55 {dimension_numbers = #tpu.dot_dimension_numbers<[1], [0], [0], [1], [0, 0, 1, 1], [], []>} : vector<4x8xbf16>, vector<8x256xbf16>, vector<4x256xf32> -> vector<4x256xf32>
    %140 = arith.addf %135, %139 : vector<4x256xf32>
    %c0_56 = arith.constant 0 : index
    %c34 = arith.constant 34 : index
    %141 = vector.load %arg15[%c0_56, %c34] : memref<8x290xbf16, #tpu.memory_space<vmem>>, vector<8x256xbf16>
    %142 = vector.broadcast %62 : vector<1x256xbf16> to vector<8x256xbf16>
    %143 = arith.mulf %141, %142 : vector<8x256xbf16>
    %144 = vector.extract_strided_slice %89 {offsets = [8, 0, 0], sizes = [1, 4, 8], strides = [1, 1, 1]} : vector<9x4x8xbf16> to vector<1x4x8xbf16>
    %145 = vector.shape_cast %144 : vector<1x4x8xbf16> to vector<4x8xbf16>
    %cst_57 = arith.constant dense<0.000000e+00> : vector<4x256xf32>
    %146 = tpu.matmul %145, %143, %cst_57 {dimension_numbers = #tpu.dot_dimension_numbers<[1], [0], [0], [1], [0, 0, 1, 1], [], []>} : vector<4x8xbf16>, vector<8x256xbf16>, vector<4x256xf32> -> vector<4x256xf32>
    %147 = arith.addf %140, %146 : vector<4x256xf32>
    %c0_58 = arith.constant 0 : index
    %c0_59 = arith.constant 0 : index
    %148 = vector.load %arg7[%c0_58, %c0_59] : memref<4x1xf32, #tpu.memory_space<vmem>>, vector<4x1xf32>
    %149 = vector.broadcast %148 : vector<4x1xf32> to vector<4x256xf32>
    %150 = arith.addf %147, %149 : vector<4x256xf32>
    %151 = arith.negf %150 : vector<4x256xf32>
    %152 = math.exp %151 : vector<4x256xf32>
    %cst_60 = arith.constant 1.000000e+00 : f32
    %153 = vector.broadcast %cst_60 : f32 to vector<4x256xf32>
    %154 = arith.addf %153, %152 : vector<4x256xf32>
    %155 = arith.divf %153, %154 : vector<4x256xf32>
    %156 = arith.mulf %150, %155 : vector<4x256xf32>
    %c0_61 = arith.constant 0 : index
    %c34_62 = arith.constant 34 : index
    %157 = vector.load %arg16[%c0_61, %c34_62] : memref<4x324xf32, #tpu.memory_space<vmem>>, vector<4x256xf32>
    tpu.vector_store %arg16[%c0_61, %c34_62], %156 {strides = array<i32>} : memref<4x324xf32, #tpu.memory_space<vmem>>, vector<4x256xf32>,
    %c0_63 = arith.constant 0 : index
    %c0_64 = arith.constant 0 : index
    %158 = vector.load %arg8[%c0_63, %c0_64] : memref<4x25xf32, #tpu.memory_space<vmem>>, vector<4x25xf32>
    %cst_65 = arith.constant 0.000000e+00 : f32
    %159 = vector.broadcast %cst_65 : f32 to vector<4x256xf32>
    %c0_66 = arith.constant 0 : index
    %c0_67 = arith.constant 0 : index
    %160 = vector.load %arg16[%c0_66, %c0_67] : memref<4x324xf32, #tpu.memory_space<vmem>>, vector<4x256xf32>
    %161 = vector.broadcast %27 : vector<1x256xf32> to vector<4x256xf32>
    %162 = arith.mulf %160, %161 : vector<4x256xf32>
    %163 = vector.extract_strided_slice %158 {offsets = [0, 0], sizes = [4, 1], strides = [1, 1]} : vector<4x25xf32> to vector<4x1xf32>
    %164 = vector.broadcast %163 : vector<4x1xf32> to vector<4x256xf32>
    %165 = arith.mulf %162, %164 : vector<4x256xf32>
    %166 = arith.addf %159, %165 : vector<4x256xf32>
    %c0_68 = arith.constant 0 : index
    %c1_69 = arith.constant 1 : index
    %167 = vector.load %arg16[%c0_68, %c1_69] : memref<4x324xf32, #tpu.memory_space<vmem>>, vector<4x256xf32>
    %168 = vector.broadcast %38 : vector<1x256xf32> to vector<4x256xf32>
    %169 = arith.mulf %167, %168 : vector<4x256xf32>
    %170 = vector.extract_strided_slice %158 {offsets = [0, 1], sizes = [4, 1], strides = [1, 1]} : vector<4x25xf32> to vector<4x1xf32>
    %171 = vector.broadcast %170 : vector<4x1xf32> to vector<4x256xf32>
    %172 = arith.mulf %169, %171 : vector<4x256xf32>
    %173 = arith.addf %166, %172 : vector<4x256xf32>
    %c0_70 = arith.constant 0 : index
    %c2_71 = arith.constant 2 : index
    %174 = vector.load %arg16[%c0_70, %c2_71] : memref<4x324xf32, #tpu.memory_space<vmem>>, vector<4x256xf32>
    %175 = vector.extract_strided_slice %158 {offsets = [0, 2], sizes = [4, 1], strides = [1, 1]} : vector<4x25xf32> to vector<4x1xf32>
    %176 = vector.broadcast %175 : vector<4x1xf32> to vector<4x256xf32>
    %177 = arith.mulf %174, %176 : vector<4x256xf32>
    %178 = arith.addf %173, %177 : vector<4x256xf32>
    %c0_72 = arith.constant 0 : index
    %c3 = arith.constant 3 : index
    %179 = vector.load %arg16[%c0_72, %c3] : memref<4x324xf32, #tpu.memory_space<vmem>>, vector<4x256xf32>
    %180 = vector.broadcast %49 : vector<1x256xf32> to vector<4x256xf32>
    %181 = arith.mulf %179, %180 : vector<4x256xf32>
    %182 = vector.extract_strided_slice %158 {offsets = [0, 3], sizes = [4, 1], strides = [1, 1]} : vector<4x25xf32> to vector<4x1xf32>
    %183 = vector.broadcast %182 : vector<4x1xf32> to vector<4x256xf32>
    %184 = arith.mulf %181, %183 : vector<4x256xf32>
    %185 = arith.addf %178, %184 : vector<4x256xf32>
    %c0_73 = arith.constant 0 : index
    %c4 = arith.constant 4 : index
    %186 = vector.load %arg16[%c0_73, %c4] : memref<4x324xf32, #tpu.memory_space<vmem>>, vector<4x256xf32>
    %187 = vector.broadcast %60 : vector<1x256xf32> to vector<4x256xf32>
    %188 = arith.mulf %186, %187 : vector<4x256xf32>
    %189 = vector.extract_strided_slice %158 {offsets = [0, 4], sizes = [4, 1], strides = [1, 1]} : vector<4x25xf32> to vector<4x1xf32>
    %190 = vector.broadcast %189 : vector<4x1xf32> to vector<4x256xf32>
    %191 = arith.mulf %188, %190 : vector<4x256xf32>
    %192 = arith.addf %185, %191 : vector<4x256xf32>
    %c0_74 = arith.constant 0 : index
    %c16_75 = arith.constant 16 : index
    %193 = vector.load %arg16[%c0_74, %c16_75] : memref<4x324xf32, #tpu.memory_space<vmem>>, vector<4x256xf32>
    %194 = vector.broadcast %27 : vector<1x256xf32> to vector<4x256xf32>
    %195 = arith.mulf %193, %194 : vector<4x256xf32>
    %196 = vector.extract_strided_slice %158 {offsets = [0, 5], sizes = [4, 1], strides = [1, 1]} : vector<4x25xf32> to vector<4x1xf32>
    %197 = vector.broadcast %196 : vector<4x1xf32> to vector<4x256xf32>
    %198 = arith.mulf %195, %197 : vector<4x256xf32>
    %199 = arith.addf %192, %198 : vector<4x256xf32>
    %c0_76 = arith.constant 0 : index
    %c17_77 = arith.constant 17 : index
    %200 = vector.load %arg16[%c0_76, %c17_77] : memref<4x324xf32, #tpu.memory_space<vmem>>, vector<4x256xf32>
    %201 = vector.broadcast %38 : vector<1x256xf32> to vector<4x256xf32>
    %202 = arith.mulf %200, %201 : vector<4x256xf32>
    %203 = vector.extract_strided_slice %158 {offsets = [0, 6], sizes = [4, 1], strides = [1, 1]} : vector<4x25xf32> to vector<4x1xf32>
    %204 = vector.broadcast %203 : vector<4x1xf32> to vector<4x256xf32>
    %205 = arith.mulf %202, %204 : vector<4x256xf32>
    %206 = arith.addf %199, %205 : vector<4x256xf32>
    %c0_78 = arith.constant 0 : index
    %c18_79 = arith.constant 18 : index
    %207 = vector.load %arg16[%c0_78, %c18_79] : memref<4x324xf32, #tpu.memory_space<vmem>>, vector<4x256xf32>
    %208 = vector.extract_strided_slice %158 {offsets = [0, 7], sizes = [4, 1], strides = [1, 1]} : vector<4x25xf32> to vector<4x1xf32>
    %209 = vector.broadcast %208 : vector<4x1xf32> to vector<4x256xf32>
    %210 = arith.mulf %207, %209 : vector<4x256xf32>
    %211 = arith.addf %206, %210 : vector<4x256xf32>
    %c0_80 = arith.constant 0 : index
    %c19 = arith.constant 19 : index
    %212 = vector.load %arg16[%c0_80, %c19] : memref<4x324xf32, #tpu.memory_space<vmem>>, vector<4x256xf32>
    %213 = vector.broadcast %49 : vector<1x256xf32> to vector<4x256xf32>
    %214 = arith.mulf %212, %213 : vector<4x256xf32>
    %215 = vector.extract_strided_slice %158 {offsets = [0, 8], sizes = [4, 1], strides = [1, 1]} : vector<4x25xf32> to vector<4x1xf32>
    %216 = vector.broadcast %215 : vector<4x1xf32> to vector<4x256xf32>
    %217 = arith.mulf %214, %216 : vector<4x256xf32>
    %218 = arith.addf %211, %217 : vector<4x256xf32>
    %c0_81 = arith.constant 0 : index
    %c20 = arith.constant 20 : index
    %219 = vector.load %arg16[%c0_81, %c20] : memref<4x324xf32, #tpu.memory_space<vmem>>, vector<4x256xf32>
    %220 = vector.broadcast %60 : vector<1x256xf32> to vector<4x256xf32>
    %221 = arith.mulf %219, %220 : vector<4x256xf32>
    %222 = vector.extract_strided_slice %158 {offsets = [0, 9], sizes = [4, 1], strides = [1, 1]} : vector<4x25xf32> to vector<4x1xf32>
    %223 = vector.broadcast %222 : vector<4x1xf32> to vector<4x256xf32>
    %224 = arith.mulf %221, %223 : vector<4x256xf32>
    %225 = arith.addf %218, %224 : vector<4x256xf32>
    %c0_82 = arith.constant 0 : index
    %c32_83 = arith.constant 32 : index
    %226 = vector.load %arg16[%c0_82, %c32_83] : memref<4x324xf32, #tpu.memory_space<vmem>>, vector<4x256xf32>
    %227 = vector.broadcast %27 : vector<1x256xf32> to vector<4x256xf32>
    %228 = arith.mulf %226, %227 : vector<4x256xf32>
    %229 = vector.extract_strided_slice %158 {offsets = [0, 10], sizes = [4, 1], strides = [1, 1]} : vector<4x25xf32> to vector<4x1xf32>
    %230 = vector.broadcast %229 : vector<4x1xf32> to vector<4x256xf32>
    %231 = arith.mulf %228, %230 : vector<4x256xf32>
    %232 = arith.addf %225, %231 : vector<4x256xf32>
    %c0_84 = arith.constant 0 : index
    %c33_85 = arith.constant 33 : index
    %233 = vector.load %arg16[%c0_84, %c33_85] : memref<4x324xf32, #tpu.memory_space<vmem>>, vector<4x256xf32>
    %234 = vector.broadcast %38 : vector<1x256xf32> to vector<4x256xf32>
    %235 = arith.mulf %233, %234 : vector<4x256xf32>
    %236 = vector.extract_strided_slice %158 {offsets = [0, 11], sizes = [4, 1], strides = [1, 1]} : vector<4x25xf32> to vector<4x1xf32>
    %237 = vector.broadcast %236 : vector<4x1xf32> to vector<4x256xf32>
    %238 = arith.mulf %235, %237 : vector<4x256xf32>
    %239 = arith.addf %232, %238 : vector<4x256xf32>
    %c0_86 = arith.constant 0 : index
    %c34_87 = arith.constant 34 : index
    %240 = vector.load %arg16[%c0_86, %c34_87] : memref<4x324xf32, #tpu.memory_space<vmem>>, vector<4x256xf32>
    %241 = vector.extract_strided_slice %158 {offsets = [0, 12], sizes = [4, 1], strides = [1, 1]} : vector<4x25xf32> to vector<4x1xf32>
    %242 = vector.broadcast %241 : vector<4x1xf32> to vector<4x256xf32>
    %243 = arith.mulf %240, %242 : vector<4x256xf32>
    %244 = arith.addf %239, %243 : vector<4x256xf32>
    %c0_88 = arith.constant 0 : index
    %c35 = arith.constant 35 : index
    %245 = vector.load %arg16[%c0_88, %c35] : memref<4x324xf32, #tpu.memory_space<vmem>>, vector<4x256xf32>
    %246 = vector.broadcast %49 : vector<1x256xf32> to vector<4x256xf32>
    %247 = arith.mulf %245, %246 : vector<4x256xf32>
    %248 = vector.extract_strided_slice %158 {offsets = [0, 13], sizes = [4, 1], strides = [1, 1]} : vector<4x25xf32> to vector<4x1xf32>
    %249 = vector.broadcast %248 : vector<4x1xf32> to vector<4x256xf32>
    %250 = arith.mulf %247, %249 : vector<4x256xf32>
    %251 = arith.addf %244, %250 : vector<4x256xf32>
    %c0_89 = arith.constant 0 : index
    %c36 = arith.constant 36 : index
    %252 = vector.load %arg16[%c0_89, %c36] : memref<4x324xf32, #tpu.memory_space<vmem>>, vector<4x256xf32>
    %253 = vector.broadcast %60 : vector<1x256xf32> to vector<4x256xf32>
    %254 = arith.mulf %252, %253 : vector<4x256xf32>
    %255 = vector.extract_strided_slice %158 {offsets = [0, 14], sizes = [4, 1], strides = [1, 1]} : vector<4x25xf32> to vector<4x1xf32>
    %256 = vector.broadcast %255 : vector<4x1xf32> to vector<4x256xf32>
    %257 = arith.mulf %254, %256 : vector<4x256xf32>
    %258 = arith.addf %251, %257 : vector<4x256xf32>
    %c0_90 = arith.constant 0 : index
    %c48 = arith.constant 48 : index
    %259 = vector.load %arg16[%c0_90, %c48] : memref<4x324xf32, #tpu.memory_space<vmem>>, vector<4x256xf32>
    %260 = vector.broadcast %27 : vector<1x256xf32> to vector<4x256xf32>
    %261 = arith.mulf %259, %260 : vector<4x256xf32>
    %262 = vector.extract_strided_slice %158 {offsets = [0, 15], sizes = [4, 1], strides = [1, 1]} : vector<4x25xf32> to vector<4x1xf32>
    %263 = vector.broadcast %262 : vector<4x1xf32> to vector<4x256xf32>
    %264 = arith.mulf %261, %263 : vector<4x256xf32>
    %265 = arith.addf %258, %264 : vector<4x256xf32>
    %c0_91 = arith.constant 0 : index
    %c49 = arith.constant 49 : index
    %266 = vector.load %arg16[%c0_91, %c49] : memref<4x324xf32, #tpu.memory_space<vmem>>, vector<4x256xf32>
    %267 = vector.broadcast %38 : vector<1x256xf32> to vector<4x256xf32>
    %268 = arith.mulf %266, %267 : vector<4x256xf32>
    %269 = vector.extract_strided_slice %158 {offsets = [0, 16], sizes = [4, 1], strides = [1, 1]} : vector<4x25xf32> to vector<4x1xf32>
    %270 = vector.broadcast %269 : vector<4x1xf32> to vector<4x256xf32>
    %271 = arith.mulf %268, %270 : vector<4x256xf32>
    %272 = arith.addf %265, %271 : vector<4x256xf32>
    %c0_92 = arith.constant 0 : index
    %c50 = arith.constant 50 : index
    %273 = vector.load %arg16[%c0_92, %c50] : memref<4x324xf32, #tpu.memory_space<vmem>>, vector<4x256xf32>
    %274 = vector.extract_strided_slice %158 {offsets = [0, 17], sizes = [4, 1], strides = [1, 1]} : vector<4x25xf32> to vector<4x1xf32>
    %275 = vector.broadcast %274 : vector<4x1xf32> to vector<4x256xf32>
    %276 = arith.mulf %273, %275 : vector<4x256xf32>
    %277 = arith.addf %272, %276 : vector<4x256xf32>
    %c0_93 = arith.constant 0 : index
    %c51 = arith.constant 51 : index
    %278 = vector.load %arg16[%c0_93, %c51] : memref<4x324xf32, #tpu.memory_space<vmem>>, vector<4x256xf32>
    %279 = vector.broadcast %49 : vector<1x256xf32> to vector<4x256xf32>
    %280 = arith.mulf %278, %279 : vector<4x256xf32>
    %281 = vector.extract_strided_slice %158 {offsets = [0, 18], sizes = [4, 1], strides = [1, 1]} : vector<4x25xf32> to vector<4x1xf32>
    %282 = vector.broadcast %281 : vector<4x1xf32> to vector<4x256xf32>
    %283 = arith.mulf %280, %282 : vector<4x256xf32>
    %284 = arith.addf %277, %283 : vector<4x256xf32>
    %c0_94 = arith.constant 0 : index
    %c52 = arith.constant 52 : index
    %285 = vector.load %arg16[%c0_94, %c52] : memref<4x324xf32, #tpu.memory_space<vmem>>, vector<4x256xf32>
    %286 = vector.broadcast %60 : vector<1x256xf32> to vector<4x256xf32>
    %287 = arith.mulf %285, %286 : vector<4x256xf32>
    %288 = vector.extract_strided_slice %158 {offsets = [0, 19], sizes = [4, 1], strides = [1, 1]} : vector<4x25xf32> to vector<4x1xf32>
    %289 = vector.broadcast %288 : vector<4x1xf32> to vector<4x256xf32>
    %290 = arith.mulf %287, %289 : vector<4x256xf32>
    %291 = arith.addf %284, %290 : vector<4x256xf32>
    %c0_95 = arith.constant 0 : index
    %c64 = arith.constant 64 : index
    %292 = vector.load %arg16[%c0_95, %c64] : memref<4x324xf32, #tpu.memory_space<vmem>>, vector<4x256xf32>
    %293 = vector.broadcast %27 : vector<1x256xf32> to vector<4x256xf32>
    %294 = arith.mulf %292, %293 : vector<4x256xf32>
    %295 = vector.extract_strided_slice %158 {offsets = [0, 20], sizes = [4, 1], strides = [1, 1]} : vector<4x25xf32> to vector<4x1xf32>
    %296 = vector.broadcast %295 : vector<4x1xf32> to vector<4x256xf32>
    %297 = arith.mulf %294, %296 : vector<4x256xf32>
    %298 = arith.addf %291, %297 : vector<4x256xf32>
    %c0_96 = arith.constant 0 : index
    %c65 = arith.constant 65 : index
    %299 = vector.load %arg16[%c0_96, %c65] : memref<4x324xf32, #tpu.memory_space<vmem>>, vector<4x256xf32>
    %300 = vector.broadcast %38 : vector<1x256xf32> to vector<4x256xf32>
    %301 = arith.mulf %299, %300 : vector<4x256xf32>
    %302 = vector.extract_strided_slice %158 {offsets = [0, 21], sizes = [4, 1], strides = [1, 1]} : vector<4x25xf32> to vector<4x1xf32>
    %303 = vector.broadcast %302 : vector<4x1xf32> to vector<4x256xf32>
    %304 = arith.mulf %301, %303 : vector<4x256xf32>
    %305 = arith.addf %298, %304 : vector<4x256xf32>
    %c0_97 = arith.constant 0 : index
    %c66 = arith.constant 66 : index
    %306 = vector.load %arg16[%c0_97, %c66] : memref<4x324xf32, #tpu.memory_space<vmem>>, vector<4x256xf32>
    %307 = vector.extract_strided_slice %158 {offsets = [0, 22], sizes = [4, 1], strides = [1, 1]} : vector<4x25xf32> to vector<4x1xf32>
    %308 = vector.broadcast %307 : vector<4x1xf32> to vector<4x256xf32>
    %309 = arith.mulf %306, %308 : vector<4x256xf32>
    %310 = arith.addf %305, %309 : vector<4x256xf32>
    %c0_98 = arith.constant 0 : index
    %c67 = arith.constant 67 : index
    %311 = vector.load %arg16[%c0_98, %c67] : memref<4x324xf32, #tpu.memory_space<vmem>>, vector<4x256xf32>
    %312 = vector.broadcast %49 : vector<1x256xf32> to vector<4x256xf32>
    %313 = arith.mulf %311, %312 : vector<4x256xf32>
    %314 = vector.extract_strided_slice %158 {offsets = [0, 23], sizes = [4, 1], strides = [1, 1]} : vector<4x25xf32> to vector<4x1xf32>
    %315 = vector.broadcast %314 : vector<4x1xf32> to vector<4x256xf32>
    %316 = arith.mulf %313, %315 : vector<4x256xf32>
    %317 = arith.addf %310, %316 : vector<4x256xf32>
    %c0_99 = arith.constant 0 : index
    %c68 = arith.constant 68 : index
    %318 = vector.load %arg16[%c0_99, %c68] : memref<4x324xf32, #tpu.memory_space<vmem>>, vector<4x256xf32>
    %319 = vector.broadcast %60 : vector<1x256xf32> to vector<4x256xf32>
    %320 = arith.mulf %318, %319 : vector<4x256xf32>
    %321 = vector.extract_strided_slice %158 {offsets = [0, 24], sizes = [4, 1], strides = [1, 1]} : vector<4x25xf32> to vector<4x1xf32>
    %322 = vector.broadcast %321 : vector<4x1xf32> to vector<4x256xf32>
    %323 = arith.mulf %320, %322 : vector<4x256xf32>
    %324 = arith.addf %317, %323 : vector<4x256xf32>
    %c0_100 = arith.constant 0 : index
    %c0_101 = arith.constant 0 : index
    %325 = vector.load %arg9[%c0_100, %c0_101] : memref<4x1xf32, #tpu.memory_space<vmem>>, vector<4x1xf32>
    %326 = vector.broadcast %325 : vector<4x1xf32> to vector<4x256xf32>
    %327 = arith.addf %324, %326 : vector<4x256xf32>
    %328 = arith.negf %327 : vector<4x256xf32>
    %329 = math.exp %328 : vector<4x256xf32>
    %cst_102 = arith.constant 1.000000e+00 : f32
    %330 = vector.broadcast %cst_102 : f32 to vector<4x256xf32>
    %331 = arith.addf %330, %329 : vector<4x256xf32>
    %332 = arith.divf %330, %331 : vector<4x256xf32>
    %333 = arith.mulf %327, %332 : vector<4x256xf32>
    %cst_103 = arith.constant dense<0.000000e+00> : vector<4xf32>
    %334 = vector.multi_reduction <add>, %156, %cst_103 [1] : vector<4x256xf32> to vector<4xf32>
    %335 = vector.shape_cast %334 : vector<4xf32> to vector<4x1xf32>
    %cst_104 = arith.constant 2.560000e+02 : f32
    %336 = vector.broadcast %cst_104 : f32 to vector<4x1xf32>
    %337 = arith.divf %335, %336 : vector<4x1xf32>
    %cst_105 = arith.constant dense<0.000000e+00> : vector<4xf32>
    %338 = vector.multi_reduction <add>, %333, %cst_105 [1] : vector<4x256xf32> to vector<4xf32>
    %339 = vector.shape_cast %338 : vector<4xf32> to vector<4x1xf32>
    %cst_106 = arith.constant 2.560000e+02 : f32
    %340 = vector.broadcast %cst_106 : f32 to vector<4x1xf32>
    %341 = arith.divf %339, %340 : vector<4x1xf32>
    %342 = tpu.concatenate %337, %341 in 0 : vector<4x1xf32>, vector<4x1xf32> -> vector<8x1xf32>
    %c0_107 = arith.constant 0 : index
    %c0_108 = arith.constant 0 : index
    %343 = vector.load %arg10[%c0_107, %c0_108] : memref<16x8xf32, #tpu.memory_space<vmem>>, vector<16x8xf32>
    %cst_109 = arith.constant dense<0.000000e+00> : vector<16x1xf32>
    %344 = tpu.matmul %343, %342, %cst_109 {dimension_numbers = #tpu.dot_dimension_numbers<[1], [0], [0], [1], [0, 0, 1, 1], [], []>} : vector<16x8xf32>, vector<8x1xf32>, vector<16x1xf32> -> vector<16x1xf32>
    %cst_110 = arith.constant 0.000000e+00 : f32
    %345 = vector.broadcast %cst_110 : f32 to vector<16x1xf32>
    %346 = arith.maximumf %344, %345 : vector<16x1xf32>
    %c0_111 = arith.constant 0 : index
    %c0_112 = arith.constant 0 : index
    %347 = vector.load %arg11[%c0_111, %c0_112] : memref<29x16xf32, #tpu.memory_space<vmem>>, vector<29x16xf32>
    %cst_113 = arith.constant dense<0.000000e+00> : vector<29x1xf32>
    %348 = tpu.matmul %347, %346, %cst_113 {dimension_numbers = #tpu.dot_dimension_numbers<[1], [0], [0], [1], [0, 0, 1, 1], [], []>} : vector<29x16xf32>, vector<16x1xf32>, vector<29x1xf32> -> vector<29x1xf32>
    %c0_114 = arith.constant 0 : index
    %c0_115 = arith.constant 0 : index
    %349 = vector.load %arg12[%c0_114, %c0_115] : memref<29x1xf32, #tpu.memory_space<vmem>>, vector<29x1xf32>
    %350 = arith.addf %348, %349 : vector<29x1xf32>
    %351 = vector.extract_strided_slice %350 {offsets = [0, 0], sizes = [8, 1], strides = [1, 1]} : vector<29x1xf32> to vector<8x1xf32>
    %352 = arith.negf %351 : vector<8x1xf32>
    %353 = math.exp %352 : vector<8x1xf32>
    %cst_116 = arith.constant 1.000000e+00 : f32
    %354 = vector.broadcast %cst_116 : f32 to vector<8x1xf32>
    %355 = arith.addf %354, %353 : vector<8x1xf32>
    %356 = arith.divf %354, %355 : vector<8x1xf32>
    %357 = vector.extract_strided_slice %350 {offsets = [8, 0], sizes = [8, 1], strides = [1, 1]} : vector<29x1xf32> to vector<8x1xf32>
    %358 = arith.negf %357 : vector<8x1xf32>
    %359 = math.exp %358 : vector<8x1xf32>
    %cst_117 = arith.constant 1.000000e+00 : f32
    %360 = vector.broadcast %cst_117 : f32 to vector<8x1xf32>
    %361 = arith.addf %360, %359 : vector<8x1xf32>
    %362 = arith.divf %360, %361 : vector<8x1xf32>
    %363 = vector.extract_strided_slice %350 {offsets = [16, 0], sizes = [9, 1], strides = [1, 1]} : vector<29x1xf32> to vector<9x1xf32>
    %364 = arith.negf %363 : vector<9x1xf32>
    %365 = math.exp %364 : vector<9x1xf32>
    %cst_118 = arith.constant 1.000000e+00 : f32
    %366 = vector.broadcast %cst_118 : f32 to vector<9x1xf32>
    %367 = arith.addf %366, %365 : vector<9x1xf32>
    %368 = arith.divf %366, %367 : vector<9x1xf32>
    %369 = vector.extract_strided_slice %350 {offsets = [25, 0], sizes = [4, 1], strides = [1, 1]} : vector<29x1xf32> to vector<4x1xf32>
    %cst_119 = arith.constant dense<0xFF800000> : vector<1xf32>
    %370 = vector.multi_reduction <maximumf>, %369, %cst_119 [0] : vector<4x1xf32> to vector<1xf32>
    %cst_120 = arith.constant 0xFF800000 : f32
    %371 = vector.broadcast %cst_120 : f32 to vector<1xf32>
    %372 = arith.maximumf %371, %370 : vector<1xf32>
    %373 = vector.shape_cast %372 : vector<1xf32> to vector<1x1xf32>
    %374 = vector.broadcast %373 : vector<1x1xf32> to vector<4x1xf32>
    %375 = arith.subf %369, %374 : vector<4x1xf32>
    %376 = math.exp %375 : vector<4x1xf32>
    %cst_121 = arith.constant dense<0.000000e+00> : vector<1xf32>
    %377 = vector.multi_reduction <add>, %376, %cst_121 [0] : vector<4x1xf32> to vector<1xf32>
    %378 = vector.shape_cast %377 : vector<1xf32> to vector<1x1xf32>
    %379 = vector.broadcast %378 : vector<1x1xf32> to vector<4x1xf32>
    %380 = arith.divf %376, %379 : vector<4x1xf32>
    %381 = vector.extract_strided_slice %356 {offsets = [0, 0], sizes = [4, 1], strides = [1, 1]} : vector<8x1xf32> to vector<4x1xf32>
    %382 = vector.broadcast %381 : vector<4x1xf32> to vector<4x256xf32>
    %383 = arith.mulf %156, %382 : vector<4x256xf32>
    %384 = arith.truncf %383 : vector<4x256xf32> to vector<4x256xbf16>
    %c0_122 = arith.constant 0 : index
    %c17_123 = arith.constant 17 : index
    %385 = vector.load %arg15[%c0_122, %c17_123] : memref<8x290xbf16, #tpu.memory_space<vmem>>, vector<4x256xbf16>
    tpu.vector_store %arg15[%c0_122, %c17_123], %384 {strides = array<i32>} : memref<8x290xbf16, #tpu.memory_space<vmem>>, vector<4x256xbf16>,
    %386 = vector.extract_strided_slice %356 {offsets = [4, 0], sizes = [4, 1], strides = [1, 1]} : vector<8x1xf32> to vector<4x1xf32>
    %387 = vector.broadcast %386 : vector<4x1xf32> to vector<4x256xf32>
    %388 = arith.mulf %333, %387 : vector<4x256xf32>
    %389 = arith.truncf %388 : vector<4x256xf32> to vector<4x256xbf16>
    %c4_124 = arith.constant 4 : index
    %c17_125 = arith.constant 17 : index
    %390 = vector.load %arg15[%c4_124, %c17_125] : memref<8x290xbf16, #tpu.memory_space<vmem>>, vector<4x256xbf16>
    tpu.vector_store %arg15[%c4_124, %c17_125], %389 {strides = array<i32>} : memref<8x290xbf16, #tpu.memory_space<vmem>>, vector<4x256xbf16>,
    %cst_126 = arith.constant 0.000000e+00 : f32
    %391 = vector.broadcast %cst_126 : f32 to vector<8x256xf32>
    %c0_127 = arith.constant 0 : index
    %c0_128 = arith.constant 0 : index
    %392 = vector.load %arg15[%c0_127, %c0_128] : memref<8x290xbf16, #tpu.memory_space<vmem>>, vector<8x256xbf16>
    %393 = vector.broadcast %61 : vector<1x256xbf16> to vector<8x256xbf16>
    %394 = arith.mulf %392, %393 : vector<8x256xbf16>
    %395 = vector.extract_strided_slice %380 {offsets = [0, 0], sizes = [1, 1], strides = [1, 1]} : vector<4x1xf32> to vector<1x1xf32>
    %c0_129 = arith.constant 0 : index
    %c0_130 = arith.constant 0 : index
    %c0_131 = arith.constant 0 : index
    %c0_132 = arith.constant 0 : index
    %396 = vector.load %arg13[%c0_129, %c0_130, %c0_131, %c0_132] : memref<4x9x8x8xbf16, #tpu.memory_space<vmem>>, vector<1x1x8x8xbf16>
    %397 = vector.shape_cast %396 : vector<1x1x8x8xbf16> to vector<8x8xbf16>
    %398 = arith.extf %397 : vector<8x8xbf16> to vector<8x8xf32>
    %399 = vector.broadcast %395 : vector<1x1xf32> to vector<8x8xf32>
    %400 = arith.mulf %399, %398 : vector<8x8xf32>
    %401 = vector.extract_strided_slice %380 {offsets = [1, 0], sizes = [1, 1], strides = [1, 1]} : vector<4x1xf32> to vector<1x1xf32>
    %c1_133 = arith.constant 1 : index
    %c0_134 = arith.constant 0 : index
    %c0_135 = arith.constant 0 : index
    %c0_136 = arith.constant 0 : index
    %402 = vector.load %arg13[%c1_133, %c0_134, %c0_135, %c0_136] : memref<4x9x8x8xbf16, #tpu.memory_space<vmem>>, vector<1x1x8x8xbf16>
    %403 = vector.shape_cast %402 : vector<1x1x8x8xbf16> to vector<8x8xbf16>
    %404 = arith.extf %403 : vector<8x8xbf16> to vector<8x8xf32>
    %405 = vector.broadcast %401 : vector<1x1xf32> to vector<8x8xf32>
    %406 = arith.mulf %405, %404 : vector<8x8xf32>
    %407 = arith.addf %400, %406 : vector<8x8xf32>
    %408 = vector.extract_strided_slice %380 {offsets = [2, 0], sizes = [1, 1], strides = [1, 1]} : vector<4x1xf32> to vector<1x1xf32>
    %c2_137 = arith.constant 2 : index
    %c0_138 = arith.constant 0 : index
    %c0_139 = arith.constant 0 : index
    %c0_140 = arith.constant 0 : index
    %409 = vector.load %arg13[%c2_137, %c0_138, %c0_139, %c0_140] : memref<4x9x8x8xbf16, #tpu.memory_space<vmem>>, vector<1x1x8x8xbf16>
    %410 = vector.shape_cast %409 : vector<1x1x8x8xbf16> to vector<8x8xbf16>
    %411 = arith.extf %410 : vector<8x8xbf16> to vector<8x8xf32>
    %412 = vector.broadcast %408 : vector<1x1xf32> to vector<8x8xf32>
    %413 = arith.mulf %412, %411 : vector<8x8xf32>
    %414 = arith.addf %407, %413 : vector<8x8xf32>
    %415 = vector.extract_strided_slice %380 {offsets = [3, 0], sizes = [1, 1], strides = [1, 1]} : vector<4x1xf32> to vector<1x1xf32>
    %c3_141 = arith.constant 3 : index
    %c0_142 = arith.constant 0 : index
    %c0_143 = arith.constant 0 : index
    %c0_144 = arith.constant 0 : index
    %416 = vector.load %arg13[%c3_141, %c0_142, %c0_143, %c0_144] : memref<4x9x8x8xbf16, #tpu.memory_space<vmem>>, vector<1x1x8x8xbf16>
    %417 = vector.shape_cast %416 : vector<1x1x8x8xbf16> to vector<8x8xbf16>
    %418 = arith.extf %417 : vector<8x8xbf16> to vector<8x8xf32>
    %419 = vector.broadcast %415 : vector<1x1xf32> to vector<8x8xf32>
    %420 = arith.mulf %419, %418 : vector<8x8xf32>
    %421 = arith.addf %414, %420 : vector<8x8xf32>
    %422 = vector.extract_strided_slice %368 {offsets = [0, 0], sizes = [1, 1], strides = [1, 1]} : vector<9x1xf32> to vector<1x1xf32>
    %423 = vector.broadcast %422 : vector<1x1xf32> to vector<8x8xf32>
    %424 = arith.mulf %421, %423 : vector<8x8xf32>
    %425 = arith.truncf %424 : vector<8x8xf32> to vector<8x8xbf16>
    %cst_145 = arith.constant dense<0.000000e+00> : vector<8x256xf32>
    %426 = tpu.matmul %425, %394, %cst_145 {dimension_numbers = #tpu.dot_dimension_numbers<[1], [0], [0], [1], [0, 0, 1, 1], [], []>} : vector<8x8xbf16>, vector<8x256xbf16>, vector<8x256xf32> -> vector<8x256xf32>
    %427 = arith.addf %391, %426 : vector<8x256xf32>
    %c0_146 = arith.constant 0 : index
    %c1_147 = arith.constant 1 : index
    %428 = vector.load %arg15[%c0_146, %c1_147] : memref<8x290xbf16, #tpu.memory_space<vmem>>, vector<8x256xbf16>
    %429 = vector.extract_strided_slice %380 {offsets = [0, 0], sizes = [1, 1], strides = [1, 1]} : vector<4x1xf32> to vector<1x1xf32>
    %c0_148 = arith.constant 0 : index
    %c1_149 = arith.constant 1 : index
    %c0_150 = arith.constant 0 : index
    %c0_151 = arith.constant 0 : index
    %430 = vector.load %arg13[%c0_148, %c1_149, %c0_150, %c0_151] : memref<4x9x8x8xbf16, #tpu.memory_space<vmem>>, vector<1x1x8x8xbf16>
    %431 = vector.shape_cast %430 : vector<1x1x8x8xbf16> to vector<8x8xbf16>
    %432 = arith.extf %431 : vector<8x8xbf16> to vector<8x8xf32>
    %433 = vector.broadcast %429 : vector<1x1xf32> to vector<8x8xf32>
    %434 = arith.mulf %433, %432 : vector<8x8xf32>
    %435 = vector.extract_strided_slice %380 {offsets = [1, 0], sizes = [1, 1], strides = [1, 1]} : vector<4x1xf32> to vector<1x1xf32>
    %c1_152 = arith.constant 1 : index
    %c1_153 = arith.constant 1 : index
    %c0_154 = arith.constant 0 : index
    %c0_155 = arith.constant 0 : index
    %436 = vector.load %arg13[%c1_152, %c1_153, %c0_154, %c0_155] : memref<4x9x8x8xbf16, #tpu.memory_space<vmem>>, vector<1x1x8x8xbf16>
    %437 = vector.shape_cast %436 : vector<1x1x8x8xbf16> to vector<8x8xbf16>
    %438 = arith.extf %437 : vector<8x8xbf16> to vector<8x8xf32>
    %439 = vector.broadcast %435 : vector<1x1xf32> to vector<8x8xf32>
    %440 = arith.mulf %439, %438 : vector<8x8xf32>
    %441 = arith.addf %434, %440 : vector<8x8xf32>
    %442 = vector.extract_strided_slice %380 {offsets = [2, 0], sizes = [1, 1], strides = [1, 1]} : vector<4x1xf32> to vector<1x1xf32>
    %c2_156 = arith.constant 2 : index
    %c1_157 = arith.constant 1 : index
    %c0_158 = arith.constant 0 : index
    %c0_159 = arith.constant 0 : index
    %443 = vector.load %arg13[%c2_156, %c1_157, %c0_158, %c0_159] : memref<4x9x8x8xbf16, #tpu.memory_space<vmem>>, vector<1x1x8x8xbf16>
    %444 = vector.shape_cast %443 : vector<1x1x8x8xbf16> to vector<8x8xbf16>
    %445 = arith.extf %444 : vector<8x8xbf16> to vector<8x8xf32>
    %446 = vector.broadcast %442 : vector<1x1xf32> to vector<8x8xf32>
    %447 = arith.mulf %446, %445 : vector<8x8xf32>
    %448 = arith.addf %441, %447 : vector<8x8xf32>
    %449 = vector.extract_strided_slice %380 {offsets = [3, 0], sizes = [1, 1], strides = [1, 1]} : vector<4x1xf32> to vector<1x1xf32>
    %c3_160 = arith.constant 3 : index
    %c1_161 = arith.constant 1 : index
    %c0_162 = arith.constant 0 : index
    %c0_163 = arith.constant 0 : index
    %450 = vector.load %arg13[%c3_160, %c1_161, %c0_162, %c0_163] : memref<4x9x8x8xbf16, #tpu.memory_space<vmem>>, vector<1x1x8x8xbf16>
    %451 = vector.shape_cast %450 : vector<1x1x8x8xbf16> to vector<8x8xbf16>
    %452 = arith.extf %451 : vector<8x8xbf16> to vector<8x8xf32>
    %453 = vector.broadcast %449 : vector<1x1xf32> to vector<8x8xf32>
    %454 = arith.mulf %453, %452 : vector<8x8xf32>
    %455 = arith.addf %448, %454 : vector<8x8xf32>
    %456 = vector.extract_strided_slice %368 {offsets = [1, 0], sizes = [1, 1], strides = [1, 1]} : vector<9x1xf32> to vector<1x1xf32>
    %457 = vector.broadcast %456 : vector<1x1xf32> to vector<8x8xf32>
    %458 = arith.mulf %455, %457 : vector<8x8xf32>
    %459 = arith.truncf %458 : vector<8x8xf32> to vector<8x8xbf16>
    %cst_164 = arith.constant dense<0.000000e+00> : vector<8x256xf32>
    %460 = tpu.matmul %459, %428, %cst_164 {dimension_numbers = #tpu.dot_dimension_numbers<[1], [0], [0], [1], [0, 0, 1, 1], [], []>} : vector<8x8xbf16>, vector<8x256xbf16>, vector<8x256xf32> -> vector<8x256xf32>
    %461 = arith.addf %427, %460 : vector<8x256xf32>
    %c0_165 = arith.constant 0 : index
    %c2_166 = arith.constant 2 : index
    %462 = vector.load %arg15[%c0_165, %c2_166] : memref<8x290xbf16, #tpu.memory_space<vmem>>, vector<8x256xbf16>
    %463 = vector.broadcast %62 : vector<1x256xbf16> to vector<8x256xbf16>
    %464 = arith.mulf %462, %463 : vector<8x256xbf16>
    %465 = vector.extract_strided_slice %380 {offsets = [0, 0], sizes = [1, 1], strides = [1, 1]} : vector<4x1xf32> to vector<1x1xf32>
    %c0_167 = arith.constant 0 : index
    %c2_168 = arith.constant 2 : index
    %c0_169 = arith.constant 0 : index
    %c0_170 = arith.constant 0 : index
    %466 = vector.load %arg13[%c0_167, %c2_168, %c0_169, %c0_170] : memref<4x9x8x8xbf16, #tpu.memory_space<vmem>>, vector<1x1x8x8xbf16>
    %467 = vector.shape_cast %466 : vector<1x1x8x8xbf16> to vector<8x8xbf16>
    %468 = arith.extf %467 : vector<8x8xbf16> to vector<8x8xf32>
    %469 = vector.broadcast %465 : vector<1x1xf32> to vector<8x8xf32>
    %470 = arith.mulf %469, %468 : vector<8x8xf32>
    %471 = vector.extract_strided_slice %380 {offsets = [1, 0], sizes = [1, 1], strides = [1, 1]} : vector<4x1xf32> to vector<1x1xf32>
    %c1_171 = arith.constant 1 : index
    %c2_172 = arith.constant 2 : index
    %c0_173 = arith.constant 0 : index
    %c0_174 = arith.constant 0 : index
    %472 = vector.load %arg13[%c1_171, %c2_172, %c0_173, %c0_174] : memref<4x9x8x8xbf16, #tpu.memory_space<vmem>>, vector<1x1x8x8xbf16>
    %473 = vector.shape_cast %472 : vector<1x1x8x8xbf16> to vector<8x8xbf16>
    %474 = arith.extf %473 : vector<8x8xbf16> to vector<8x8xf32>
    %475 = vector.broadcast %471 : vector<1x1xf32> to vector<8x8xf32>
    %476 = arith.mulf %475, %474 : vector<8x8xf32>
    %477 = arith.addf %470, %476 : vector<8x8xf32>
    %478 = vector.extract_strided_slice %380 {offsets = [2, 0], sizes = [1, 1], strides = [1, 1]} : vector<4x1xf32> to vector<1x1xf32>
    %c2_175 = arith.constant 2 : index
    %c2_176 = arith.constant 2 : index
    %c0_177 = arith.constant 0 : index
    %c0_178 = arith.constant 0 : index
    %479 = vector.load %arg13[%c2_175, %c2_176, %c0_177, %c0_178] : memref<4x9x8x8xbf16, #tpu.memory_space<vmem>>, vector<1x1x8x8xbf16>
    %480 = vector.shape_cast %479 : vector<1x1x8x8xbf16> to vector<8x8xbf16>
    %481 = arith.extf %480 : vector<8x8xbf16> to vector<8x8xf32>
    %482 = vector.broadcast %478 : vector<1x1xf32> to vector<8x8xf32>
    %483 = arith.mulf %482, %481 : vector<8x8xf32>
    %484 = arith.addf %477, %483 : vector<8x8xf32>
    %485 = vector.extract_strided_slice %380 {offsets = [3, 0], sizes = [1, 1], strides = [1, 1]} : vector<4x1xf32> to vector<1x1xf32>
    %c3_179 = arith.constant 3 : index
    %c2_180 = arith.constant 2 : index
    %c0_181 = arith.constant 0 : index
    %c0_182 = arith.constant 0 : index
    %486 = vector.load %arg13[%c3_179, %c2_180, %c0_181, %c0_182] : memref<4x9x8x8xbf16, #tpu.memory_space<vmem>>, vector<1x1x8x8xbf16>
    %487 = vector.shape_cast %486 : vector<1x1x8x8xbf16> to vector<8x8xbf16>
    %488 = arith.extf %487 : vector<8x8xbf16> to vector<8x8xf32>
    %489 = vector.broadcast %485 : vector<1x1xf32> to vector<8x8xf32>
    %490 = arith.mulf %489, %488 : vector<8x8xf32>
    %491 = arith.addf %484, %490 : vector<8x8xf32>
    %492 = vector.extract_strided_slice %368 {offsets = [2, 0], sizes = [1, 1], strides = [1, 1]} : vector<9x1xf32> to vector<1x1xf32>
    %493 = vector.broadcast %492 : vector<1x1xf32> to vector<8x8xf32>
    %494 = arith.mulf %491, %493 : vector<8x8xf32>
    %495 = arith.truncf %494 : vector<8x8xf32> to vector<8x8xbf16>
    %cst_183 = arith.constant dense<0.000000e+00> : vector<8x256xf32>
    %496 = tpu.matmul %495, %464, %cst_183 {dimension_numbers = #tpu.dot_dimension_numbers<[1], [0], [0], [1], [0, 0, 1, 1], [], []>} : vector<8x8xbf16>, vector<8x256xbf16>, vector<8x256xf32> -> vector<8x256xf32>
    %497 = arith.addf %461, %496 : vector<8x256xf32>
    %c0_184 = arith.constant 0 : index
    %c16_185 = arith.constant 16 : index
    %498 = vector.load %arg15[%c0_184, %c16_185] : memref<8x290xbf16, #tpu.memory_space<vmem>>, vector<8x256xbf16>
    %499 = vector.broadcast %61 : vector<1x256xbf16> to vector<8x256xbf16>
    %500 = arith.mulf %498, %499 : vector<8x256xbf16>
    %501 = vector.extract_strided_slice %380 {offsets = [0, 0], sizes = [1, 1], strides = [1, 1]} : vector<4x1xf32> to vector<1x1xf32>
    %c0_186 = arith.constant 0 : index
    %c3_187 = arith.constant 3 : index
    %c0_188 = arith.constant 0 : index
    %c0_189 = arith.constant 0 : index
    %502 = vector.load %arg13[%c0_186, %c3_187, %c0_188, %c0_189] : memref<4x9x8x8xbf16, #tpu.memory_space<vmem>>, vector<1x1x8x8xbf16>
    %503 = vector.shape_cast %502 : vector<1x1x8x8xbf16> to vector<8x8xbf16>
    %504 = arith.extf %503 : vector<8x8xbf16> to vector<8x8xf32>
    %505 = vector.broadcast %501 : vector<1x1xf32> to vector<8x8xf32>
    %506 = arith.mulf %505, %504 : vector<8x8xf32>
    %507 = vector.extract_strided_slice %380 {offsets = [1, 0], sizes = [1, 1], strides = [1, 1]} : vector<4x1xf32> to vector<1x1xf32>
    %c1_190 = arith.constant 1 : index
    %c3_191 = arith.constant 3 : index
    %c0_192 = arith.constant 0 : index
    %c0_193 = arith.constant 0 : index
    %508 = vector.load %arg13[%c1_190, %c3_191, %c0_192, %c0_193] : memref<4x9x8x8xbf16, #tpu.memory_space<vmem>>, vector<1x1x8x8xbf16>
    %509 = vector.shape_cast %508 : vector<1x1x8x8xbf16> to vector<8x8xbf16>
    %510 = arith.extf %509 : vector<8x8xbf16> to vector<8x8xf32>
    %511 = vector.broadcast %507 : vector<1x1xf32> to vector<8x8xf32>
    %512 = arith.mulf %511, %510 : vector<8x8xf32>
    %513 = arith.addf %506, %512 : vector<8x8xf32>
    %514 = vector.extract_strided_slice %380 {offsets = [2, 0], sizes = [1, 1], strides = [1, 1]} : vector<4x1xf32> to vector<1x1xf32>
    %c2_194 = arith.constant 2 : index
    %c3_195 = arith.constant 3 : index
    %c0_196 = arith.constant 0 : index
    %c0_197 = arith.constant 0 : index
    %515 = vector.load %arg13[%c2_194, %c3_195, %c0_196, %c0_197] : memref<4x9x8x8xbf16, #tpu.memory_space<vmem>>, vector<1x1x8x8xbf16>
    %516 = vector.shape_cast %515 : vector<1x1x8x8xbf16> to vector<8x8xbf16>
    %517 = arith.extf %516 : vector<8x8xbf16> to vector<8x8xf32>
    %518 = vector.broadcast %514 : vector<1x1xf32> to vector<8x8xf32>
    %519 = arith.mulf %518, %517 : vector<8x8xf32>
    %520 = arith.addf %513, %519 : vector<8x8xf32>
    %521 = vector.extract_strided_slice %380 {offsets = [3, 0], sizes = [1, 1], strides = [1, 1]} : vector<4x1xf32> to vector<1x1xf32>
    %c3_198 = arith.constant 3 : index
    %c3_199 = arith.constant 3 : index
    %c0_200 = arith.constant 0 : index
    %c0_201 = arith.constant 0 : index
    %522 = vector.load %arg13[%c3_198, %c3_199, %c0_200, %c0_201] : memref<4x9x8x8xbf16, #tpu.memory_space<vmem>>, vector<1x1x8x8xbf16>
    %523 = vector.shape_cast %522 : vector<1x1x8x8xbf16> to vector<8x8xbf16>
    %524 = arith.extf %523 : vector<8x8xbf16> to vector<8x8xf32>
    %525 = vector.broadcast %521 : vector<1x1xf32> to vector<8x8xf32>
    %526 = arith.mulf %525, %524 : vector<8x8xf32>
    %527 = arith.addf %520, %526 : vector<8x8xf32>
    %528 = vector.extract_strided_slice %368 {offsets = [3, 0], sizes = [1, 1], strides = [1, 1]} : vector<9x1xf32> to vector<1x1xf32>
    %529 = vector.broadcast %528 : vector<1x1xf32> to vector<8x8xf32>
    %530 = arith.mulf %527, %529 : vector<8x8xf32>
    %531 = arith.truncf %530 : vector<8x8xf32> to vector<8x8xbf16>
    %cst_202 = arith.constant dense<0.000000e+00> : vector<8x256xf32>
    %532 = tpu.matmul %531, %500, %cst_202 {dimension_numbers = #tpu.dot_dimension_numbers<[1], [0], [0], [1], [0, 0, 1, 1], [], []>} : vector<8x8xbf16>, vector<8x256xbf16>, vector<8x256xf32> -> vector<8x256xf32>
    %533 = arith.addf %497, %532 : vector<8x256xf32>
    %c0_203 = arith.constant 0 : index
    %c17_204 = arith.constant 17 : index
    %534 = vector.load %arg15[%c0_203, %c17_204] : memref<8x290xbf16, #tpu.memory_space<vmem>>, vector<8x256xbf16>
    %535 = vector.extract_strided_slice %380 {offsets = [0, 0], sizes = [1, 1], strides = [1, 1]} : vector<4x1xf32> to vector<1x1xf32>
    %c0_205 = arith.constant 0 : index
    %c4_206 = arith.constant 4 : index
    %c0_207 = arith.constant 0 : index
    %c0_208 = arith.constant 0 : index
    %536 = vector.load %arg13[%c0_205, %c4_206, %c0_207, %c0_208] : memref<4x9x8x8xbf16, #tpu.memory_space<vmem>>, vector<1x1x8x8xbf16>
    %537 = vector.shape_cast %536 : vector<1x1x8x8xbf16> to vector<8x8xbf16>
    %538 = arith.extf %537 : vector<8x8xbf16> to vector<8x8xf32>
    %539 = vector.broadcast %535 : vector<1x1xf32> to vector<8x8xf32>
    %540 = arith.mulf %539, %538 : vector<8x8xf32>
    %541 = vector.extract_strided_slice %380 {offsets = [1, 0], sizes = [1, 1], strides = [1, 1]} : vector<4x1xf32> to vector<1x1xf32>
    %c1_209 = arith.constant 1 : index
    %c4_210 = arith.constant 4 : index
    %c0_211 = arith.constant 0 : index
    %c0_212 = arith.constant 0 : index
    %542 = vector.load %arg13[%c1_209, %c4_210, %c0_211, %c0_212] : memref<4x9x8x8xbf16, #tpu.memory_space<vmem>>, vector<1x1x8x8xbf16>
    %543 = vector.shape_cast %542 : vector<1x1x8x8xbf16> to vector<8x8xbf16>
    %544 = arith.extf %543 : vector<8x8xbf16> to vector<8x8xf32>
    %545 = vector.broadcast %541 : vector<1x1xf32> to vector<8x8xf32>
    %546 = arith.mulf %545, %544 : vector<8x8xf32>
    %547 = arith.addf %540, %546 : vector<8x8xf32>
    %548 = vector.extract_strided_slice %380 {offsets = [2, 0], sizes = [1, 1], strides = [1, 1]} : vector<4x1xf32> to vector<1x1xf32>
    %c2_213 = arith.constant 2 : index
    %c4_214 = arith.constant 4 : index
    %c0_215 = arith.constant 0 : index
    %c0_216 = arith.constant 0 : index
    %549 = vector.load %arg13[%c2_213, %c4_214, %c0_215, %c0_216] : memref<4x9x8x8xbf16, #tpu.memory_space<vmem>>, vector<1x1x8x8xbf16>
    %550 = vector.shape_cast %549 : vector<1x1x8x8xbf16> to vector<8x8xbf16>
    %551 = arith.extf %550 : vector<8x8xbf16> to vector<8x8xf32>
    %552 = vector.broadcast %548 : vector<1x1xf32> to vector<8x8xf32>
    %553 = arith.mulf %552, %551 : vector<8x8xf32>
    %554 = arith.addf %547, %553 : vector<8x8xf32>
    %555 = vector.extract_strided_slice %380 {offsets = [3, 0], sizes = [1, 1], strides = [1, 1]} : vector<4x1xf32> to vector<1x1xf32>
    %c3_217 = arith.constant 3 : index
    %c4_218 = arith.constant 4 : index
    %c0_219 = arith.constant 0 : index
    %c0_220 = arith.constant 0 : index
    %556 = vector.load %arg13[%c3_217, %c4_218, %c0_219, %c0_220] : memref<4x9x8x8xbf16, #tpu.memory_space<vmem>>, vector<1x1x8x8xbf16>
    %557 = vector.shape_cast %556 : vector<1x1x8x8xbf16> to vector<8x8xbf16>
    %558 = arith.extf %557 : vector<8x8xbf16> to vector<8x8xf32>
    %559 = vector.broadcast %555 : vector<1x1xf32> to vector<8x8xf32>
    %560 = arith.mulf %559, %558 : vector<8x8xf32>
    %561 = arith.addf %554, %560 : vector<8x8xf32>
    %562 = vector.extract_strided_slice %368 {offsets = [4, 0], sizes = [1, 1], strides = [1, 1]} : vector<9x1xf32> to vector<1x1xf32>
    %563 = vector.broadcast %562 : vector<1x1xf32> to vector<8x8xf32>
    %564 = arith.mulf %561, %563 : vector<8x8xf32>
    %565 = arith.truncf %564 : vector<8x8xf32> to vector<8x8xbf16>
    %cst_221 = arith.constant dense<0.000000e+00> : vector<8x256xf32>
    %566 = tpu.matmul %565, %534, %cst_221 {dimension_numbers = #tpu.dot_dimension_numbers<[1], [0], [0], [1], [0, 0, 1, 1], [], []>} : vector<8x8xbf16>, vector<8x256xbf16>, vector<8x256xf32> -> vector<8x256xf32>
    %567 = arith.addf %533, %566 : vector<8x256xf32>
    %c0_222 = arith.constant 0 : index
    %c18_223 = arith.constant 18 : index
    %568 = vector.load %arg15[%c0_222, %c18_223] : memref<8x290xbf16, #tpu.memory_space<vmem>>, vector<8x256xbf16>
    %569 = vector.broadcast %62 : vector<1x256xbf16> to vector<8x256xbf16>
    %570 = arith.mulf %568, %569 : vector<8x256xbf16>
    %571 = vector.extract_strided_slice %380 {offsets = [0, 0], sizes = [1, 1], strides = [1, 1]} : vector<4x1xf32> to vector<1x1xf32>
    %c0_224 = arith.constant 0 : index
    %c5 = arith.constant 5 : index
    %c0_225 = arith.constant 0 : index
    %c0_226 = arith.constant 0 : index
    %572 = vector.load %arg13[%c0_224, %c5, %c0_225, %c0_226] : memref<4x9x8x8xbf16, #tpu.memory_space<vmem>>, vector<1x1x8x8xbf16>
    %573 = vector.shape_cast %572 : vector<1x1x8x8xbf16> to vector<8x8xbf16>
    %574 = arith.extf %573 : vector<8x8xbf16> to vector<8x8xf32>
    %575 = vector.broadcast %571 : vector<1x1xf32> to vector<8x8xf32>
    %576 = arith.mulf %575, %574 : vector<8x8xf32>
    %577 = vector.extract_strided_slice %380 {offsets = [1, 0], sizes = [1, 1], strides = [1, 1]} : vector<4x1xf32> to vector<1x1xf32>
    %c1_227 = arith.constant 1 : index
    %c5_228 = arith.constant 5 : index
    %c0_229 = arith.constant 0 : index
    %c0_230 = arith.constant 0 : index
    %578 = vector.load %arg13[%c1_227, %c5_228, %c0_229, %c0_230] : memref<4x9x8x8xbf16, #tpu.memory_space<vmem>>, vector<1x1x8x8xbf16>
    %579 = vector.shape_cast %578 : vector<1x1x8x8xbf16> to vector<8x8xbf16>
    %580 = arith.extf %579 : vector<8x8xbf16> to vector<8x8xf32>
    %581 = vector.broadcast %577 : vector<1x1xf32> to vector<8x8xf32>
    %582 = arith.mulf %581, %580 : vector<8x8xf32>
    %583 = arith.addf %576, %582 : vector<8x8xf32>
    %584 = vector.extract_strided_slice %380 {offsets = [2, 0], sizes = [1, 1], strides = [1, 1]} : vector<4x1xf32> to vector<1x1xf32>
    %c2_231 = arith.constant 2 : index
    %c5_232 = arith.constant 5 : index
    %c0_233 = arith.constant 0 : index
    %c0_234 = arith.constant 0 : index
    %585 = vector.load %arg13[%c2_231, %c5_232, %c0_233, %c0_234] : memref<4x9x8x8xbf16, #tpu.memory_space<vmem>>, vector<1x1x8x8xbf16>
    %586 = vector.shape_cast %585 : vector<1x1x8x8xbf16> to vector<8x8xbf16>
    %587 = arith.extf %586 : vector<8x8xbf16> to vector<8x8xf32>
    %588 = vector.broadcast %584 : vector<1x1xf32> to vector<8x8xf32>
    %589 = arith.mulf %588, %587 : vector<8x8xf32>
    %590 = arith.addf %583, %589 : vector<8x8xf32>
    %591 = vector.extract_strided_slice %380 {offsets = [3, 0], sizes = [1, 1], strides = [1, 1]} : vector<4x1xf32> to vector<1x1xf32>
    %c3_235 = arith.constant 3 : index
    %c5_236 = arith.constant 5 : index
    %c0_237 = arith.constant 0 : index
    %c0_238 = arith.constant 0 : index
    %592 = vector.load %arg13[%c3_235, %c5_236, %c0_237, %c0_238] : memref<4x9x8x8xbf16, #tpu.memory_space<vmem>>, vector<1x1x8x8xbf16>
    %593 = vector.shape_cast %592 : vector<1x1x8x8xbf16> to vector<8x8xbf16>
    %594 = arith.extf %593 : vector<8x8xbf16> to vector<8x8xf32>
    %595 = vector.broadcast %591 : vector<1x1xf32> to vector<8x8xf32>
    %596 = arith.mulf %595, %594 : vector<8x8xf32>
    %597 = arith.addf %590, %596 : vector<8x8xf32>
    %598 = vector.extract_strided_slice %368 {offsets = [5, 0], sizes = [1, 1], strides = [1, 1]} : vector<9x1xf32> to vector<1x1xf32>
    %599 = vector.broadcast %598 : vector<1x1xf32> to vector<8x8xf32>
    %600 = arith.mulf %597, %599 : vector<8x8xf32>
    %601 = arith.truncf %600 : vector<8x8xf32> to vector<8x8xbf16>
    %cst_239 = arith.constant dense<0.000000e+00> : vector<8x256xf32>
    %602 = tpu.matmul %601, %570, %cst_239 {dimension_numbers = #tpu.dot_dimension_numbers<[1], [0], [0], [1], [0, 0, 1, 1], [], []>} : vector<8x8xbf16>, vector<8x256xbf16>, vector<8x256xf32> -> vector<8x256xf32>
    %603 = arith.addf %567, %602 : vector<8x256xf32>
    %c0_240 = arith.constant 0 : index
    %c32_241 = arith.constant 32 : index
    %604 = vector.load %arg15[%c0_240, %c32_241] : memref<8x290xbf16, #tpu.memory_space<vmem>>, vector<8x256xbf16>
    %605 = vector.broadcast %61 : vector<1x256xbf16> to vector<8x256xbf16>
    %606 = arith.mulf %604, %605 : vector<8x256xbf16>
    %607 = vector.extract_strided_slice %380 {offsets = [0, 0], sizes = [1, 1], strides = [1, 1]} : vector<4x1xf32> to vector<1x1xf32>
    %c0_242 = arith.constant 0 : index
    %c6 = arith.constant 6 : index
    %c0_243 = arith.constant 0 : index
    %c0_244 = arith.constant 0 : index
    %608 = vector.load %arg13[%c0_242, %c6, %c0_243, %c0_244] : memref<4x9x8x8xbf16, #tpu.memory_space<vmem>>, vector<1x1x8x8xbf16>
    %609 = vector.shape_cast %608 : vector<1x1x8x8xbf16> to vector<8x8xbf16>
    %610 = arith.extf %609 : vector<8x8xbf16> to vector<8x8xf32>
    %611 = vector.broadcast %607 : vector<1x1xf32> to vector<8x8xf32>
    %612 = arith.mulf %611, %610 : vector<8x8xf32>
    %613 = vector.extract_strided_slice %380 {offsets = [1, 0], sizes = [1, 1], strides = [1, 1]} : vector<4x1xf32> to vector<1x1xf32>
    %c1_245 = arith.constant 1 : index
    %c6_246 = arith.constant 6 : index
    %c0_247 = arith.constant 0 : index
    %c0_248 = arith.constant 0 : index
    %614 = vector.load %arg13[%c1_245, %c6_246, %c0_247, %c0_248] : memref<4x9x8x8xbf16, #tpu.memory_space<vmem>>, vector<1x1x8x8xbf16>
    %615 = vector.shape_cast %614 : vector<1x1x8x8xbf16> to vector<8x8xbf16>
    %616 = arith.extf %615 : vector<8x8xbf16> to vector<8x8xf32>
    %617 = vector.broadcast %613 : vector<1x1xf32> to vector<8x8xf32>
    %618 = arith.mulf %617, %616 : vector<8x8xf32>
    %619 = arith.addf %612, %618 : vector<8x8xf32>
    %620 = vector.extract_strided_slice %380 {offsets = [2, 0], sizes = [1, 1], strides = [1, 1]} : vector<4x1xf32> to vector<1x1xf32>
    %c2_249 = arith.constant 2 : index
    %c6_250 = arith.constant 6 : index
    %c0_251 = arith.constant 0 : index
    %c0_252 = arith.constant 0 : index
    %621 = vector.load %arg13[%c2_249, %c6_250, %c0_251, %c0_252] : memref<4x9x8x8xbf16, #tpu.memory_space<vmem>>, vector<1x1x8x8xbf16>
    %622 = vector.shape_cast %621 : vector<1x1x8x8xbf16> to vector<8x8xbf16>
    %623 = arith.extf %622 : vector<8x8xbf16> to vector<8x8xf32>
    %624 = vector.broadcast %620 : vector<1x1xf32> to vector<8x8xf32>
    %625 = arith.mulf %624, %623 : vector<8x8xf32>
    %626 = arith.addf %619, %625 : vector<8x8xf32>
    %627 = vector.extract_strided_slice %380 {offsets = [3, 0], sizes = [1, 1], strides = [1, 1]} : vector<4x1xf32> to vector<1x1xf32>
    %c3_253 = arith.constant 3 : index
    %c6_254 = arith.constant 6 : index
    %c0_255 = arith.constant 0 : index
    %c0_256 = arith.constant 0 : index
    %628 = vector.load %arg13[%c3_253, %c6_254, %c0_255, %c0_256] : memref<4x9x8x8xbf16, #tpu.memory_space<vmem>>, vector<1x1x8x8xbf16>
    %629 = vector.shape_cast %628 : vector<1x1x8x8xbf16> to vector<8x8xbf16>
    %630 = arith.extf %629 : vector<8x8xbf16> to vector<8x8xf32>
    %631 = vector.broadcast %627 : vector<1x1xf32> to vector<8x8xf32>
    %632 = arith.mulf %631, %630 : vector<8x8xf32>
    %633 = arith.addf %626, %632 : vector<8x8xf32>
    %634 = vector.extract_strided_slice %368 {offsets = [6, 0], sizes = [1, 1], strides = [1, 1]} : vector<9x1xf32> to vector<1x1xf32>
    %635 = vector.broadcast %634 : vector<1x1xf32> to vector<8x8xf32>
    %636 = arith.mulf %633, %635 : vector<8x8xf32>
    %637 = arith.truncf %636 : vector<8x8xf32> to vector<8x8xbf16>
    %cst_257 = arith.constant dense<0.000000e+00> : vector<8x256xf32>
    %638 = tpu.matmul %637, %606, %cst_257 {dimension_numbers = #tpu.dot_dimension_numbers<[1], [0], [0], [1], [0, 0, 1, 1], [], []>} : vector<8x8xbf16>, vector<8x256xbf16>, vector<8x256xf32> -> vector<8x256xf32>
    %639 = arith.addf %603, %638 : vector<8x256xf32>
    %c0_258 = arith.constant 0 : index
    %c33_259 = arith.constant 33 : index
    %640 = vector.load %arg15[%c0_258, %c33_259] : memref<8x290xbf16, #tpu.memory_space<vmem>>, vector<8x256xbf16>
    %641 = vector.extract_strided_slice %380 {offsets = [0, 0], sizes = [1, 1], strides = [1, 1]} : vector<4x1xf32> to vector<1x1xf32>
    %c0_260 = arith.constant 0 : index
    %c7 = arith.constant 7 : index
    %c0_261 = arith.constant 0 : index
    %c0_262 = arith.constant 0 : index
    %642 = vector.load %arg13[%c0_260, %c7, %c0_261, %c0_262] : memref<4x9x8x8xbf16, #tpu.memory_space<vmem>>, vector<1x1x8x8xbf16>
    %643 = vector.shape_cast %642 : vector<1x1x8x8xbf16> to vector<8x8xbf16>
    %644 = arith.extf %643 : vector<8x8xbf16> to vector<8x8xf32>
    %645 = vector.broadcast %641 : vector<1x1xf32> to vector<8x8xf32>
    %646 = arith.mulf %645, %644 : vector<8x8xf32>
    %647 = vector.extract_strided_slice %380 {offsets = [1, 0], sizes = [1, 1], strides = [1, 1]} : vector<4x1xf32> to vector<1x1xf32>
    %c1_263 = arith.constant 1 : index
    %c7_264 = arith.constant 7 : index
    %c0_265 = arith.constant 0 : index
    %c0_266 = arith.constant 0 : index
    %648 = vector.load %arg13[%c1_263, %c7_264, %c0_265, %c0_266] : memref<4x9x8x8xbf16, #tpu.memory_space<vmem>>, vector<1x1x8x8xbf16>
    %649 = vector.shape_cast %648 : vector<1x1x8x8xbf16> to vector<8x8xbf16>
    %650 = arith.extf %649 : vector<8x8xbf16> to vector<8x8xf32>
    %651 = vector.broadcast %647 : vector<1x1xf32> to vector<8x8xf32>
    %652 = arith.mulf %651, %650 : vector<8x8xf32>
    %653 = arith.addf %646, %652 : vector<8x8xf32>
    %654 = vector.extract_strided_slice %380 {offsets = [2, 0], sizes = [1, 1], strides = [1, 1]} : vector<4x1xf32> to vector<1x1xf32>
    %c2_267 = arith.constant 2 : index
    %c7_268 = arith.constant 7 : index
    %c0_269 = arith.constant 0 : index
    %c0_270 = arith.constant 0 : index
    %655 = vector.load %arg13[%c2_267, %c7_268, %c0_269, %c0_270] : memref<4x9x8x8xbf16, #tpu.memory_space<vmem>>, vector<1x1x8x8xbf16>
    %656 = vector.shape_cast %655 : vector<1x1x8x8xbf16> to vector<8x8xbf16>
    %657 = arith.extf %656 : vector<8x8xbf16> to vector<8x8xf32>
    %658 = vector.broadcast %654 : vector<1x1xf32> to vector<8x8xf32>
    %659 = arith.mulf %658, %657 : vector<8x8xf32>
    %660 = arith.addf %653, %659 : vector<8x8xf32>
    %661 = vector.extract_strided_slice %380 {offsets = [3, 0], sizes = [1, 1], strides = [1, 1]} : vector<4x1xf32> to vector<1x1xf32>
    %c3_271 = arith.constant 3 : index
    %c7_272 = arith.constant 7 : index
    %c0_273 = arith.constant 0 : index
    %c0_274 = arith.constant 0 : index
    %662 = vector.load %arg13[%c3_271, %c7_272, %c0_273, %c0_274] : memref<4x9x8x8xbf16, #tpu.memory_space<vmem>>, vector<1x1x8x8xbf16>
    %663 = vector.shape_cast %662 : vector<1x1x8x8xbf16> to vector<8x8xbf16>
    %664 = arith.extf %663 : vector<8x8xbf16> to vector<8x8xf32>
    %665 = vector.broadcast %661 : vector<1x1xf32> to vector<8x8xf32>
    %666 = arith.mulf %665, %664 : vector<8x8xf32>
    %667 = arith.addf %660, %666 : vector<8x8xf32>
    %668 = vector.extract_strided_slice %368 {offsets = [7, 0], sizes = [1, 1], strides = [1, 1]} : vector<9x1xf32> to vector<1x1xf32>
    %669 = vector.broadcast %668 : vector<1x1xf32> to vector<8x8xf32>
    %670 = arith.mulf %667, %669 : vector<8x8xf32>
    %671 = arith.truncf %670 : vector<8x8xf32> to vector<8x8xbf16>
    %cst_275 = arith.constant dense<0.000000e+00> : vector<8x256xf32>
    %672 = tpu.matmul %671, %640, %cst_275 {dimension_numbers = #tpu.dot_dimension_numbers<[1], [0], [0], [1], [0, 0, 1, 1], [], []>} : vector<8x8xbf16>, vector<8x256xbf16>, vector<8x256xf32> -> vector<8x256xf32>
    %673 = arith.addf %639, %672 : vector<8x256xf32>
    %c0_276 = arith.constant 0 : index
    %c34_277 = arith.constant 34 : index
    %674 = vector.load %arg15[%c0_276, %c34_277] : memref<8x290xbf16, #tpu.memory_space<vmem>>, vector<8x256xbf16>
    %675 = vector.broadcast %62 : vector<1x256xbf16> to vector<8x256xbf16>
    %676 = arith.mulf %674, %675 : vector<8x256xbf16>
    %677 = vector.extract_strided_slice %380 {offsets = [0, 0], sizes = [1, 1], strides = [1, 1]} : vector<4x1xf32> to vector<1x1xf32>
    %c0_278 = arith.constant 0 : index
    %c8 = arith.constant 8 : index
    %c0_279 = arith.constant 0 : index
    %c0_280 = arith.constant 0 : index
    %678 = vector.load %arg13[%c0_278, %c8, %c0_279, %c0_280] : memref<4x9x8x8xbf16, #tpu.memory_space<vmem>>, vector<1x1x8x8xbf16>
    %679 = vector.shape_cast %678 : vector<1x1x8x8xbf16> to vector<8x8xbf16>
    %680 = arith.extf %679 : vector<8x8xbf16> to vector<8x8xf32>
    %681 = vector.broadcast %677 : vector<1x1xf32> to vector<8x8xf32>
    %682 = arith.mulf %681, %680 : vector<8x8xf32>
    %683 = vector.extract_strided_slice %380 {offsets = [1, 0], sizes = [1, 1], strides = [1, 1]} : vector<4x1xf32> to vector<1x1xf32>
    %c1_281 = arith.constant 1 : index
    %c8_282 = arith.constant 8 : index
    %c0_283 = arith.constant 0 : index
    %c0_284 = arith.constant 0 : index
    %684 = vector.load %arg13[%c1_281, %c8_282, %c0_283, %c0_284] : memref<4x9x8x8xbf16, #tpu.memory_space<vmem>>, vector<1x1x8x8xbf16>
    %685 = vector.shape_cast %684 : vector<1x1x8x8xbf16> to vector<8x8xbf16>
    %686 = arith.extf %685 : vector<8x8xbf16> to vector<8x8xf32>
    %687 = vector.broadcast %683 : vector<1x1xf32> to vector<8x8xf32>
    %688 = arith.mulf %687, %686 : vector<8x8xf32>
    %689 = arith.addf %682, %688 : vector<8x8xf32>
    %690 = vector.extract_strided_slice %380 {offsets = [2, 0], sizes = [1, 1], strides = [1, 1]} : vector<4x1xf32> to vector<1x1xf32>
    %c2_285 = arith.constant 2 : index
    %c8_286 = arith.constant 8 : index
    %c0_287 = arith.constant 0 : index
    %c0_288 = arith.constant 0 : index
    %691 = vector.load %arg13[%c2_285, %c8_286, %c0_287, %c0_288] : memref<4x9x8x8xbf16, #tpu.memory_space<vmem>>, vector<1x1x8x8xbf16>
    %692 = vector.shape_cast %691 : vector<1x1x8x8xbf16> to vector<8x8xbf16>
    %693 = arith.extf %692 : vector<8x8xbf16> to vector<8x8xf32>
    %694 = vector.broadcast %690 : vector<1x1xf32> to vector<8x8xf32>
    %695 = arith.mulf %694, %693 : vector<8x8xf32>
    %696 = arith.addf %689, %695 : vector<8x8xf32>
    %697 = vector.extract_strided_slice %380 {offsets = [3, 0], sizes = [1, 1], strides = [1, 1]} : vector<4x1xf32> to vector<1x1xf32>
    %c3_289 = arith.constant 3 : index
    %c8_290 = arith.constant 8 : index
    %c0_291 = arith.constant 0 : index
    %c0_292 = arith.constant 0 : index
    %698 = vector.load %arg13[%c3_289, %c8_290, %c0_291, %c0_292] : memref<4x9x8x8xbf16, #tpu.memory_space<vmem>>, vector<1x1x8x8xbf16>
    %699 = vector.shape_cast %698 : vector<1x1x8x8xbf16> to vector<8x8xbf16>
    %700 = arith.extf %699 : vector<8x8xbf16> to vector<8x8xf32>
    %701 = vector.broadcast %697 : vector<1x1xf32> to vector<8x8xf32>
    %702 = arith.mulf %701, %700 : vector<8x8xf32>
    %703 = arith.addf %696, %702 : vector<8x8xf32>
    %704 = vector.extract_strided_slice %368 {offsets = [8, 0], sizes = [1, 1], strides = [1, 1]} : vector<9x1xf32> to vector<1x1xf32>
    %705 = vector.broadcast %704 : vector<1x1xf32> to vector<8x8xf32>
    %706 = arith.mulf %703, %705 : vector<8x8xf32>
    %707 = arith.truncf %706 : vector<8x8xf32> to vector<8x8xbf16>
    %cst_293 = arith.constant dense<0.000000e+00> : vector<8x256xf32>
    %708 = tpu.matmul %707, %676, %cst_293 {dimension_numbers = #tpu.dot_dimension_numbers<[1], [0], [0], [1], [0, 0, 1, 1], [], []>} : vector<8x8xbf16>, vector<8x256xbf16>, vector<8x256xf32> -> vector<8x256xf32>
    %709 = arith.addf %673, %708 : vector<8x256xf32>
    %710 = vector.broadcast %362 : vector<8x1xf32> to vector<8x256xf32>
    %711 = arith.mulf %709, %710 : vector<8x256xf32>
    %cst_294 = arith.constant 0.000000e+00 : f32
    %712 = vector.broadcast %cst_294 : f32 to vector<16x256xf32>
    %c0_295 = arith.constant 0 : index
    %c0_296 = arith.constant 0 : index
    %713 = vector.load %arg4[%c0_295, %c0_296] : memref<16x24xbf16, #tpu.memory_space<vmem>>, vector<16x8xbf16>
    %714 = arith.truncf %85 : vector<8x256xf32> to vector<8x256xbf16>
    %cst_297 = arith.constant dense<0.000000e+00> : vector<16x256xf32>
    %715 = tpu.matmul %713, %714, %cst_297 {dimension_numbers = #tpu.dot_dimension_numbers<[1], [0], [0], [1], [0, 0, 1, 1], [], []>} : vector<16x8xbf16>, vector<8x256xbf16>, vector<16x256xf32> -> vector<16x256xf32>
    %716 = arith.addf %712, %715 : vector<16x256xf32>
    %c0_298 = arith.constant 0 : index
    %c8_299 = arith.constant 8 : index
    %717 = vector.load %arg4[%c0_298, %c8_299] : memref<16x24xbf16, #tpu.memory_space<vmem>>, vector<16x8xbf16>
    %718 = arith.truncf %86 : vector<8x256xf32> to vector<8x256xbf16>
    %cst_300 = arith.constant dense<0.000000e+00> : vector<16x256xf32>
    %719 = tpu.matmul %717, %718, %cst_300 {dimension_numbers = #tpu.dot_dimension_numbers<[1], [0], [0], [1], [0, 0, 1, 1], [], []>} : vector<16x8xbf16>, vector<8x256xbf16>, vector<16x256xf32> -> vector<16x256xf32>
    %720 = arith.addf %716, %719 : vector<16x256xf32>
    %c0_301 = arith.constant 0 : index
    %c16_302 = arith.constant 16 : index
    %721 = vector.load %arg4[%c0_301, %c16_302] : memref<16x24xbf16, #tpu.memory_space<vmem>>, vector<16x8xbf16>
    %722 = arith.truncf %711 : vector<8x256xf32> to vector<8x256xbf16>
    %cst_303 = arith.constant dense<0.000000e+00> : vector<16x256xf32>
    %723 = tpu.matmul %721, %722, %cst_303 {dimension_numbers = #tpu.dot_dimension_numbers<[1], [0], [0], [1], [0, 0, 1, 1], [], []>} : vector<16x8xbf16>, vector<8x256xbf16>, vector<16x256xf32> -> vector<16x256xf32>
    %724 = arith.addf %720, %723 : vector<16x256xf32>
    %c0_304 = arith.constant 0 : index
    %c0_305 = arith.constant 0 : index
    %725 = vector.load %arg5[%c0_304, %c0_305] : memref<16x1xf32, #tpu.memory_space<vmem>>, vector<16x1xf32>
    %726 = vector.broadcast %725 : vector<16x1xf32> to vector<16x256xf32>
    %727 = arith.addf %724, %726 : vector<16x256xf32>
    %728 = arith.negf %727 : vector<16x256xf32>
    %729 = math.exp %728 : vector<16x256xf32>
    %cst_306 = arith.constant 1.000000e+00 : f32
    %730 = vector.broadcast %cst_306 : f32 to vector<16x256xf32>
    %731 = arith.addf %730, %729 : vector<16x256xf32>
    %732 = arith.divf %730, %731 : vector<16x256xf32>
    %733 = arith.mulf %727, %732 : vector<16x256xf32>
    %c0_307 = arith.constant 0 : index
    %c0_308 = arith.constant 0 : index
    %c0_309 = arith.constant 0 : index
    %734 = vector.load %arg14[%c0_307, %c0_308, %c0_309] : memref<1x16x256xf32, #tpu.memory_space<vmem>>, vector<1x16x256xf32>
    %735 = vector.shape_cast %734 : vector<1x16x256xf32> to vector<16x256xf32>
    %736 = vector.shape_cast %733 : vector<16x256xf32> to vector<1x16x256xf32>
    tpu.vector_store %arg14[%c0_307, %c0_308, %c0_309], %736 {strides = array<i32>} : memref<1x16x256xf32, #tpu.memory_space<vmem>>, vector<1x16x256xf32>,
    return
  }
  func.func @transform_0(%arg0: i32) -> (i32, i32, i32) {
    %c0_i32 = arith.constant 0 : i32
    %c0_i32_0 = arith.constant 0 : i32
    %c0_i32_1 = arith.constant 0 : i32
    return %arg0, %c0_i32, %c0_i32_0 : i32, i32, i32
  }
  func.func @transform_1(%arg0: i32) -> (i32, i32) {
    %c0_i32 = arith.constant 0 : i32
    %c0_i32_0 = arith.constant 0 : i32
    %c0_i32_1 = arith.constant 0 : i32
    return %c0_i32, %c0_i32_0 : i32, i32
  }
  func.func @transform_2(%arg0: i32) -> (i32, i32) {
    %c0_i32 = arith.constant 0 : i32
    %c0_i32_0 = arith.constant 0 : i32
    %c0_i32_1 = arith.constant 0 : i32
    return %c0_i32, %c0_i32_0 : i32, i32
  }
  func.func @transform_3(%arg0: i32) -> (i32, i32) {
    %c0_i32 = arith.constant 0 : i32
    %c0_i32_0 = arith.constant 0 : i32
    %c0_i32_1 = arith.constant 0 : i32
    return %c0_i32, %c0_i32_0 : i32, i32
  }
  func.func @transform_4(%arg0: i32) -> (i32, i32) {
    %c0_i32 = arith.constant 0 : i32
    %c0_i32_0 = arith.constant 0 : i32
    %c0_i32_1 = arith.constant 0 : i32
    return %c0_i32, %c0_i32_0 : i32, i32
  }
  func.func @transform_5(%arg0: i32) -> (i32, i32, i32) {
    %c0_i32 = arith.constant 0 : i32
    %c0_i32_0 = arith.constant 0 : i32
    %c0_i32_1 = arith.constant 0 : i32
    %c0_i32_2 = arith.constant 0 : i32
    return %c0_i32, %c0_i32_0, %c0_i32_1 : i32, i32, i32
  }
  func.func @transform_6(%arg0: i32) -> (i32, i32) {
    %c0_i32 = arith.constant 0 : i32
    %c0_i32_0 = arith.constant 0 : i32
    %c0_i32_1 = arith.constant 0 : i32
    return %c0_i32, %c0_i32_0 : i32, i32
  }
  func.func @transform_7(%arg0: i32) -> (i32, i32) {
    %c0_i32 = arith.constant 0 : i32
    %c0_i32_0 = arith.constant 0 : i32
    %c0_i32_1 = arith.constant 0 : i32
    return %c0_i32, %c0_i32_0 : i32, i32
  }
  func.func @transform_8(%arg0: i32) -> (i32, i32) {
    %c0_i32 = arith.constant 0 : i32
    %c0_i32_0 = arith.constant 0 : i32
    %c0_i32_1 = arith.constant 0 : i32
    return %c0_i32, %c0_i32_0 : i32, i32
  }
  func.func @transform_9(%arg0: i32) -> (i32, i32) {
    %c0_i32 = arith.constant 0 : i32
    %c0_i32_0 = arith.constant 0 : i32
    %c0_i32_1 = arith.constant 0 : i32
    return %c0_i32, %c0_i32_0 : i32, i32
  }
  func.func @transform_10(%arg0: i32) -> (i32, i32) {
    %c0_i32 = arith.constant 0 : i32
    %c0_i32_0 = arith.constant 0 : i32
    %c0_i32_1 = arith.constant 0 : i32
    return %c0_i32, %c0_i32_0 : i32, i32
  }
  func.func @transform_11(%arg0: i32) -> (i32, i32) {
    %c0_i32 = arith.constant 0 : i32
    %c0_i32_0 = arith.constant 0 : i32
    %c0_i32_1 = arith.constant 0 : i32
    return %c0_i32, %c0_i32_0 : i32, i32
  }
  func.func @transform_12(%arg0: i32) -> (i32, i32, i32, i32) {
    %c0_i32 = arith.constant 0 : i32
    %c0_i32_0 = arith.constant 0 : i32
    %c0_i32_1 = arith.constant 0 : i32
    %c0_i32_2 = arith.constant 0 : i32
    %c0_i32_3 = arith.constant 0 : i32
    return %c0_i32, %c0_i32_0, %c0_i32_1, %c0_i32_2 : i32, i32, i32, i32
  }
  func.func @transform_13(%arg0: i32) -> (i32, i32, i32) {
    %c0_i32 = arith.constant 0 : i32
    %c0_i32_0 = arith.constant 0 : i32
    %c0_i32_1 = arith.constant 0 : i32
    return %arg0, %c0_i32, %c0_i32_0 : i32, i32, i32
  }
}

</mosaic_0001>

<bundles_post_ra>
// kernel: _lambda_.1
= control target key start
LH: loop header
LB: loop body
LE: loop exit
PB: predicated region body
PF: predicated region fallthrough
CT: control target
= control target key end

     0   :  { %s4261_s25 = smov 0   ;;  %s5231_s0 = inlined_call_operand.vmem [shape: f32[2,16,256], index: 0, kind: input, shape index: {}]   ;;  %s5232_s1 = inlined_call_operand.vmem [shape: bf16[16,16], index: 1, kind: input, shape index: {}]   ;;  %s5233_s2 = inlined_call_operand.vmem [shape: f32[16,1], index: 2, kind: input, shape index: {}]   ;;  %s5234_s3 = inlined_call_operand.vmem [shape: bf16[16,24], index: 3, kind: input, shape index: {}]   ;;  %s5235_s4 = inlined_call_operand.vmem [shape: f32[16,1], index: 4, kind: input, shape index: {}]   ;;  %s5236_s5 = inlined_call_operand.vmem [shape: bf16[9,4,8], index: 5, kind: input, shape index: {}]   ;;  %s5237_s6 = inlined_call_operand.vmem [shape: f32[4,1], index: 6, kind: input, shape index: {}]   ;;  %s5238_s7 = inlined_call_operand.vmem [shape: f32[4,25], index: 7, kind: input, shape index: {}]   ;;  %s5239_s8 = inlined_call_operand.vmem [shape: f32[4,1], index: 8, kind: input, shape index: {}]   ;;  %s5240_s9 = inlined_call_operand.vmem [shape: f32[16,8], index: 9, kind: input, shape index: {}]   ;;  %s5241_s10 = inlined_call_operand.vmem [shape: f32[29,16], index: 10, kind: input, shape index: {}]   ;;  %s5242_s11 = inlined_call_operand.vmem [shape: f32[29,1], index: 11, kind: input, shape index: {}]   ;;  %s5243_s12 = inlined_call_operand.vmem [shape: bf16[4,9,8,8], index: 12, kind: input, shape index: {}]   ;;  %s5244_s13 = inlined_call_operand.vmem [shape: f32[2,16,256], index: 13, kind: output, shape index: {}]  }
   0x1 LB: > { %s3661_s26 = sadd.s32 4294967295, %s4115_s25   ;;  %p3665_p0 = scmp.ge.s32.totalorder %s4115_s25, 1  ;;  %s4115_s25 = sphi %s4261_s25, %s23_s25  }
   0x2   : > { %p387_p1 = scmp.lt.s32.totalorder %s4115_s25, 3 }
   0x4   : > { %p388_p2 = pnand %p3665_p0, %p387_p1 }
   0x6   : > { %391 = sbr.rel (%p388_p2) target bundleno = 2772 (0xad4), region = 72 }
   0xd   : > { %p431_p3 = scmp.lt.s32.totalorder %s3661_s26, 1  ;;  %v5253_v0 = vmov 0   ;;  %v538_v1 = vld [vmem:[%s5233_s2 + $0x8] sm:$0xff]  ;;  %v4037_v8 = vld [vmem:[%s5232_s1] sm:$0xff]   ;;  %vm554_vm0 = vcmask 130048   ;;  %v442_v9 = vlaneseq  ;;  %v4118_v16 = vmov 0.0  }
   0xe   : > { %590 = vmatprep.mubr.bf16.mxu1 %v5253_v0  ;;  %4009 = vset.pattern.permute.xlu0 %v5253_v0  ;;  %s4119_s18 = smov 2   ;;  %s4120_s19 = smov 16   ;;  %vm521_vm5 = vcmask 134144   ;;  %vm523_vm6 = vcmask 273544   ;;  %vm643_vm7 = vcmask 1043592   ;;  %vm644_vm8 = vcmask 1047556  }
   0xf   : > { %s5340_s26 = smov (!%p431_p3, %s3661_s26), 1  ;;  %546 = vperm.xlu0 %4009, %v538_v1   ;;  %1079 = vmatprep.mubr.bf16.mxu0 %v5253_v0  ;;  %v443_v10 = vand.u32 127, %v442_v9  ;;  %s4121_s20 = smov 32   ;;  %522 = vst.msk [vmem:[#allocation2] sm:$0xf] %vm521_vm5, %v5253_v0  ;;  %vm639_vm9 = vcmask 138240   ;;  %vm645_vm10 = vmor %vm644_vm8, %vm643_vm7 }
  0x10   : > { %4010 = vset.pattern.permute.xlu1 %v5253_v0  ;;  %s5245_s29 = sshll.u32 %s5340_s26, 5  ;;  %524 = vst.msk [vmem:[#allocation2 + $0x8] sm:$0xf] %vm523_vm6, %v5253_v0  ;;  %s4122_s21 = smov 17   ;;  %vm798_vm11 = vcmask 15360   ;;  %vm1015_vm12 = vcmask 146432  }
  0x11   : > { %s435_s15 = scalar_lea.vmem %s5231_s0, %s5245_s29  ;;  %v444_v11 = vadd.s32 128, %v443_v10  ;;  %v4290_v12 = vand.u32 15, %v443_v10  ;;  %s4123_s22 = smov 18   ;;  %vm1093_vm13 = vcmask 261120   ;;  %vm1232_vm14 = vcmask 277504  }
  0x12   : > { %v530_v2 = vld [vmem:[%s435_s15 + $0x8] sm:$0xff]  ;;  %v532_v3 = vld [vmem:[%s435_s15 + $0x18] sm:$0xff]  ;;  %v529_v4 = vld [vmem:[%s435_s15] sm:$0xff]  ;;  %s4124_s23 = smov 34   ;;  %s4125_s24 = smov 127   ;;  %vm680_vm15 = vcmask 1039360  }
  0x13   : > { %v536_v5 = vpack.c.bf16 %v532_v3, %v530_v2  ;;  %v531_v6 = vld [vmem:[%s435_s15 + $0x10] sm:$0xff]  ;;  %v4292_v13 = vand.u32 15, %v444_v11  ;;  %v493_v14 = vadd.s32 1, %v4290_v12  ;;  %v481_v21 = vadd.s32 4294967295, %v4290_v12  ;;  %s5274_s27 = smov 111   ;;  %s5278_s28 = smov 126  }
  0x14   : > { %v535_v7 = vpack.c.bf16 %v531_v6, %v529_v4  ;;  %s5276_s30 = smov 112   ;;  %s5246_s14 = smov 96   ;;  %vm1035_vm6 = vcmask 900096   ;;  %vm1113_vm7 = vcmask 785408  }
  0x15   : > { %558 = vmatprep.subr.bf16.mxu1 %v536_v5  ;;  %v494_v15 = vadd.s32 1, %v4292_v13  ;;  %vm497_vm1 = vcmp.lt.s32.totalorder %v493_v14, 16  ;;  %v482_v22 = vadd.s32 4294967295, %v4292_v13  ;;  %vm483_vm3 = vcmp.ge.s32.totalorder %v481_v21, 0  ;;  %s5272_s15 = smov 110   ;;  %s5248_s16 = smov 95  }
  0x16   : > { %559 = vmatpush1.bf16.msra.mxu1 %v535_v7  ;;  %v3674_v17 = vsel %vm497_vm1, 1.0, %v4118_v16  ;;  %v3672_v23 = vsel %vm483_vm3, 1.0, %v4118_v16  ;;  %s5270_s17 = smov 94   ;;  %vm687_vm1 = vcmask 1043456   ;;  %vm818_vm3 = vcmask 1031168   ;;  %s4150_s29 = smov 20  }
  0x17   : > { %vm498_vm2 = vcmp.lt.s32.totalorder %v494_v15, 16  ;;  %vm484_vm4 = vcmp.ge.s32.totalorder %v482_v22, 0 }
  0x18   : > { %v3675_v18 = vsel %vm498_vm2, 1.0, %v4118_v16  ;;  %v3673_v24 = vsel %vm484_vm4, 1.0, %v4118_v16  ;;  %vm5251_vm2 = vcmask 64512   ;;  %vm896_vm4 = vcmask 916480  }
  0x19   : > { %3679 = vmatmul.mubr.msk.bf16.vlgmr.msra.gmra.mrb[0].mxu1 %vm554_vm0, %v4037_v8  ;;  %v3830_v19 = vpack.c.bf16 %v3675_v18, %v3674_v17  ;;  %v4298_v20 = vcombine.low %v3674_v17, %v3675_v18  ;;  %v4304_v25 = vpack.c.bf16 %v3673_v24, %v3672_v23  ;;  %v4306_v26 = vcombine.low %v3672_v23, %v3673_v24 }
  0x1a   : > { %726 = vmatprep.mubr.bf16.mxu1 %v5253_v0 }
  0x1b   : > { %795 = vrot.lane.b32.xlu1 %v3830_v19, %s4119_s18  ;;  %5280 = vst [vmem:[#allocation4_spill] sm:$0xff] %v4304_v25  ;;  %s4137_s18 = smov 3  }
  0x1f   : > { %873 = vrot.lane.b32.xlu1 %v4304_v25, %s4120_s19 }
  0x23   : > { %1090 = vrot.lane.b32.xlu1 %v4304_v25, %s4121_s20 }
  0x8d   : > { %v796_v48 = vpop.permute.xlu1 %795 }
  0x8e   : > { %v547_v28 = vpop.permute.xlu0 %546  ;;  %v4332_v51 = vrot.slane %v796_v48, 4 }
  0x90   : > { %5283 = vst [vmem:[#allocation7_spill] sm:$0xff] %v4332_v51  ;;  %v4351_v59 = vsel %vm798_vm11, %v4332_v51, %v796_v48  ;;  %v4140_v48 = vmov 7   ;;  %vm5250_vm11 = vcmask 769024  }
  0x91   : > { %v874_v50 = vpop.permute.xlu1 %873  ;;  %5285 = vst [vmem:[#allocation9_spill] sm:$0xff] %v4351_v59 }
  0x92   : > { %v4334_v52 = vrot.slane %v874_v50, 4 }
  0x94   : > { %5284 = vst [vmem:[#allocation8_spill] sm:$0xff] %v4334_v52  ;;  %v4361_v2 = vsel %vm554_vm0, %v4334_v52, %v874_v50 }
  0x95   : > { %5286 = vst [vmem:[#allocation10_spill] sm:$0xff] %v4361_v2  ;;  %v1091_v3 = vpop.permute.xlu1 %1090 }
  0x96   : > { %v4369_v7 = vrot.slane %v1091_v3, 4 }
  0x98   : > { %5288 = vst [vmem:[#allocation12_spill] sm:$0xff] %v4369_v7  ;;  %v4388_v22 = vsel %vm1093_vm13, %v4369_v7, %v1091_v3 }
  0x99   : > { %5290 = vst [vmem:[#allocation14_spill] sm:$0xff] %v4388_v22 }
  0xec   : > { %v4315_v27 = vpop.f32.mrb[0].mxu1 }
  0xed   : > { %5281 = vst [vmem:[#allocation5_spill] sm:$0xff] %v4315_v27  ;;  %v4317_v29 = vpop.f32.mrb[1].mxu1 }
  0xee   : > { %5282 = vst [vmem:[#allocation6_spill] sm:$0xff] %v4317_v29  ;;  %v596_v30 = vpop.f32.mrb[2].mxu1 }
  0xef   : > { %v597_v31 = vadd.f32 %v596_v30, %v547_v28  ;;  %v598_v32 = vpop.f32.mrb[3].mxu1 }
  0xf0   : > { %v599_v33 = vadd.f32 %v598_v32, %v547_v28 }
  0xf1   : > { %v3682_v34 = vmul.f32 -1.442695, %v597_v31 }
  0xf2   : > { %v3683_v35 = vmul.f32 -1.442695, %v599_v33 }
  0xf3   : > { %4045 = vpow2.f32 %v3682_v34 }
  0xf4   : > { %4047 = vpow2.f32 %v3683_v35 }
  0xfd   : > { %v4046_v36 = vpop.eup %4045 }
  0xfe   : > { %v4048_v37 = vpop.eup %4047  ;;  %v615_v38 = vadd.f32 1.0, %v4046_v36 }
  0xff   : > { %v616_v39 = vadd.f32 1.0, %v4048_v37 }
 0x100   : > { %4049 = vrcp.f32 %v615_v38 }
 0x101   : > { %4051 = vrcp.f32 %v616_v39  ;;  %v1307_v39 = vld [vmem:[%s5237_s6] sm:$0xf] }
 0x10a   : > { %v4050_v40 = vpop.eup %4049 }
 0x10b   : > { %v4052_v41 = vpop.eup %4051  ;;  %v4319_v42 = vmul.f32 %v4050_v40, %v597_v31  ;;  %v4418_v40 = vld [vmem:[%s5238_s7] sm:$0xf] }
 0x10c   : > { %v4321_v43 = vmul.f32 %v4052_v41, %v599_v33  ;;  %v4133_v41 = vmov 2  }
 0x10d   : > { %4012 = vset.pattern.permute.xlu0 %v4133_v41 }
 0x10e   : > { %v3828_v44 = vpack.c.bf16 %v4321_v43, %v4319_v42 }
 0x110   : > { %636 = vrot.lane.b32.xlu0 %v3828_v44, %s4122_s21  ;;  %v4134_v44 = vmov 1  }
 0x114   : > { %1012 = vrot.lane.b32.xlu0 %v3830_v19, %s4123_s22  ;;  %s4143_s22 = smov 19  }
 0x118   : > { %1229 = vrot.lane.b32.xlu0 %v3830_v19, %s4124_s23 }
 0x182   : > { %v637_v45 = vpop.permute.xlu0 %636 }
 0x183   : > { %v638_v46 = vrot.slane %v637_v45, 4 }
 0x185   : > { %v640_v47 = vsel %vm639_vm9, %v638_v46, %v637_v45  ;;  %647 = vst.msk [vmem:[#allocation2 + $0x8] sm:$0xf] %vm521_vm5, %v638_v46  ;;  %v4136_v45 = vmov 3   ;;  %v4138_v46 = vmov 5   ;;  %vm957_vm5 = vcmask 908288  }
 0x186   : > { %646 = vst.msk [vmem:[#allocation2] sm:$0xff] %vm645_vm10, %v640_v47  ;;  %v1013_v4 = vpop.permute.xlu0 %1012  ;;  %v4139_v47 = vmov 6   ;;  %vm5252_vm10 = vcmask 777216  }
 0x187   : > { %v4367_v6 = vrot.slane %v1013_v4, 4 }
 0x189   : > { %5287 = vst [vmem:[#allocation11_spill] sm:$0xff] %v4367_v6  ;;  %v4380_v18 = vsel %vm1015_vm12, %v4367_v6, %v1013_v4 }
 0x18a   : > { %5289 = vst [vmem:[#allocation13_spill] sm:$0xff] %v4380_v18  ;;  %v1230_v19 = vpop.permute.xlu0 %1229 }
 0x18b   : > { %v4390_v23 = vrot.slane %v1230_v19, 4 }
 0x18c   : > { %v4340_v55 = vld [vmem:[#allocation2 + $0x8] sm:$0xf] }
 0x18d   : > { %v4330_v49 = vld [vmem:[#allocation2] sm:$0xff]  ;;  %v3688_v56 = vcombine.low %v4340_v55, %v4340_v55  ;;  %v803_v57 = vmul.bf16 %v4332_v51, %v4340_v55  ;;  %v881_v58 = vmul.bf16 %v4334_v52, %v4340_v55  ;;  %v1098_v11 = vmul.bf16 %v4369_v7, %v4340_v55  ;;  %5291 = vst [vmem:[#allocation15_spill] sm:$0xff] %v4390_v23 }
 0x18e   : > { %v3687_v53 = vcombine.high %v4330_v49, %v4330_v49  ;;  %v3686_v54 = vcombine.low %v4330_v49, %v4330_v49  ;;  %v802_v62 = vmul.bf16 %v4351_v59, %v4330_v49  ;;  %v880_v5 = vmul.bf16 %v4361_v2, %v4330_v49 }
 0x18f   : > { %v3698_v60 = vcombine.low %v803_v57, %v803_v57  ;;  %v3703_v61 = vcombine.low %v881_v58, %v881_v58  ;;  %v1020_v14 = vmul.bf16 %v4367_v6, %v4340_v55  ;;  %v3715_v15 = vcombine.low %v1098_v11, %v1098_v11  ;;  %v648_v11 = vld [vmem:[%s5236_s5] sm:$0x3] }
 0x190   : > { %676 = vrot.lane.b32.xlu0 %v3687_v53, %s4125_s24  ;;  %674 = vrot.lane.b32.xlu1 %v3686_v54, %s4125_s24  ;;  %v3696_v63 = vcombine.low %v802_v62, %v802_v62  ;;  %v3697_v1 = vcombine.high %v802_v62, %v802_v62  ;;  %v3702_v8 = vcombine.high %v880_v5, %v880_v5 }
 0x191   : > { %v3701_v10 = vcombine.low %v880_v5, %v880_v5  ;;  %v3710_v17 = vcombine.low %v1020_v14, %v1020_v14  ;;  %v1019_v21 = vmul.bf16 %v4380_v18, %v4330_v49  ;;  %v1097_v24 = vmul.bf16 %v4388_v22, %v4330_v49 }
 0x192   : > { %v4398_v31 = vsel %vm1232_vm14, %v4390_v23, %v1230_v19  ;;  %v1237_v36 = vmul.bf16 %v4390_v23, %v4340_v55 }
 0x193   : > { %v3709_v28 = vcombine.high %v1019_v21, %v1019_v21  ;;  %v3708_v30 = vcombine.low %v1019_v21, %v1019_v21  ;;  %5292 = vst [vmem:[#allocation16_spill] sm:$0xff] %v4398_v31  ;;  %v1236_v32 = vmul.bf16 %v4398_v31, %v4330_v49  ;;  %v3713_v33 = vcombine.low %v1097_v24, %v1097_v24 }
 0x194   : > { %951 = vrot.lane.b32.xlu0 %v3686_v54, %s5274_s27  ;;  %678 = vrot.lane.b32.xlu1 %v3688_v56, %s4125_s24  ;;  %v3714_v34 = vcombine.high %v1097_v24, %v1097_v24  ;;  %v3722_v38 = vcombine.low %v1237_v36, %v1237_v36 }
 0x195   : > { %v3720_v35 = vcombine.low %v1236_v32, %v1236_v32  ;;  %v3721_v37 = vcombine.high %v1236_v32, %v1236_v32 }
 0x198   : > { %816 = vrot.lane.b32.xlu0 %v3698_v60, %s5278_s28  ;;  %894 = vrot.lane.b32.xlu1 %v3703_v61, %s5276_s30 }
 0x19c   : > { %812 = vrot.lane.b32.xlu0 %v3696_v63, %s5278_s28  ;;  %814 = vrot.lane.b32.xlu1 %v3697_v1, %s5278_s28  ;;  %v649_v63 = vld [vmem:[%s5236_s5 + $0x2] sm:$0x3] }
 0x1a0   : > { %955 = vrot.lane.b32.xlu0 %v3688_v56, %s5274_s27  ;;  %953 = vrot.lane.b32.xlu1 %v3687_v53, %s5274_s27 }
 0x1a4   : > { %892 = vrot.lane.b32.xlu0 %v3702_v8, %s5276_s30  ;;  %890 = vrot.lane.b32.xlu1 %v3701_v10, %s5276_s30 }
 0x1a8   : > { %1111 = vrot.lane.b32.xlu0 %v3715_v15, %s5246_s14  ;;  %1033 = vrot.lane.b32.xlu1 %v3710_v17, %s5272_s15 }
 0x1ac   : > { %1170 = vrot.lane.b32.xlu0 %v3687_v53, %s5248_s16  ;;  %1168 = vrot.lane.b32.xlu1 %v3686_v54, %s5248_s16  ;;  %v664_v54 = vmul.bf16 %v4304_v25, %v4330_v49 }
 0x1ae   : > { %v3692_v61 = vcombine.high %v664_v54, %v664_v54  ;;  %v3691_v62 = vcombine.low %v664_v54, %v664_v54 }
 0x1b0   : > { %1031 = vrot.lane.b32.xlu0 %v3709_v28, %s5272_s15  ;;  %1029 = vrot.lane.b32.xlu1 %v3708_v30, %s5272_s15  ;;  %v744_v3 = vsel %vm687_vm1, %v3691_v62, 0  ;;  %v650_v30 = vld [vmem:[%s5236_s5 + $0x4] sm:$0x3] }
 0x1b4   : > { %1107 = vrot.lane.b32.xlu0 %v3713_v33, %s5246_s14  ;;  %1109 = vrot.lane.b32.xlu1 %v3714_v34, %s5246_s14  ;;  %s4151_s14 = smov 35  }
 0x1b8   : > { %1172 = vrot.lane.b32.xlu1 %v3688_v56, %s5248_s16  ;;  %1246 = vrot.lane.b32.xlu0 %v3720_v35, %s5270_s17  ;;  %s4135_s16 = smov 1  }
 0x1bc   : > { %1248 = vrot.lane.b32.xlu1 %v3721_v37, %s5270_s17  ;;  %1250 = vrot.lane.b32.xlu0 %v3722_v38, %s5270_s17 }
 0x1c0   : > { %1310 = vperm.xlu1 %4010, %v1307_v39   ;;  %1407 = vperm.xlu0 %4012, %v4418_v40   ;;  %v651_v39 = vld [vmem:[%s5236_s5 + $0x6] sm:$0x3] }
 0x1c4   : > { %4011 = vset.pattern.permute.xlu1 %v4134_v44 }
 0x1c5   : > { %1379 = vperm.xlu1 %4011, %v4418_v40  }
 0x1c9   : > { %1369 = vrot.lane.b32.xlu1 %v4306_v26, %s4135_s16  ;;  %s4159_s16 = smov 36  }
 0x1ca   : > { %4013 = vset.pattern.permute.xlu1 %v4136_v45 }
 0x1cd   : > { %1445 = vperm.xlu1 %4013, %v4418_v40  }
 0x1d1   : > { %1435 = vrot.lane.b32.xlu1 %v4298_v20, %s4137_s18  ;;  %s4144_s18 = smov 4  }
 0x1d2   : > { %4015 = vset.pattern.permute.xlu1 %v4138_v46 }
 0x1d5   : > { %1521 = vperm.xlu1 %4015, %v4418_v40  }
 0x1d9   : > { %4016 = vset.pattern.permute.xlu1 %v4139_v47 }
 0x1da   : > { %1558 = vperm.xlu1 %4016, %v4418_v40  }
 0x1de   : > { %4017 = vset.pattern.permute.xlu1 %v4140_v48 }
 0x1df   : > { %1586 = vperm.xlu1 %4017, %v4418_v40  }
 0x202   : > { %v675_v50 = vpop.permute.xlu1 %674  ;;  %v677_v53 = vpop.permute.xlu0 %676 }
 0x203   : > { %v681_v55 = vsel %vm680_vm15, %v675_v50, %v677_v53  ;;  %v653_v50 = vld [vmem:[%s5236_s5 + $0xa] sm:$0x3] }
 0x204   : > { %v689_v60 = vsel %vm687_vm1, %v681_v55, 0 }
 0x206   : > { %v679_v56 = vpop.permute.xlu1 %678  ;;  %v952_v57 = vpop.permute.xlu0 %951 }
 0x207   : > { %v682_v58 = vsel %vm680_vm15, %v677_v53, %v679_v56 }
 0x208   : > { %3689 = vmatprep.subr.msk.bf16.mxu1 %vm687_vm1, %v682_v58  ;;  %v652_v58 = vld [vmem:[%s5236_s5 + $0x8] sm:$0x3] }
 0x209   : > { %695 = vmatpush1.bf16.msra.mxu1 %v689_v60 }
 0x20a   : > { %v895_v49 = vpop.permute.xlu1 %894  ;;  %3693 = vmatprep.subr.msk.bf16.mxu1 %vm687_vm1, %v3692_v61  ;;  %v817_v1 = vpop.permute.xlu0 %816 }
 0x20c   : > { %3690 = vmatmul.mubr.msk.bf16.vlgmr.msra.gmra.mrb[4].mxu1 %vm5251_vm2, %v649_v63 }
 0x20d   : > { %750 = vmatpush1.bf16.msra.mxu1 %v744_v3  ;;  %781 = vmatprep.mubr.bf16.mxu1 %v5253_v0 }
 0x20e   : > { %v815_v4 = vpop.permute.xlu1 %814  ;;  %v813_v5 = vpop.permute.xlu0 %812 }
 0x20f   : > { %v820_v8 = vsel %vm818_vm3, %v815_v4, %v817_v1  ;;  %v819_v10 = vsel %vm818_vm3, %v813_v5, %v815_v4  ;;  %v655_v1 = vld [vmem:[%s5236_s5 + $0xe] sm:$0x3] }
 0x210   : > { %3699 = vmatprep.subr.msk.bf16.mxu1 %vm687_vm1, %v820_v8  ;;  %v825_v17 = vsel %vm687_vm1, %v819_v10, 0  ;;  %v654_v10 = vld [vmem:[%s5236_s5 + $0xc] sm:$0x3] }
 0x212   : > { %v954_v14 = vpop.permute.xlu1 %953  ;;  %v956_v15 = vpop.permute.xlu0 %955 }
 0x213   : > { %v959_v35 = vsel %vm957_vm5, %v954_v14, %v956_v15  ;;  %v958_v38 = vsel %vm957_vm5, %v952_v57, %v954_v14  ;;  %v656_v14 = vld [vmem:[%s5236_s5 + $0x10] sm:$0x3]  ;;  %v4141_v15 = vmov 8  }
 0x214   : > { %3694 = vmatmul.mubr.msk.bf16.vlgmr.msra.gmra.mrb[8].mxu1 %vm5251_vm2, %v648_v11  ;;  %v964_v47 = vsel %vm687_vm1, %v958_v38, 0  ;;  %4018 = vset.pattern.permute.xlu1 %v4141_v15  ;;  %v4146_v38 = vmov 11  }
 0x215   : > { %831 = vmatpush1.bf16.msra.mxu1 %v825_v17  ;;  %862 = vmatprep.mubr.bf16.mxu1 %v5253_v0  ;;  %v4142_v17 = vmov 4  }
 0x216   : > { %v891_v19 = vpop.permute.xlu1 %890  ;;  %v893_v21 = vpop.permute.xlu0 %892  ;;  %1621 = vperm.xlu1 %4018, %v4418_v40   ;;  %4014 = vset.pattern.permute.xlu0 %v4142_v17 }
 0x217   : > { %v898_v24 = vsel %vm896_vm4, %v893_v21, %v895_v49  ;;  %v897_v28 = vsel %vm896_vm4, %v891_v19, %v893_v21  ;;  %v505_v19 = vadd.s32 2, %v4290_v12  ;;  %v506_v21 = vadd.s32 2, %v4292_v13  ;;  %1485 = vperm.xlu0 %4014, %v4418_v40  }
 0x218   : > { %3704 = vmatprep.subr.msk.bf16.mxu1 %vm687_vm1, %v898_v24  ;;  %v903_v34 = vsel %vm687_vm1, %v897_v28, 0 }
 0x219   : > { %vm509_vm12 = vcmp.lt.s32.totalorder %v505_v19, 16 }
 0x21a   : > { %v1034_v32 = vpop.permute.xlu1 %1033  ;;  %v1112_v33 = vpop.permute.xlu0 %1111  ;;  %1611 = vrot.lane.b32.xlu1 %v4298_v20, %s4143_s22  ;;  %v3676_v24 = vsel %vm509_vm12, 1.0, %v4118_v16  ;;  %s4161_s22 = smov 48  }
 0x21c   : > { %3700 = vmatmul.mubr.msk.bf16.vlgmr.msra.gmra.mrb[12].mxu1 %vm5251_vm2, %v650_v30 }
 0x21d   : > { %909 = vmatpush1.bf16.msra.mxu1 %v903_v34  ;;  %940 = vmatprep.mubr.bf16.mxu1 %v5253_v0  ;;  %v470_v34 = vadd.s32 4294967294, %v4292_v13  ;;  %v4149_v13 = vmov 13  }
 0x21e   : > { %3706 = vmatprep.subr.msk.bf16.mxu1 %vm687_vm1, %v959_v35  ;;  %v1169_v36 = vpop.permute.xlu1 %1168  ;;  %v1171_v37 = vpop.permute.xlu0 %1170 }
 0x21f   : > { %v1175_v56 = vsel %vm5252_vm10, %v1169_v36, %v1171_v37 }
 0x220   : > { %v1181_v49 = vsel %vm687_vm1, %v1175_v56, 0  ;;  %v4169_v56 = vmov 24  }
 0x222   : > { %v1030_v41 = vpop.permute.xlu1 %1029  ;;  %v1032_v44 = vpop.permute.xlu0 %1031 }
 0x223   : > { %v1037_v45 = vsel %vm1035_vm6, %v1032_v44, %v1034_v32  ;;  %v1036_v46 = vsel %vm1035_vm6, %v1030_v41, %v1032_v44  ;;  %v4145_v32 = vmov 10   ;;  %v4152_v41 = vmov 15  }
 0x224   : > { %3705 = vmatmul.mubr.msk.bf16.vlgmr.msra.gmra.mrb[16].mxu1 %vm5251_vm2, %v651_v39  ;;  %3711 = vmatprep.subr.msk.bf16.mxu0 %vm687_vm1, %v1037_v45  ;;  %v1042_v48 = vsel %vm687_vm1, %v1036_v46, 0  ;;  %v4147_v39 = vmov 9   ;;  %v4153_v44 = vmov 14   ;;  %v4155_v45 = vmov 16  }
 0x225   : > { %970 = vmatpush1.bf16.msra.mxu1 %v964_v47  ;;  %1048 = vmatpush1.bf16.msra.mxu0 %v1042_v48  ;;  %v4156_v46 = vmov 17   ;;  %v4157_v47 = vmov 18   ;;  %v4160_v48 = vmov 20  }
 0x226   : > { %v1110_v53 = vpop.permute.xlu1 %1109  ;;  %v1108_v54 = vpop.permute.xlu0 %1107  ;;  %1001 = vmatprep.mubr.bf16.mxu1 %v5253_v0  ;;  %4020 = vset.pattern.permute.xlu1 %v4145_v32 }
 0x227   : > { %v1115_v55 = vsel %vm1113_vm7, %v1110_v53, %v1112_v33  ;;  %v1114_v57 = vsel %vm1113_vm7, %v1108_v54, %v1110_v53  ;;  %1695 = vperm.xlu1 %4020, %v4418_v40   ;;  %v469_v33 = vadd.s32 4294967294, %v4290_v12  ;;  %4019 = vset.pattern.permute.xlu0 %v4147_v39  ;;  %v4148_v12 = vmov 12  }
 0x228   : > { %3716 = vmatprep.subr.msk.bf16.mxu1 %vm687_vm1, %v1115_v55  ;;  %3712 = vmatmul.mubr.msk.bf16.vlgmr.msra.gmra.mrb[0].mxu0 %vm5251_vm2, %v653_v50  ;;  %v1120_v63 = vsel %vm687_vm1, %v1114_v57, 0  ;;  %v4162_v50 = vmov 21   ;;  %v4164_v53 = vmov 22   ;;  %v4165_v54 = vmov 19  }
 0x229   : > { %1218 = vmatprep.mubr.bf16.mxu0 %v5253_v0  ;;  %v4166_v55 = vmov 23  }
 0x22a   : > { %v1173_v60 = vpop.permute.xlu1 %1172  ;;  %v1247_v61 = vpop.permute.xlu0 %1246 }
 0x22b   : > { %v1176_v62 = vsel %vm5252_vm10, %v1171_v37, %v1173_v60  ;;  %vm472_vm10 = vcmp.ge.s32.totalorder %v470_v34, 0  ;;  %4021 = vset.pattern.permute.xlu1 %v4146_v38 }
 0x22c   : > { %3707 = vmatmul.mubr.msk.bf16.vlgmr.msra.gmra.mrb[20].mxu1 %vm5251_vm2, %v652_v58  ;;  %3718 = vmatprep.subr.msk.bf16.mxu0 %vm687_vm1, %v1176_v62  ;;  %v3671_v36 = vsel %vm472_vm10, 1.0, %v4118_v16  ;;  %vm527_vm10 = vcmask 552208  }
 0x22d   : > { %1126 = vmatpush1.bf16.msra.mxu1 %v1120_v63  ;;  %1187 = vmatpush1.bf16.msra.mxu0 %v1181_v49  ;;  %528 = vst.msk [vmem:[#allocation3 + $0x8] sm:$0xf] %vm527_vm10, %v4118_v16  ;;  %vm1438_vm10 = vcmask 23552  }
 0x22e   : > { %v1249_v3 = vpop.permute.xlu1 %1248  ;;  %v1251_v4 = vpop.permute.xlu0 %1250  ;;  %1157 = vmatprep.mubr.bf16.mxu1 %v5253_v0  ;;  %1732 = vperm.xlu1 %4021, %v4418_v40  }
 0x22f   : > { %v1254_v5 = vsel %vm5250_vm11, %v1249_v3, %v1251_v4  ;;  %v1253_v8 = vsel %vm5250_vm11, %v1247_v61, %v1249_v3  ;;  %vm510_vm11 = vcmp.lt.s32.totalorder %v506_v21, 16 }
 0x230   : > { %3723 = vmatprep.subr.msk.bf16.mxu1 %vm687_vm1, %v1254_v5  ;;  %3719 = vmatmul.mubr.msk.bf16.vlgmr.msra.gmra.mrb[4].mxu0 %vm5251_vm2, %v655_v1  ;;  %v1259_v11 = vsel %vm687_vm1, %v1253_v8, 0  ;;  %v3677_v28 = vsel %vm510_vm11, 1.0, %v4118_v16  ;;  %vm1339_vm11 = vcmask 1043728  }
 0x231   : > { %v4514_v30 = vcombine.low %v3676_v24, %v3677_v28  ;;  %vm1340_vm12 = vmor %vm644_vm8, %vm1339_vm11  ;;  %vm2036_vm8 = vcmask 523264   ;;  %vm1478_vm11 = vcmask 31744  }
 0x232   : > { %4022 = vset.pattern.permute.xlu1 %v4148_v12 }
 0x233   : > { %1475 = vrot.lane.b32.xlu0 %v4514_v30, %s4144_s18  ;;  %1760 = vperm.xlu1 %4022, %v4418_v40   ;;  %s4163_s18 = smov 49  }
 0x234   : > { %3717 = vmatmul.mubr.msk.bf16.vlgmr.msra.gmra.mrb[24].mxu1 %vm5251_vm2, %v654_v10 }
 0x235   : > { %1265 = vmatpush1.bf16.msra.mxu1 %v1259_v11  ;;  %1296 = vmatprep.mubr.bf16.mxu1 %v5253_v0 }
 0x237   : > { %4023 = vset.pattern.permute.xlu1 %v4149_v13 }
 0x238   : > { %1795 = vperm.xlu1 %4023, %v4418_v40  }
 0x23c   : > { %3724 = vmatmul.mubr.msk.bf16.vlgmr.msra.gmra.mrb[28].mxu1 %vm5251_vm2, %v656_v14  ;;  %vm471_vm2 = vcmp.ge.s32.totalorder %v469_v33, 0  ;;  %1785 = vrot.lane.b32.xlu1 %v4298_v20, %s4151_s14  ;;  %s4168_s14 = smov 68  }
 0x23d   : > { %v3670_v35 = vsel %vm471_vm2, 1.0, %v4118_v16  ;;  %4025 = vset.pattern.permute.xlu1 %v4152_v41  ;;  %vm525_vm2 = vcmask 273408  }
 0x23e   : > { %v4522_v37 = vcombine.low %v3670_v35, %v3671_v36  ;;  %526 = vst.msk [vmem:[#allocation3] sm:$0xf] %vm525_vm2, %v4118_v16 }
 0x240   : > { %1512 = vrot.lane.b32.xlu0 %v4522_v37, %s4120_s19  ;;  %1869 = vperm.xlu1 %4025, %v4418_v40   ;;  %s4154_s19 = smov 33  }
 0x244   : > { %1548 = vrot.lane.b32.xlu0 %v4306_v26, %s4122_s21  ;;  %4026 = vset.pattern.permute.xlu1 %v4155_v45 }
 0x245   : > { %1906 = vperm.xlu1 %4026, %v4418_v40  }
 0x248   : > { %1658 = vperm.xlu0 %4019, %v4418_v40  }
 0x249   : > { %4027 = vset.pattern.permute.xlu1 %v4156_v46 }
 0x24a   : > { %1934 = vperm.xlu1 %4027, %v4418_v40  }
 0x24c   : > { %1648 = vrot.lane.b32.xlu0 %v4514_v30, %s4150_s29  ;;  %s4167_s29 = smov 67  }
 0x24d   : > { %4024 = vset.pattern.permute.xlu0 %v4153_v44 }
 0x24e   : > { %4028 = vset.pattern.permute.xlu1 %v4157_v47 }
 0x24f   : > { %1969 = vperm.xlu1 %4028, %v4418_v40  }
 0x250   : > { %1685 = vrot.lane.b32.xlu0 %v4522_v37, %s4121_s20  ;;  %s4158_s20 = smov 51  }
 0x253   : > { %1959 = vrot.lane.b32.xlu1 %v4298_v20, %s4158_s20  ;;  %s4171_s20 = smov 64  }
 0x254   : > { %1722 = vrot.lane.b32.xlu0 %v4306_v26, %s4154_s19  ;;  %4030 = vset.pattern.permute.xlu1 %v4160_v48  ;;  %s4170_s19 = smov 52  }
 0x257   : > { %2043 = vperm.xlu1 %4030, %v4418_v40  }
 0x258   : > { %1832 = vperm.xlu0 %4024, %v4418_v40  }
 0x25b   : > { %4031 = vset.pattern.permute.xlu1 %v4162_v50 }
 0x25c   : > { %1822 = vrot.lane.b32.xlu0 %v4514_v30, %s4159_s16  ;;  %2079 = vperm.xlu1 %4031, %v4418_v40   ;;  %s4172_s16 = smov 65  }
 0x25d   : > { %4029 = vset.pattern.permute.xlu0 %v4165_v54 }
 0x260   : > { %1859 = vrot.lane.b32.xlu0 %v4522_v37, %s4161_s22  ;;  %4032 = vset.pattern.permute.xlu1 %v4164_v53  ;;  %s4175_s22 = smov 125  }
 0x261   : > { %2107 = vperm.xlu1 %4032, %v4418_v40  }
 0x264   : > { %1896 = vrot.lane.b32.xlu0 %v4306_v26, %s4163_s18  ;;  %s4176_s18 = smov 62  }
 0x265   : > { %4033 = vset.pattern.permute.xlu1 %v4166_v55 }
 0x266   : > { %2142 = vperm.xlu1 %4033, %v4418_v40  }
 0x268   : > { %2006 = vperm.xlu0 %4029, %v4418_v40  }
 0x26a   : > { %4036 = vset.pattern.permute.xlu1 %v5253_v0 }
 0x26b   : > { %2132 = vrot.lane.b32.xlu1 %v4298_v20, %s4167_s29  ;;  %s5293_s29 = smov 96  }
 0x26c   : > { %4034 = vset.pattern.permute.xlu0 %v4169_v56 }
 0x26f   : > { %2169 = vrot.lane.b32.xlu1 %v4514_v30, %s4168_s14  ;;  %s5295_s14 = smov 95  }
 0x2df   : > { %v728_v57 = vpop.f32.mrb[4].mxu1 }
 0x2e0   : > { %v730_v58 = vpop.f32.mrb[5].mxu1 }
 0x2e1   : > { %v732_v60 = vpop.f32.mrb[6].mxu1 }
 0x2e2   : > { %v733_v61 = vpop.f32.mrb[7].mxu1 }
 0x2e7   : > { %v783_v62 = vpop.f32.mrb[8].mxu1 }
 0x2e8   : > { %v784_v63 = vadd.f32 %v783_v62, %v728_v57  ;;  %v785_v49 = vpop.f32.mrb[9].mxu1  ;;  %v1311_v62 = vpop.permute.xlu1 %1310 }
 0x2e9   : > { %v786_v20 = vadd.f32 %v785_v49, %v730_v58  ;;  %v787_v1 = vpop.f32.mrb[10].mxu1 }
 0x2ea   : > { %v788_v3 = vpop.f32.mrb[11].mxu1 }
 0x2ef   : > { %v864_v4 = vpop.f32.mrb[12].mxu1 }
 0x2f0   : > { %v871_v5 = vadd.f32 %v864_v4, %v784_v63  ;;  %v866_v8 = vpop.f32.mrb[13].mxu1 }
 0x2f1   : > { %v872_v10 = vadd.f32 %v866_v8, %v786_v20  ;;  %v868_v11 = vpop.f32.mrb[14].mxu1 }
 0x2f2   : > { %v869_v14 = vpop.f32.mrb[15].mxu1 }
 0x2f7   : > { %v942_v15 = vpop.f32.mrb[16].mxu1 }
 0x2f8   : > { %v949_v17 = vadd.f32 %v942_v15, %v871_v5  ;;  %v944_v19 = vpop.f32.mrb[17].mxu1 }
 0x2f9   : > { %v950_v16 = vadd.f32 %v944_v19, %v872_v10  ;;  %v946_v21 = vpop.f32.mrb[18].mxu1 }
 0x2fa   : > { %v947_v24 = vpop.f32.mrb[19].mxu1 }
 0x2fb   : > { %v1081_v28 = vpop.f32.mrb[0].mxu0 }
 0x2fc   : > { %v1083_v32 = vpop.f32.mrb[1].mxu0 }
 0x2fd   : > { %v1085_v33 = vpop.f32.mrb[2].mxu0 }
 0x2fe   : > { %v1086_v34 = vpop.f32.mrb[3].mxu0 }
 0x2ff   : > { %v1003_v35 = vpop.f32.mrb[20].mxu1 }
 0x300   : > { %v1010_v36 = vadd.f32 %v1003_v35, %v949_v17  ;;  %v1005_v38 = vpop.f32.mrb[21].mxu1 }
 0x301   : > { %v1011_v39 = vadd.f32 %v1005_v38, %v950_v16  ;;  %v1007_v12 = vpop.f32.mrb[22].mxu1 }
 0x302   : > { %v1088_v13 = vadd.f32 %v1081_v28, %v1010_v36  ;;  %v1008_v41 = vpop.f32.mrb[23].mxu1  ;;  %v1408_v36 = vpop.permute.xlu0 %1407 }
 0x303   : > { %v1089_v44 = vadd.f32 %v1083_v32, %v1011_v39  ;;  %v1220_v45 = vpop.f32.mrb[4].mxu0  ;;  %v4567_v32 = vpop.permute.xlu1 %1379 }
 0x304   : > { %v1222_v46 = vpop.f32.mrb[5].mxu0 }
 0x305   : > { %v1224_v47 = vpop.f32.mrb[6].mxu0 }
 0x306   : > { %v1225_v48 = vpop.f32.mrb[7].mxu0  ;;  %v4583_v39 = vpop.permute.xlu0 %1485 }
 0x307   : > { %v1159_v50 = vpop.f32.mrb[24].mxu1  ;;  %v4570_v33 = vpop.permute.xlu1 %1369 }
 0x308   : > { %v1166_v53 = vadd.f32 %v1159_v50, %v1088_v13  ;;  %v1161_v54 = vpop.f32.mrb[25].mxu1  ;;  %v5264_v22 = vrot.slane %v4570_v33, 4 }
 0x309   : > { %v1167_v55 = vadd.f32 %v1161_v54, %v1089_v44  ;;  %v1163_v56 = vpop.f32.mrb[26].mxu1 }
 0x30a   : > { %v1227_v57 = vadd.f32 %v1220_v45, %v1166_v53  ;;  %v1164_v58 = vpop.f32.mrb[27].mxu1  ;;  %v4585_v12 = vpop.permute.xlu0 %1475 }
 0x30b   : > { %v1228_v60 = vadd.f32 %v1222_v46, %v1167_v55  ;;  %v4574_v34 = vpop.permute.xlu1 %1445 }
 0x30e   : > { %v4589_v41 = vpop.permute.xlu0 %1512 }
 0x30f   : > { %v1298_v61 = vpop.f32.mrb[28].mxu1  ;;  %v1514_v2 = vrot.slane %v4589_v41, 4 }
 0x310   : > { %v1305_v63 = vadd.f32 %v1298_v61, %v1227_v57  ;;  %v1300_v49 = vpop.f32.mrb[29].mxu1 }
 0x311   : > { %v1306_v20 = vadd.f32 %v1300_v49, %v1228_v60  ;;  %v1302_v1 = vpop.f32.mrb[30].mxu1 }
 0x312   : > { %v1313_v3 = vadd.f32 %v1311_v62, %v1305_v63  ;;  %v1303_v4 = vpop.f32.mrb[31].mxu1  ;;  %v4593_v45 = vpop.permute.xlu0 %1548 }
 0x313   : > { %v1314_v5 = vadd.f32 %v1311_v62, %v1306_v20  ;;  %v4173_v4 = vmov 839922192  }
 0x314   : > { %v3725_v8 = vmul.f32 -1.442695, %v1313_v3 }
 0x315   : > { %v3726_v10 = vmul.f32 -1.442695, %v1314_v5 }
 0x316   : > { %4053 = vpow2.f32 %v3725_v8  ;;  %v4597_v46 = vpop.permute.xlu0 %1658 }
 0x317   : > { %4055 = vpow2.f32 %v3726_v10 }
 0x31a   : > { %v4601_v48 = vpop.permute.xlu0 %1648 }
 0x31e   : > { %v4603_v53 = vpop.permute.xlu0 %1685 }
 0x320   : > { %v4054_v11 = vpop.eup %4053 }
 0x321   : > { %v4056_v14 = vpop.eup %4055  ;;  %v1321_v15 = vadd.f32 1.0, %v4054_v11 }
 0x322   : > { %v1322_v17 = vadd.f32 1.0, %v4056_v14  ;;  %v4607_v55 = vpop.permute.xlu0 %1722 }
 0x323   : > { %4057 = vrcp.f32 %v1321_v15 }
 0x324   : > { %4059 = vrcp.f32 %v1322_v17  ;;  %v4635_v17 = vshrl.u32 %v442_v9, 7 }
 0x326   : > { %v4611_v57 = vpop.permute.xlu0 %1832 }
 0x32a   : > { %v4615_v60 = vpop.permute.xlu0 %1822 }
 0x32d   : > { %v4058_v19 = vpop.eup %4057 }
 0x32e   : > { %v4060_v16 = vpop.eup %4059  ;;  %v4557_v21 = vmul.f32 %v4058_v19, %v1313_v3  ;;  %v4619_v62 = vpop.permute.xlu0 %1859 }
 0x32f   : > { %v4559_v24 = vmul.f32 %v4060_v16, %v1314_v5  ;;  %v1355_v5 = vunpack.c.l.s4 %v4173_v4 }
 0x331   : > { %v1331_v28 = vcombine.low %v4557_v21, %v4559_v24  ;;  %v1356_v15 = vunpack.c.0.s8 %v1355_v5 }
 0x332   : > { %v4621_v49 = vpop.permute.xlu0 %1896 }
 0x333   : > { %1332 = vrot.lane.b32.xlu0 %v1331_v28, %s4124_s23  ;;  %v4640_v28 = vsub.s32 %v1356_v15, %v4635_v17  ;;  %s4174_s23 = smov 78  }
 0x336   : > { %v4623_v20 = vpop.permute.xlu0 %2006 }
 0x337   : > { %1996 = vrot.lane.b32.xlu0 %v4514_v30, %s4170_s19  ;;  %v4577_v30 = vpop.permute.xlu1 %1435  ;;  %s4177_s19 = smov 124  }
 0x33b   : > { %2033 = vrot.lane.b32.xlu0 %v4522_v37, %s4171_s20  ;;  %v4579_v35 = vpop.permute.xlu1 %1521 }
 0x33f   : > { %2069 = vrot.lane.b32.xlu0 %v4306_v26, %s4172_s16  ;;  %v4581_v38 = vpop.permute.xlu1 %1558  ;;  %s4178_s16 = smov 109  }
 0x343   : > { %2179 = vperm.xlu0 %4034, %v4418_v40   ;;  %v1587_v26 = vpop.permute.xlu1 %1586 }
 0x347   : > { %4035 = vset.pattern.permute.xlu0 %v5253_v0  ;;  %v4587_v13 = vpop.permute.xlu1 %1621 }
 0x348   : > { %1352 = vperm.xlu0 %4035, %v4418_v40  }
 0x34b   : > { %v4591_v44 = vpop.permute.xlu1 %1611 }
 0x34f   : > { %v4595_v40 = vpop.permute.xlu1 %1695 }
 0x353   : > { %v4599_v47 = vpop.permute.xlu1 %1732 }
 0x357   : > { %v1761_v50 = vpop.permute.xlu1 %1760 }
 0x35b   : > { %v4605_v54 = vpop.permute.xlu1 %1795 }
 0x35f   : > { %v4609_v56 = vpop.permute.xlu1 %1785 }
 0x363   : > { %v4613_v58 = vpop.permute.xlu1 %1869 }
 0x367   : > { %v4617_v61 = vpop.permute.xlu1 %1906 }
 0x36b   : > { %v1935_v63 = vpop.permute.xlu1 %1934 }
 0x36f   : > { %v4625_v1 = vpop.permute.xlu1 %1969 }
 0x373   : > { %v4628_v10 = vpop.permute.xlu1 %1959 }
 0x377   : > { %v2044_v19 = vpop.permute.xlu1 %2043 }
 0x37b   : > { %v2080_v29 = vpop.permute.xlu1 %2079 }
 0x37c   : > { %v4658_v25 = vrot.slane %v2080_v29, %v4640_v28 }
 0x3a5   : > { %v1333_v3 = vpop.permute.xlu0 %1332 }
 0x3a6   : > { %v1334_v8 = vrot.slane %v1333_v3, 4 }
 0x3a8   : > { %v1336_v11 = vsel %vm1232_vm14, %v1334_v8, %v1333_v3  ;;  %1342 = vst.msk [vmem:[#allocation3 + $0x8] sm:$0xf] %vm525_vm2, %v1334_v8  ;;  %v4644_v3 = vrot.slane %v2044_v19, %v4640_v28  ;;  %vm2072_vm14 = vcmask 531456   ;;  %vm1899_vm2 = vcmask 400384  }
 0x3a9   : > { %1341 = vst.msk [vmem:[#allocation3] sm:$0xff] %vm1340_vm12, %v1336_v11  ;;  %v4632_v14 = vpop.permute.xlu0 %1996  ;;  %v1415_v11 = vrot.slane %v1408_v36, %v4640_v28  ;;  %vm1614_vm12 = vcmask 154624  }
 0x3ad   : > { %v4637_v16 = vpop.permute.xlu0 %2033 }
 0x3ae   : > { %v5258_v4 = vrot.slane %v4637_v16, 4 }
 0x3af   : > { %v1405_v0 = vld [vmem:[#allocation3 + $0x8] sm:$0xf] }
 0x3b0   : > { %v4646_v8 = vld [vmem:[#allocation3] sm:$0xff]  ;;  %v2037_v9 = vsel %vm2036_vm8, %v5258_v4, %v4637_v16  ;;  %v1418_v19 = vmul.f32 %v1415_v11, %v1405_v0  ;;  %v4664_v31 = vld [vmem:[#allocation3 + $0x8] sm:$0xf]  ;;  %v1594_v4 = vrot.slane %v1587_v26, %v4640_v28 }
 0x3b1   : > { %v4653_v5 = vpop.permute.xlu0 %2069  ;;  %v2040_v15 = vmul.f32 %v4646_v8, %v2037_v9  ;;  %v1417_v23 = vmul.f32 %v4646_v8, %v1415_v11  ;;  %v4678_v6 = vld [vmem:[#allocation3 + $0x8] sm:$0xf] }
 0x3b2   : > { %v5262_v27 = vrot.slane %v4653_v5, 4  ;;  %1423 = vrot.lane.b32.xlu1 %v1418_v19, %s5278_s28  ;;  %v1597_v29 = vmul.f32 %v1594_v4, %v4664_v31  ;;  %v1596_v11 = vmul.f32 %v4646_v8, %v1594_v4  ;;  %v1365_v26 = vld [vmem:[#allocation3 + $0x8] sm:$0xf]  ;;  %v4690_v4 = vrot.slane %v4567_v32, %v4640_v28 }
 0x3b3   : > { %v4661_v36 = vmul.f32 %v4644_v3, %v2040_v15  ;;  %1421 = vrot.lane.b32.xlu0 %v1417_v23, %s5278_s28  ;;  %v1377_v19 = vmul.f32 %v5264_v22, %v1365_v26  ;;  %v5267_v26 = vrot.slane %v4621_v49, 4  ;;  %v1471_v22 = vld [vmem:[#allocation3 + $0x8] sm:$0xf] }
 0x3b4   : > { %v2073_v9 = vsel %vm2072_vm14, %v5262_v27, %v4653_v5  ;;  %v1768_v27 = vrot.slane %v1761_v50, %v4640_v28  ;;  %v4695_v50 = vrot.slane %v1935_v63, %v4640_v28  ;;  %v1477_v63 = vrot.slane %v4585_v12, 4  ;;  %v1511_v52 = vld [vmem:[#allocation3 + $0x8] sm:$0xf] }
 0x3b5   : > { %v2076_v7 = vmul.f32 %v4646_v8, %v2073_v9  ;;  %v1437_v9 = vrot.slane %v4577_v30, 4  ;;  %v1547_v51 = vld [vmem:[#allocation3 + $0x8] sm:$0xf]  ;;  %vm1651_vm14 = vcmask 162816  }
 0x3b6   : > { %1602 = vrot.lane.b32.xlu1 %v1597_v29, %s5272_s15  ;;  %v1771_v23 = vmul.f32 %v1768_v27, %v4678_v6  ;;  %v2108_v29 = vpop.permute.xlu1 %2107  ;;  %v1944_v32 = vmul.f32 %v4646_v8, %v4695_v50 }
 0x3b7   : > { %v4675_v15 = vmul.f32 %v4658_v25, %v2076_v7  ;;  %1600 = vrot.lane.b32.xlu0 %v1596_v11, %s5272_s15  ;;  %v1770_v7 = vmul.f32 %v4646_v8, %v1768_v27  ;;  %v1390_v11 = vmul.f32 %v4690_v4, %v1377_v19  ;;  %v1443_v18 = vmul.f32 %v1437_v9, %v1405_v0 }
 0x3b8   : > { %v4701_v27 = vrot.slane %v2108_v29, %v4640_v28  ;;  %v1483_v19 = vmul.f32 %v1477_v63, %v1471_v22 }
 0x3ba   : > { %1776 = vrot.lane.b32.xlu1 %v1771_v23, %s5270_s17  ;;  %v1453_v23 = vrot.slane %v4574_v34, %v4640_v28  ;;  %v2117_v29 = vmul.f32 %v4701_v27, %v4646_v8  ;;  %v1493_v34 = vrot.slane %v4583_v39, %v4640_v28 }
 0x3bb   : > { %1774 = vrot.lane.b32.xlu0 %v1770_v7, %s5270_s17  ;;  %v1900_v7 = vsel %vm1899_vm2, %v5267_v26, %v4621_v49  ;;  %v1519_v26 = vmul.f32 %v1514_v2, %v1511_v52  ;;  %v1566_v52 = vrot.slane %v4581_v38, %v4640_v28  ;;  %v1650_v38 = vrot.slane %v4601_v48, 4 }
 0x3bc   : > { %v1456_v0 = vmul.f32 %v1453_v23, %v1443_v18  ;;  %v1439_v18 = vsel %vm1438_vm10, %v1437_v9, %v4577_v30  ;;  %v1496_v22 = vmul.f32 %v1493_v34, %v1483_v19  ;;  %v1479_v30 = vsel %vm1478_vm11, %v1477_v63, %v4585_v12 }
 0x3bd   : > { %v1442_v39 = vmul.f32 %v4646_v8, %v1439_v18  ;;  %v1482_v59 = vmul.f32 %v4646_v8, %v1479_v30  ;;  %v1613_v18 = vrot.slane %v4591_v44, 4  ;;  %vm1372_vm2 = vcmask 7168  }
 0x3be   : > { %1395 = vrot.lane.b32.xlu1 %v1390_v11, %s4125_s24  ;;  %v4719_v11 = vmul.f32 %v4646_v8, %v1900_v7  ;;  %v1550_v7 = vrot.slane %v4593_v45, 4  ;;  %vm1725_vm10 = vcmask 269312   ;;  %vm1788_vm11 = vcmask 285696  }
 0x3bf   : > { %1948 = vrot.lane.b32.xlu0 %v1944_v32, %s4174_s23  ;;  %v2204_v32 = vld [vmem:[%s5239_s8] sm:$0xf]  ;;  %v1495_v12 = vmul.f32 %v1493_v34, %v1482_v59  ;;  %v1666_v34 = vrot.slane %v4597_v46, %v4640_v28  ;;  %v1615_v30 = vsel %vm1614_vm12, %v1613_v18, %v4591_v44  ;;  %v1724_v46 = vrot.slane %v4607_v55, 4 }
 0x3c0   : > { %v1556_v19 = vmul.f32 %v1550_v7, %v1547_v51  ;;  %v1552_v63 = vsel %vm639_vm9, %v1550_v7, %v4593_v45  ;;  %vm1862_vm12 = vcmask 392192  }
 0x3c1   : > { %v1555_v59 = vmul.f32 %v4646_v8, %v1552_v63  ;;  %v1787_v63 = vrot.slane %v4609_v56, 4 }
 0x3c2   : > { %1461 = vrot.lane.b32.xlu1 %v1456_v0, %s4175_s22  ;;  %v1529_v0 = vrot.slane %v4579_v35, %v4640_v28  ;;  %v1515_v35 = vsel %vm554_vm0, %v1514_v2, %v4589_v41  ;;  %v1684_v41 = vld [vmem:[#allocation3 + $0x8] sm:$0xf] }
 0x3c3   : > { %2121 = vrot.lane.b32.xlu0 %v2117_v29, %s4176_s18  ;;  %v1455_v29 = vmul.f32 %v1453_v23, %v1442_v39  ;;  %v1518_v51 = vmul.f32 %v4646_v8, %v1515_v35  ;;  %v1629_v23 = vrot.slane %v4587_v13, %v4640_v28  ;;  %v1687_v13 = vrot.slane %v4603_v53, 4 }
 0x3c4   : > { %v1532_v9 = vmul.f32 %v1529_v0, %v1519_v26  ;;  %v1647_v26 = vld [vmem:[#allocation3 + $0x8] sm:$0xf]  ;;  %v1568_v7 = vmul.f32 %v1566_v52, %v1555_v59  ;;  %v1652_v35 = vsel %vm1651_vm14, %v1650_v38, %v4601_v48  ;;  %v1803_v59 = vrot.slane %v4605_v54, %v4640_v28 }
 0x3c5   : > { %v1656_v2 = vmul.f32 %v1650_v38, %v1647_v26  ;;  %v1693_v45 = vmul.f32 %v1687_v13, %v1684_v41  ;;  %v1824_v41 = vrot.slane %v4615_v60, 4  ;;  %v1861_v54 = vrot.slane %v4619_v62, 4 }
 0x3c6   : > { %1501 = vrot.lane.b32.xlu1 %v1496_v22, %s4177_s19  ;;  %v1619_v22 = vmul.f32 %v1613_v18, %v4664_v31  ;;  %v1531_v31 = vmul.f32 %v1529_v0, %v1518_v51  ;;  %v1618_v0 = vmul.f32 %v4646_v8, %v1615_v30  ;;  %v1689_v51 = vsel %vm1093_vm13, %v1687_v13, %v4603_v53  ;;  %v1858_v30 = vld [vmem:[#allocation3 + $0x8] sm:$0xf] }
 0x3c7   : > { %2207 = vperm.xlu0 %4035, %v2204_v32   ;;  %v1569_v32 = vmul.f32 %v1566_v52, %v1556_v19  ;;  %v1721_v19 = vld [vmem:[#allocation3 + $0x8] sm:$0xf]  ;;  %v1655_v52 = vmul.f32 %v4646_v8, %v1652_v35  ;;  %v1692_v38 = vmul.f32 %v4646_v8, %v1689_v51  ;;  %vm1825_vm13 = vcmask 293888  }
 0x3c8   : > { %v1632_v39 = vmul.f32 %v1629_v23, %v1619_v22  ;;  %v1730_v18 = vmul.f32 %v1724_v46, %v1721_v19  ;;  %v1631_v22 = vmul.f32 %v1629_v23, %v1618_v0  ;;  %vm1962_vm14 = vcmask 416768  }
 0x3c9   : > { %v1668_v23 = vmul.f32 %v1666_v34, %v1655_v52  ;;  %v1914_v52 = vrot.slane %v4617_v61, %v4640_v28 }
 0x3ca   : > { %1537 = vrot.lane.b32.xlu1 %v1532_v9, %s5276_s30  ;;  %v1669_v9 = vmul.f32 %v1666_v34, %v1656_v2 }
 0x3cb   : > { %1459 = vrot.lane.b32.xlu0 %v1455_v29, %s4175_s22  ;;  %v1703_v29 = vrot.slane %v4595_v40, %v4640_v28  ;;  %s4179_s22 = smov 108   ;;  %v5294_v40 = vrot.slane %v4570_v33, 4 }
 0x3cd   : > { %v1706_v44 = vmul.f32 %v1703_v29, %v1693_v45  ;;  %v1705_v53 = vmul.f32 %v1703_v29, %v1692_v38  ;;  %v1826_v45 = vsel %vm1825_vm13, %v1824_v41, %v4615_v60  ;;  %v1895_v29 = vld [vmem:[#allocation3 + $0x8] sm:$0xf]  ;;  %v1977_v38 = vrot.slane %v4625_v1, %v4640_v28 }
 0x3ce   : > { %1574 = vrot.lane.b32.xlu1 %v1569_v32, %s5274_s27  ;;  %v1740_v32 = vrot.slane %v4599_v47, %v4640_v28  ;;  %v1726_v47 = vsel %vm1725_vm10, %v1724_v46, %v4607_v55  ;;  %v1789_v55 = vsel %vm1788_vm11, %v1787_v63, %v4609_v56  ;;  %v1867_v56 = vmul.f32 %v1861_v54, %v1858_v30 }
 0x3cf   : > { %1499 = vrot.lane.b32.xlu0 %v1495_v12, %s4177_s19  ;;  %v1373_v12 = vsel %vm1372_vm2, %v5294_v40, %v4570_v33  ;;  %v1793_v33 = vmul.f32 %v1787_v63, %v4678_v6  ;;  %v1729_v2 = vmul.f32 %v4646_v8, %v1726_v47  ;;  %s4180_s19 = smov 93   ;;  %v1829_v19 = vmul.f32 %v4646_v8, %v1826_v45  ;;  %v2143_v47 = vpop.permute.xlu1 %2142  ;;  %v2180_v45 = vpop.permute.xlu0 %2179 }
 0x3d0   : > { %v1743_v26 = vmul.f32 %v1740_v32, %v1730_v18  ;;  %v1376_v48 = vmul.f32 %v4646_v8, %v1373_v12  ;;  %v1877_v46 = vrot.slane %v4613_v58, %v4640_v28  ;;  %v1961_v58 = vrot.slane %v4628_v10, 4  ;;  %v1932_v12 = vld [vmem:[#allocation3 + $0x8] sm:$0xf] }
 0x3d1   : > { %v1806_v34 = vmul.f32 %v1803_v59, %v1793_v33  ;;  %v1742_v13 = vmul.f32 %v1740_v32, %v1729_v2  ;;  %vm1999_vm2 = vcmask 424960   ;;  %v1945_v51 = vmul.f32 %v4695_v50, %v1932_v12  ;;  %v2032_v50 = vld [vmem:[#allocation3 + $0x8] sm:$0xf] }
 0x3d2   : > { %1637 = vrot.lane.b32.xlu1 %v1632_v39, %s4178_s16  ;;  %v1389_v39 = vmul.f32 %v4690_v4, %v1376_v48  ;;  %v1792_v4 = vmul.f32 %v4646_v8, %v1789_v55  ;;  %v1880_v35 = vmul.f32 %v1877_v46, %v1867_v56  ;;  %v1967_v61 = vmul.f32 %v1961_v58, %v1932_v12  ;;  %v2168_v56 = vld [vmem:[#allocation3 + $0x8] sm:$0xf] }
 0x3d3   : > { %1535 = vrot.lane.b32.xlu0 %v1531_v31, %s5276_s30  ;;  %v1821_v31 = vld [vmem:[#allocation3 + $0x8] sm:$0xf]  ;;  %v2014_v2 = vrot.slane %v4623_v20, %v4640_v28  ;;  %v5297_v1 = vrot.slane %v4637_v16, 4  ;;  %vm2135_vm10 = vcmask 547840   ;;  %v2150_v30 = vrot.slane %v2143_v47, %v4640_v28  ;;  %s5309_s30 = smov 112  }
 0x3d4   : > { %v1830_v6 = vmul.f32 %v1824_v41, %v1821_v31  ;;  %v1805_v0 = vmul.f32 %v1803_v59, %v1792_v4  ;;  %v2133_v59 = vpop.permute.xlu1 %2132  ;;  %v2068_v41 = vld [vmem:[#allocation3 + $0x8] sm:$0xf]  ;;  %vm2172_vm11 = vcmask 556032   ;;  %vm1466_vm13 = vcmask 1022976  }
 0x3d5   : > { %v2134_v4 = vrot.slane %v2133_v59, 4  ;;  %v2105_v20 = vld [vmem:[#allocation3 + $0x8] sm:$0xf] }
 0x3d6   : > { %1674 = vrot.lane.b32.xlu1 %v1669_v9, %s4179_s22  ;;  %v1840_v9 = vrot.slane %v4611_v57, %v4640_v28  ;;  %v1863_v57 = vsel %vm1862_vm12, %v1861_v54, %v4619_v62  ;;  %v1998_v62 = vrot.slane %v4632_v14, 4  ;;  %vm1506_vm12 = vcmask 1014784  }
 0x3d7   : > { %1572 = vrot.lane.b32.xlu0 %v1568_v7, %s5274_s27  ;;  %v2140_v54 = vmul.f32 %v2134_v4, %v2105_v20 }
 0x3d8   : > { %v1843_v7 = vmul.f32 %v1840_v9, %v1830_v6  ;;  %v1842_v60 = vmul.f32 %v1840_v9, %v1829_v19  ;;  %v2000_v63 = vsel %vm1999_vm2, %v1998_v62, %v4632_v14  ;;  %v2041_v14 = vmul.f32 %v5297_v1, %v2032_v50  ;;  %v2170_v16 = vpop.permute.xlu1 %2169 }
 0x3d9   : > { %v2136_v9 = vsel %vm2135_vm10, %v2134_v4, %v2133_v59  ;;  %v1349_v1 = vmul.f32 %v4646_v8, %v4522_v37  ;;  %vm1679_vm2 = vcmask 883712   ;;  %vm5299_vm10 = vcmask 777216  }
 0x3da   : > { %1711 = vrot.lane.b32.xlu1 %v1706_v44, %s5293_s29  ;;  %v5296_v44 = vrot.slane %v4621_v49, 4  ;;  %v1963_v49 = vsel %vm1962_vm14, %v1961_v58, %v4628_v10  ;;  %v2003_v10 = vmul.f32 %v4646_v8, %v2000_v63  ;;  %v2054_v55 = vmul.f32 %v4644_v3, %v2041_v14 }
 0x3db   : > { %1635 = vrot.lane.b32.xlu0 %v1631_v22, %s4178_s16  ;;  %s4181_s16 = smov 92   ;;  %v1866_v22 = vmul.f32 %v4646_v8, %v1863_v57  ;;  %v1966_v48 = vmul.f32 %v4646_v8, %v1963_v49  ;;  %v2171_v3 = vrot.slane %v2170_v16, 4  ;;  %vm1642_vm14 = vcmask 891904  }
 0x3dc   : > { %v1904_v18 = vmul.f32 %v5296_v44, %v1895_v29  ;;  %v2016_v31 = vmul.f32 %v2014_v2, %v2003_v10 }
 0x3dd   : > { %v1879_v40 = vmul.f32 %v1877_v46, %v1866_v22  ;;  %v2177_v19 = vmul.f32 %v2171_v3, %v2168_v56 }
 0x3de   : > { %1748 = vrot.lane.b32.xlu1 %v1743_v26, %s5295_s14  ;;  %v1917_v32 = vmul.f32 %v1914_v52, %v1904_v18  ;;  %v1995_v26 = vld [vmem:[#allocation3 + $0x8] sm:$0xf]  ;;  %v2225_v18 = vsel %vm687_vm1, %v4557_v21, 0.0 }
 0x3df   : > { %1672 = vrot.lane.b32.xlu0 %v1668_v23, %s4179_s22  ;;  %s4182_s22 = smov 80   ;;  %v1916_v23 = vmul.f32 %v1914_v52, %v4719_v11  ;;  %v2004_v33 = vmul.f32 %v1998_v62, %v1995_v26 }
 0x3e1   : > { %v2017_v11 = vmul.f32 %v2014_v2, %v2004_v33 }
 0x3e2   : > { %1393 = vrot.lane.b32.xlu1 %v1389_v39, %s4125_s24  ;;  %v1980_v39 = vmul.f32 %v1977_v38, %v1967_v61 }
 0x3e3   : > { %1709 = vrot.lane.b32.xlu0 %v1705_v53, %s5293_s29  ;;  %v1979_v53 = vmul.f32 %v1977_v38, %v1966_v48 }
 0x3e6   : > { %1811 = vrot.lane.b32.xlu1 %v1806_v34, %s4180_s19  ;;  %v5298_v34 = vrot.slane %v4653_v5, 4  ;;  %v2118_v5 = vmul.f32 %v4701_v27, %v2105_v20 }
 0x3e7   : > { %1746 = vrot.lane.b32.xlu0 %v1742_v13, %s5295_s14 }
 0x3e8   : > { %v2077_v6 = vmul.f32 %v5298_v34, %v2068_v41 }
 0x3ea   : > { %1848 = vrot.lane.b32.xlu1 %v1843_v7, %s4181_s16  ;;  %v2090_v13 = vmul.f32 %v4658_v25, %v2077_v6  ;;  %v2139_v7 = vmul.f32 %v2136_v9, %v4646_v8  ;;  %v2173_v25 = vsel %vm2172_vm11, %v2171_v3, %v2170_v16  ;;  %vm5300_vm11 = vcmask 769024  }
 0x3eb   : > { %1809 = vrot.lane.b32.xlu0 %v1805_v0, %s4180_s19  ;;  %s4183_s19 = smov 79   ;;  %v2187_v0 = vrot.slane %v2180_v45, %v4640_v28  ;;  %v2176_v57 = vmul.f32 %v2173_v25, %v4646_v8 }
 0x3ec   : > { %v2152_v29 = vmul.f32 %v2150_v30, %v2139_v7 }
 0x3ed   : > { %v2190_v46 = vmul.f32 %v2187_v0, %v2177_v19 }
 0x3ee   : > { %1885 = vrot.lane.b32.xlu1 %v1880_v35, %s4182_s22  ;;  %v1353_v35 = vpop.permute.xlu0 %1352 }
 0x3ef   : > { %1846 = vrot.lane.b32.xlu0 %v1842_v60, %s4181_s16  ;;  %s4184_s16 = smov 77   ;;  %v2226_v60 = vsel %vm687_vm1, %v4559_v24, 0.0  ;;  %v1360_v50 = vrot.slane %v1353_v35, %v4640_v28 }
 0x3f0   : > { %v2227_v58 = vadd.f32 %v2226_v60, %v2225_v18 }
 0x3f2   : > { %1922 = vrot.lane.b32.xlu1 %v1917_v32, %s4183_s19 }
 0x3f3   : > { %1883 = vrot.lane.b32.xlu0 %v1879_v40, %s4182_s22  ;;  %s4186_s22 = smov 63  }
 0x3f6   : > { %1950 = vrot.lane.b32.xlu1 %v1945_v51, %s4174_s23  ;;  %s4185_s23 = smov 76  }
 0x3f7   : > { %1920 = vrot.lane.b32.xlu0 %v1916_v23, %s4183_s19  ;;  %s4188_s19 = smov 60  }
 0x3fa   : > { %1985 = vrot.lane.b32.xlu1 %v1980_v39, %s4184_s16 }
 0x3fb   : > { %1983 = vrot.lane.b32.xlu0 %v1979_v53, %s4184_s16  ;;  %s4190_s16 = smov 120  }
 0x3fe   : > { %2022 = vrot.lane.b32.xlu1 %v2017_v11, %s4185_s23 }
 0x3ff   : > { %2020 = vrot.lane.b32.xlu0 %v2016_v31, %s4185_s23 }
 0x402   : > { %2059 = vrot.lane.b32.xlu1 %v2054_v55, %s4171_s20  ;;  %v1362_v55 = vmul.f32 %v1360_v50, %v1349_v1 }
 0x403   : > { %2057 = vrot.lane.b32.xlu0 %v4661_v36, %s4171_s20  ;;  %v2153_v36 = vmul.f32 %v2150_v30, %v2140_v54  ;;  %s4187_s20 = smov 61  }
 0x406   : > { %2095 = vrot.lane.b32.xlu1 %v2090_v13, %s4186_s22 }
 0x407   : > { %2093 = vrot.lane.b32.xlu0 %v4675_v15, %s4186_s22  ;;  %v2189_v15 = vmul.f32 %v2187_v0, %v2176_v57  ;;  %s5318_s22 = smov 94  }
 0x40a   : > { %2123 = vrot.lane.b32.xlu1 %v2118_v5, %s4176_s18 }
 0x40b   : > { %2158 = vrot.lane.b32.xlu0 %v2153_v36, %s4187_s20 }
 0x40e   : > { %2156 = vrot.lane.b32.xlu1 %v2152_v29, %s4187_s20 }
 0x40f   : > { %2195 = vrot.lane.b32.xlu0 %v2190_v46, %s4188_s19 }
 0x412   : > { %2193 = vrot.lane.b32.xlu1 %v2189_v15, %s4188_s19 }
 0x424   : > { %v1424_v27 = vpop.permute.xlu1 %1423 }
 0x425   : > { %v1422_v22 = vpop.permute.xlu0 %1421  ;;  %v1426_v2 = vrot.slane %v1424_v27, 4 }
 0x426   : > { %v1425_v11 = vrot.slane %v1422_v22, 4 }
 0x428   : > { %v4825_v44 = vpop.permute.xlu1 %1602  ;;  %v1427_v6 = vsel %vm687_vm1, %v1425_v11, %v1426_v2 }
 0x429   : > { %v4833_v32 = vpop.permute.xlu0 %1600  ;;  %v1429_v45 = vsel %vm818_vm3, %v1422_v22, %v1427_v6  ;;  %v1605_v0 = vrot.slane %v4825_v44, 4 }
 0x42a   : > { %v1604_v29 = vrot.slane %v4833_v32, 4 }
 0x42c   : > { %v4831_v52 = vpop.permute.xlu1 %1776 }
 0x42d   : > { %v4835_v62 = vpop.permute.xlu0 %1774 }
 0x42e   : > { %2228 = vadd.xlane.f32.xlu0 %v2227_v58 }
 0x430   : > { %v1396_v40 = vpop.permute.xlu1 %1395 }
 0x431   : > { %v4837_v51 = vpop.permute.xlu0 %1948  ;;  %v1398_v31 = vrot.slane %v1396_v40, 4 }
 0x434   : > { %v1462_v12 = vpop.permute.xlu1 %1461 }
 0x435   : > { %v4839_v48 = vpop.permute.xlu0 %2121  ;;  %v1464_v4 = vrot.slane %v1462_v12, 4  ;;  %v1606_v12 = vsel %vm687_vm1, %v1604_v29, %v1605_v0 }
 0x436   : > { %v1608_v1 = vsel %vm1035_vm6, %v4833_v32, %v1606_v12 }
 0x438   : > { %v1502_v49 = vpop.permute.xlu1 %1501 }
 0x439   : > { %v1504_v9 = vrot.slane %v1502_v49, 4 }
 0x43c   : > { %v1538_v61 = vpop.permute.xlu1 %1537 }
 0x43d   : > { %v1540_v5 = vrot.slane %v1538_v61, 4 }
 0x440   : > { %v1575_v26 = vpop.permute.xlu1 %1574 }
 0x441   : > { %v1577_v46 = vrot.slane %v1575_v26, 4 }
 0x444   : > { %v1638_v23 = vpop.permute.xlu1 %1637 }
 0x445   : > { %v1640_v44 = vrot.slane %v1638_v23, 4 }
 0x446   : > { %v4841_v38 = vpop.permute.xlu0 %2207 }
 0x448   : > { %v4843_v63 = vpop.permute.xlu1 %1674 }
 0x449   : > { %v1677_v50 = vrot.slane %v4843_v63, 4 }
 0x44a   : > { %v1460_v47 = vpop.permute.xlu0 %1459 }
 0x44b   : > { %v1463_v59 = vrot.slane %v1460_v47, 4 }
 0x44c   : > { %v4845_v33 = vpop.permute.xlu1 %1711 }
 0x44d   : > { %v1465_v37 = vsel %vm687_vm1, %v1463_v59, %v1464_v4  ;;  %v1779_v59 = vrot.slane %v4831_v52, 4 }
 0x44e   : > { %v1500_v39 = vpop.permute.xlu0 %1499  ;;  %v1467_v25 = vsel %vm1466_vm13, %v1460_v47, %v1465_v37  ;;  %vm1816_vm13 = vcmask 760832  }
 0x44f   : > { %v1503_v20 = vrot.slane %v1500_v39, 4 }
 0x450   : > { %v4847_v10 = vpop.permute.xlu1 %1748 }
 0x451   : > { %v1505_v7 = vsel %vm687_vm1, %v1503_v20, %v1504_v9 }
 0x452   : > { %v1536_v53 = vpop.permute.xlu0 %1535  ;;  %v1507_v27 = vsel %vm1506_vm12, %v1500_v39, %v1505_v7  ;;  %vm1853_vm12 = vcmask 752640  }
 0x453   : > { %v1539_v8 = vrot.slane %v1536_v53, 4 }
 0x454   : > { %v1394_v14 = vpop.permute.xlu1 %1393 }
 0x455   : > { %v1397_v41 = vrot.slane %v1394_v14, 4  ;;  %v1541_v57 = vsel %vm687_vm1, %v1539_v8, %v1540_v5 }
 0x456   : > { %v1573_v34 = vpop.permute.xlu0 %1572  ;;  %v1543_v58 = vsel %vm896_vm4, %v1536_v53, %v1541_v57 }
 0x457   : > { %v1399_v16 = vsel %vm687_vm1, %v1397_v41, %v1398_v31  ;;  %v1576_v36 = vrot.slane %v1573_v34, 4  ;;  %v1778_v41 = vrot.slane %v4835_v62, 4 }
 0x458   : > { %v1401_v13 = vsel %vm680_vm15, %v1394_v14, %v1399_v16  ;;  %v4855_v30 = vpop.permute.xlu1 %1811  ;;  %v1714_v14 = vrot.slane %v4845_v33, 4 }
 0x459   : > { %v1403_v54 = vadd.f32 %v1401_v13, %v1362_v55  ;;  %v1578_v60 = vsel %vm687_vm1, %v1576_v36, %v1577_v46  ;;  %v1780_v52 = vsel %vm687_vm1, %v1778_v41, %v1779_v59 }
 0x45a   : > { %v1636_v3 = vpop.permute.xlu0 %1635  ;;  %v1580_v47 = vsel %vm957_vm5, %v1573_v34, %v1578_v60  ;;  %v1751_v34 = vrot.slane %v4847_v10, 4  ;;  %v1814_v10 = vrot.slane %v4855_v30, 4  ;;  %v1782_v7 = vsel %vm5300_vm11, %v4835_v62, %v1780_v52 }
 0x45b   : > { %v1431_v56 = vadd.f32 %v1429_v45, %v1403_v54  ;;  %v1639_v22 = vrot.slane %v1636_v3, 4  ;;  %vm1990_vm11 = vcmask 629760  }
 0x45c   : > { %v1849_v19 = vpop.permute.xlu1 %1848 }
 0x45d   : > { %v1469_v15 = vadd.f32 %v1467_v25, %v1431_v56  ;;  %v1641_v2 = vsel %vm687_vm1, %v1639_v22, %v1640_v44  ;;  %v1851_v36 = vrot.slane %v1849_v19, 4  ;;  %v1952_v44 = vrot.slane %v4837_v51, 4 }
 0x45e   : > { %v1673_v35 = vpop.permute.xlu0 %1672  ;;  %v1643_v55 = vsel %vm1642_vm14, %v1636_v3, %v1641_v2  ;;  %vm1890_vm14 = vcmask 654336  }
 0x45f   : > { %v1509_v18 = vadd.f32 %v1507_v27, %v1469_v15  ;;  %v1676_v61 = vrot.slane %v1673_v35, 4 }
 0x460   : > { %v1886_v40 = vpop.permute.xlu1 %1885 }
 0x461   : > { %v1545_v49 = vadd.f32 %v1543_v58, %v1509_v18  ;;  %v1678_v23 = vsel %vm687_vm1, %v1676_v61, %v1677_v50 }
 0x462   : > { %v1710_v26 = vpop.permute.xlu0 %1709  ;;  %v1680_v32 = vsel %vm1679_vm2, %v1673_v35, %v1678_v23  ;;  %v1888_v35 = vrot.slane %v1886_v40, 4  ;;  %vm1927_vm2 = vcmask 646144  }
 0x463   : > { %v1582_v39 = vadd.f32 %v1580_v47, %v1545_v49  ;;  %v1713_v11 = vrot.slane %v1710_v26, 4 }
 0x464   : > { %v1923_v53 = vpop.permute.xlu1 %1922 }
 0x465   : > { %v1610_v31 = vadd.f32 %v1608_v1, %v1582_v39  ;;  %v1715_v4 = vsel %vm687_vm1, %v1713_v11, %v1714_v14  ;;  %v1925_v49 = vrot.slane %v1923_v53, 4 }
 0x466   : > { %v1747_v63 = vpop.permute.xlu0 %1746  ;;  %v1717_v9 = vsel %vm1113_vm7, %v1710_v26, %v1715_v4 }
 0x467   : > { %v1645_v6 = vadd.f32 %v1643_v55, %v1610_v31  ;;  %v1750_v20 = vrot.slane %v1747_v63, 4 }
 0x468   : > { %v1951_v16 = vpop.permute.xlu1 %1950 }
 0x469   : > { %v1682_v13 = vadd.f32 %v1680_v32, %v1645_v6  ;;  %v1752_v33 = vsel %vm687_vm1, %v1750_v20, %v1751_v34  ;;  %v1953_v62 = vrot.slane %v1951_v16, 4 }
 0x46a   : > { %v1810_v37 = vpop.permute.xlu0 %1809  ;;  %v1754_v45 = vsel %vm5299_vm10, %v1747_v63, %v1752_v33  ;;  %vm1955_vm10 = vcmask 637952  }
 0x46b   : > { %v1719_v8 = vadd.f32 %v1717_v9, %v1682_v13  ;;  %v1813_v54 = vrot.slane %v1810_v37, 4  ;;  %v1954_v26 = vsel %vm687_vm1, %v1952_v44, %v1953_v62 }
 0x46c   : > { %v1986_v3 = vpop.permute.xlu1 %1985  ;;  %v1956_v31 = vsel %vm1955_vm10, %v4837_v51, %v1954_v26  ;;  %vm5301_vm10 = vcmask 64512  }
 0x46d   : > { %v1756_v5 = vadd.f32 %v1754_v45, %v1719_v8  ;;  %v1815_v25 = vsel %vm687_vm1, %v1813_v54, %v1814_v10  ;;  %v1988_v23 = vrot.slane %v1986_v3, 4  ;;  %v2125_v54 = vrot.slane %v4839_v48, 4 }
 0x46e   : > { %v1847_v56 = vpop.permute.xlu0 %1846  ;;  %v1817_v15 = vsel %vm1816_vm13, %v1810_v37, %v1815_v25  ;;  %vm2027_vm13 = vcmask 621568  }
 0x46f   : > { %v1784_v0 = vadd.f32 %v1782_v7, %v1756_v5  ;;  %v1850_v29 = vrot.slane %v1847_v56, 4 }
 0x470   : > { %v2023_v46 = vpop.permute.xlu1 %2022 }
 0x471   : > { %v1852_v57 = vsel %vm687_vm1, %v1850_v29, %v1851_v36  ;;  %v1819_v18 = vadd.f32 %v1817_v15, %v1784_v0  ;;  %v2025_v55 = vrot.slane %v2023_v46, 4 }
 0x472   : > { %v1884_v27 = vpop.permute.xlu0 %1883  ;;  %v1854_v60 = vsel %vm1853_vm12, %v1847_v56, %v1852_v57  ;;  %vm2100_vm12 = vcmask 515072  }
 0x473   : > { %v1887_v30 = vrot.slane %v1884_v27, 4  ;;  %v1856_v61 = vadd.f32 %v1854_v60, %v1819_v18 }
 0x474   : > { %v2060_v22 = vpop.permute.xlu1 %2059 }
 0x475   : > { %v1889_v58 = vsel %vm687_vm1, %v1887_v30, %v1888_v35  ;;  %v2062_v32 = vrot.slane %v2060_v22, 4 }
 0x476   : > { %v1891_v19 = vsel %vm1890_vm14, %v1884_v27, %v1889_v58  ;;  %v1921_v12 = vpop.permute.xlu0 %1920  ;;  %vm2128_vm14 = vcmask 506880  }
 0x477   : > { %v1924_v47 = vrot.slane %v1921_v12, 4  ;;  %v1893_v50 = vadd.f32 %v1891_v19, %v1856_v61 }
 0x478   : > { %v2096_v2 = vpop.permute.xlu1 %2095 }
 0x479   : > { %v1926_v40 = vsel %vm687_vm1, %v1924_v47, %v1925_v49  ;;  %v2098_v45 = vrot.slane %v2096_v2, 4 }
 0x47a   : > { %v1928_v39 = vsel %vm1927_vm2, %v1921_v12, %v1926_v40  ;;  %v1984_v11 = vpop.permute.xlu0 %1983  ;;  %vm2163_vm2 = vcmask 498688   ;;  %v2215_v12 = vrot.slane %v4841_v38, %v4640_v28  ;;  %v2245_v28 = vld [vmem:[%s5240_s9] sm:$0xff] }
 0x47b   : > { %v1930_v1 = vadd.f32 %v1928_v39, %v1893_v50  ;;  %v1987_v14 = vrot.slane %v1984_v11, 4  ;;  %3844 = vmatprep.mubr.msk.f32.mxu0 %vm5301_vm10, %v2245_v28 }
 0x47c   : > { %v2124_v34 = vpop.permute.xlu1 %2123 }
 0x47d   : > { %v1958_v59 = vadd.f32 %v1956_v31, %v1930_v1  ;;  %v1989_v53 = vsel %vm687_vm1, %v1987_v14, %v1988_v23  ;;  %v2126_v9 = vrot.slane %v2124_v34, 4 }
 0x47e   : > { %v2021_v41 = vpop.permute.xlu0 %2020  ;;  %v1991_v4 = vsel %vm1990_vm11, %v1984_v11, %v1989_v53  ;;  %vm5302_vm11 = vmmov %vm5301_vm10  ;;  %v2330_v53 = vld [vmem:[%s5241_s10] sm:$0xff]  ;;  %vm2535_vm10 = vcmask 1043594  }
 0x47f   : > { %v2024_v63 = vrot.slane %v2021_v41, 4  ;;  %v1993_v33 = vadd.f32 %v1991_v4, %v1958_v59  ;;  %v2127_v5 = vsel %vm687_vm1, %v2125_v54, %v2126_v9  ;;  %3851 = vmatprep.mubr.msk.f32.mxu1 %vm554_vm0, %v2330_v53  ;;  %v2334_v9 = vld [vmem:[%s5242_s11] sm:$0xff] }
 0x480   : > { %v2157_v37 = vpop.permute.xlu1 %2156  ;;  %v2129_v15 = vsel %vm2128_vm14, %v4839_v48, %v2127_v5  ;;  %vm2504_vm14 = vcmask 1045508  }
 0x481   : > { %v2026_v6 = vsel %vm687_vm1, %v2024_v63, %v2025_v55  ;;  %v2160_v25 = vrot.slane %v2157_v37, 4  ;;  %v5303_v55 = vmov 0  }
 0x482   : > { %v2058_v20 = vpop.permute.xlu0 %2057  ;;  %v2028_v13 = vsel %vm2027_vm13, %v2021_v41, %v2026_v6  ;;  %v2246_v41 = vld [vmem:[%s5240_s9 + $0x8] sm:$0xff]  ;;  %vm2473_vm13 = vcmask 3072  }
 0x483   : > { %v2061_v16 = vrot.slane %v2058_v20, 4  ;;  %v2030_v3 = vadd.f32 %v2028_v13, %v1993_v33  ;;  %v2331_v13 = vld [vmem:[%s5241_s10 + $0x8] sm:$0xff] }
 0x484   : > { %v2194_v57 = vpop.permute.xlu1 %2193 }
 0x485   : > { %v2063_v51 = vsel %vm687_vm1, %v2061_v16, %v2062_v32  ;;  %v2197_v60 = vrot.slane %v2194_v57, 4  ;;  %v629_v32 = vpack.c.bf16 %v4319_v42, %v4319_v42  ;;  %v630_v16 = vpack.c.bf16 %v4321_v43, %v4321_v43  ;;  %v2332_v42 = vld [vmem:[%s5241_s10 + $0x10] sm:$0xff]  ;;  %v2333_v43 = vld [vmem:[%s5241_s10 + $0x18] sm:$0x1f] }
 0x486   : > { %v2064_v52 = vsel %vm2036_vm8, %v2058_v20, %v2063_v51  ;;  %v2094_v8 = vpop.permute.xlu0 %2093  ;;  %vm2200_vm8 = vcmask 490496  }
 0x487   : > { %v2097_v10 = vrot.slane %v2094_v8, 4  ;;  %v2066_v7 = vadd.f32 %v2064_v52, %v2030_v3  ;;  %v3398_v33 = vsel %vm687_vm1, %v629_v32, 0 }
 0x489   : > { %v2099_v56 = vsel %vm687_vm1, %v2097_v10, %v2098_v45  ;;  %v2337_v10 = vld [vmem:[%s5242_s11 + $0x18] sm:$0x1f] }
 0x48a   : > { %v2101_v36 = vsel %vm2100_vm12, %v2094_v8, %v2099_v56  ;;  %v2159_v0 = vpop.permute.xlu0 %2158  ;;  %vm2503_vm12 = vcmask 1041544  }
 0x48b   : > { %v2103_v29 = vadd.f32 %v2101_v36, %v2066_v7  ;;  %v2161_v46 = vrot.slane %v2159_v0, 4 }
 0x48d   : > { %v2131_v27 = vadd.f32 %v2129_v15, %v2103_v29  ;;  %v2162_v35 = vsel %vm687_vm1, %v2160_v25, %v2161_v46 }
 0x48e   : > { %v2164_v18 = vsel %vm2163_vm2, %v2157_v37, %v2162_v35  ;;  %v2196_v30 = vpop.permute.xlu0 %2195  ;;  %vm2507_vm2 = vcmask 132096  }
 0x48f   : > { %v2198_v22 = vrot.slane %v2196_v30, 4  ;;  %v2166_v62 = vadd.f32 %v2164_v18, %v2131_v27  ;;  %v4189_v27 = vmov 1985246804  }
 0x490   : > { %v2510_v35 = vunpack.c.l.s4 %v4189_v27 }
 0x491   : > { %v2199_v58 = vsel %vm687_vm1, %v2197_v60, %v2198_v22 }
 0x492   : > { %v2201_v19 = vsel %vm2200_vm8, %v2194_v57, %v2199_v58  ;;  %v2511_v30 = vunpack.c.0.s8 %v2510_v35  ;;  %v3806_v35 = vld [vmem:[%s5243_s12 + $0x68] ss:$36 sps:$4 sm:$0xff]   ;;  %vm2505_vm8 = vmor %vm2504_vm14, %vm2503_vm12  ;;  %vm5329_vm14 = vcmask 777216  }
 0x493   : > { %v2203_v44 = vadd.f32 %v2201_v19, %v2166_v62 }
 0x494   : > { %v2514_v60 = vsub.s32 %v2511_v30, %v4635_v17  ;;  %v2336_v17 = vld [vmem:[%s5242_s11 + $0x10] sm:$0xff] }
 0x495   : > { %v2217_v49 = vadd.f32 %v2215_v12, %v2203_v44 }
 0x497   : > { %v3727_v61 = vmul.f32 -1.442695, %v2217_v49 }
 0x499   : > { %4061 = vpow2.f32 %v3727_v61 }
 0x4a3   : > { %v4062_v48 = vpop.eup %4061 }
 0x4a4   : > { %v2221_v47 = vadd.f32 1.0, %v4062_v48 }
 0x4a6   : > { %4063 = vrcp.f32 %v2221_v47 }
 0x4b0   : > { %v4064_v26 = vpop.eup %4063 }
 0x4b1   : > { %v4903_v50 = vmul.f32 %v4064_v26, %v2217_v49 }
 0x4b3   : > { %v2233_v40 = vcombine.high %v4903_v50, %v4903_v50  ;;  %v2235_v39 = vsel %vm687_vm1, %v4903_v50, 0.0 }
 0x4b5   : > { %v2236_v2 = vsel %vm687_vm1, %v2233_v40, 0.0 }
 0x4b6   : > { %v2237_v11 = vadd.f32 %v2236_v2, %v2235_v39 }
 0x4b8   : > { %2238 = vadd.xlane.f32.xlu1 %v2237_v11 }
 0x4bb   : > { %v2229_v38 = vpop.xlane.xlu0 %2228 }
 0x4bc   : > { %v2231_v31 = vmul.f32 0.00390625, %v2229_v38 }
 0x545   : > { %v2239_v1 = vpop.xlane.xlu1 %2238 }
 0x546   : > { %v2240_v14 = vmul.f32 0.00390625, %v2239_v1 }
 0x548   : > { %v2242_v23 = vrot.slane %v2240_v14, 4 }
 0x54a   : > { %v2244_v59 = vsel %vm687_vm1, %v2231_v31, %v2242_v23 }
 0x54b   : > { %3842 = vmatprep.subr.mxu0 %v2244_v59 }
 0x54c   : > { %3843 = vmatpush3.msra.mxu0 %v2244_v59 }
 0x54d   : > { %3845 = vmatmul.mubr.msk.f32.vlgmr.msra.gmra.mrb[8].mxu0 %vm5302_vm11, %v2246_v41  ;;  %vm2536_vm11 = vcmask 1047558  }
 0x54e   : > { %2667 = vmatprep.mubr.bf16.mxu0 %v5303_v55 }
 0x620   : > { %v3846_v63 = vpop.f32.mrb[8].mxu0 }
 0x621   : > { %v2329_v34 = vmax.f32 %v3846_v63, 0.0  ;;  %v2319_v6 = vpop.f32.mrb[9].mxu0 }
 0x622   : > { %v2328_v4 = vmax.f32 %v2319_v6, 0.0 }
 0x624   : > { %v3857_v20 = vpack.c.bf16 %v2329_v34, %v2328_v4 }
 0x626   : > { %3858 = vmatprep.subr.bf16.mxu1 %v3857_v20 }
 0x627   : > { %3860 = vmatpush3.bf16.msra.mxu1 %v3857_v20 }
 0x628   : > { %3814 = vmatprep.subr.msk.bf16.mxu1 %vm687_vm1, %v630_v16 }
 0x62a   : > { %3852 = vmatmul.mubr.msk.f32.vlgmr.msra.gmra.mrb[32].mxu1 %vm554_vm0, %v2331_v13 }
 0x62b   : > { %3404 = vmatpush1.bf16.msra.mxu1 %v3398_v33  ;;  %3854 = vmatprep.mubr.msk.f32.mxu1 %vm554_vm0, %v2332_v42 }
 0x62e   : > { %3855 = vmatmul.mubr.msk.f32.gmra.mrb[34].mxu1 %vm554_vm0, %v2333_v43  ;;  %vm2459_vm0 = vcmask 4097  }
 0x62f   : > { %3435 = vmatprep.mubr.bf16.mxu1 %v5303_v55 }
 0x6fd   : > { %v4946_v51 = vpop.f32.mrb[32].mxu1 }
 0x6fe   : > { %v2416_v37 = vpop.f32.mrb[33].mxu1 }
 0x6ff   : > { %v2417_v52 = vadd.f32 %v2416_v37, %v2334_v9 }
 0x701   : > { %v3734_v8 = vmul.f32 -1.442695, %v2417_v52  ;;  %v3856_v5 = vpop.f32.mrb[34].mxu1 }
 0x702   : > { %v2432_v7 = vadd.f32 %v3856_v5, %v2337_v10  ;;  %v2426_v12 = vpop.f32.mrb[35].mxu1  ;;  %v3800_v5 = vld [vmem:[%s5243_s12 + $0x64] ss:$36 sps:$4 sm:$0xff]  }
 0x703   : > { %4065 = vpow2.f32 %v3734_v8  ;;  %v3789_v8 = vld [vmem:[%s5243_s12 + $0x18] ss:$36 sps:$4 sm:$0xff]   ;;  %v3207_v27 = vunpack.c.l.bf16 %v3800_v5 }
 0x704   : > { %v2460_v56 = vsel %vm2459_vm0, %v2432_v7, -inf  ;;  %v3737_v28 = vmul.f32 -1.442695, %v2432_v7  ;;  %v3109_v10 = vunpack.c.h.bf16 %v3789_v8  ;;  %vm2539_vm0 = vcmask 134146  }
 0x705   : > { %v2461_v36 = vrot.slane %v2460_v56, 4 }
 0x707   : > { %v2462_v0 = vmax.f32 %v2460_v56, %v2461_v36 }
 0x709   : > { %v2463_v25 = vrot.slane %v2462_v0, 2 }
 0x70b   : > { %v2464_v29 = vmax.f32 %v2462_v0, %v2463_v25 }
 0x70d   : > { %v4066_v54 = vpop.eup %4065  ;;  %v2465_v46 = vrot.slane %v2464_v29, 1 }
 0x70e   : > { %v2438_v45 = vadd.f32 1.0, %v4066_v54  ;;  %v3791_v54 = vld [vmem:[%s5243_s12 + $0x60] ss:$36 sps:$4 sm:$0xff]  }
 0x70f   : > { %v2466_v57 = vmax.f32 %v2464_v29, %v2465_v46  ;;  %v3114_v36 = vunpack.c.l.bf16 %v3791_v54  ;;  %v3119_v25 = vunpack.c.h.bf16 %v3791_v54  ;;  %v3804_v46 = vld [vmem:[%s5243_s12 + $0x20] ss:$36 sps:$4 sm:$0xff]  }
 0x710   : > { %4067 = vrcp.f32 %v2438_v45  ;;  %v3798_v45 = vld [vmem:[%s5243_s12 + $0x1c] ss:$36 sps:$4 sm:$0xff]  }
 0x711   : > { %v2467_v15 = vsub.f32 %v2432_v7, %v2466_v57  ;;  %v3198_v29 = vunpack.c.l.bf16 %v3798_v45 }
 0x713   : > { %v2468_v18 = vmul.f32 1.442695, %v2467_v15  ;;  %v3202_v15 = vunpack.c.h.bf16 %v3798_v45 }
 0x715   : > { %4069 = vpow2.f32 %v2468_v18 }
 0x71a   : > { %v4068_v3 = vpop.eup %4067 }
 0x71b   : > { %2485 = vperm.xlu0 %4035, %v4068_v3   ;;  %v3105_v3 = vunpack.c.l.bf16 %v3789_v8 }
 0x71f   : > { %v4070_v61 = vpop.eup %4069 }
 0x720   : > { %v2471_v26 = vrot.slane %v4070_v61, 1 }
 0x79a   : > { %v2486_v22 = vpop.permute.xlu0 %2485 }
 0x79b   : > { %v2488_v62 = vmul.f32 %v2486_v22, %v4557_v21  ;;  %v2489_v58 = vmul.f32 %v2486_v22, %v4559_v24  ;;  %v2515_v19 = vrot.slane %v2486_v22, %v2514_v60  ;;  %v2427_v21 = vadd.f32 %v2426_v12, %v2336_v17 }
 0x79c   : > { %v2474_v24 = vsel %vm2473_vm13, %v2471_v26, 0.0  ;;  %v3212_v22 = vunpack.c.h.bf16 %v3800_v5  ;;  %vm2537_vm13 = vmor %vm2536_vm11, %vm2535_vm10  ;;  %v2335_v5 = vld [vmem:[%s5242_s11 + $0x8] sm:$0xff] }
 0x79d   : > { %v3831_v44 = vpack.c.bf16 %v2489_v58, %v2488_v62  ;;  %v2517_v49 = vmul.f32 %v2515_v19, %v4903_v50  ;;  %v2475_v39 = vrot.slane %v2474_v24, 4  ;;  %v3736_v2 = vmul.f32 -1.442695, %v2427_v21 }
 0x79e   : > { %v3285_v62 = vunpack.c.l.bf16 %v3804_v46  ;;  %v3289_v58 = vunpack.c.h.bf16 %v3804_v46 }
 0x79f   : > { %v2519_v48 = vcombine.high %v2517_v49, %v2517_v49  ;;  %2497 = vrot.lane.b32.xlu1 %v3831_v44, %s4122_s21  ;;  %v2476_v11 = vadd.f32 %v2475_v39, %v2474_v24  ;;  %4071 = vpow2.f32 %v3736_v2 }
 0x7a0   : > { %4073 = vpow2.f32 %v3737_v28 }
 0x7a1   : > { %v3832_v47 = vpack.c.bf16 %v2519_v48, %v2517_v49  ;;  %v2477_v50 = vrot.slane %v2476_v11, 2  ;;  %v3294_v49 = vunpack.c.l.bf16 %v3806_v35 }
 0x7a3   : > { %v2528_v40 = vrot.slane %v3832_v47, 6  ;;  %v2478_v38 = vadd.f32 %v2477_v50, %v2476_v11  ;;  %v3299_v47 = vunpack.c.h.bf16 %v3806_v35 }
 0x7a5   : > { %2529 = vrot.lane.b32.xlu1 %v2528_v40, %s4122_s21  ;;  %v2479_v14 = vrot.slane %v2478_v38, 1 }
 0x7a7   : > { %v2480_v31 = vadd.f32 %v2479_v14, %v2478_v38 }
 0x7a9   : > { %v4072_v1 = vpop.eup %4071  ;;  %4075 = vrcp.f32 %v2480_v31 }
 0x7aa   : > { %v2453_v23 = vadd.f32 1.0, %v4072_v1  ;;  %v4074_v59 = vpop.eup %4073 }
 0x7ab   : > { %v2454_v53 = vadd.f32 1.0, %v4074_v59 }
 0x7ac   : > { %4077 = vrcp.f32 %v2453_v23 }
 0x7ad   : > { %4079 = vrcp.f32 %v2454_v53 }
 0x7b3   : > { %v4076_v41 = vpop.eup %4075 }
 0x7b4   : > { %v2482_v63 = vmul.f32 %v4076_v41, %v4070_v61 }
 0x7b6   : > { %v4078_v34 = vpop.eup %4077  ;;  %v2546_v6 = vrot.slane %v2482_v63, 1  ;;  %v2554_v4 = vrot.slane %v2482_v63, 2  ;;  %v2563_v20 = vrot.slane %v2482_v63, 3  ;;  %v2572_v32 = vrot.slane %v2482_v63, 4 }
 0x7b7   : > { %v2604_v16 = vrot.slane %v4078_v34, 1  ;;  %v2752_v13 = vrot.slane %v4078_v34, 2  ;;  %v2847_v33 = vrot.slane %v4078_v34, 3  ;;  %v2940_v42 = vrot.slane %v4078_v34, 4  ;;  %v4080_v52 = vpop.eup %4079 }
 0x7b8   : > { %3901 = vpush %v2546_v6  ;;  %v3027_v43 = vrot.slane %v4078_v34, 5  ;;  %v3122_v9 = vrot.slane %v4078_v34, 6  ;;  %v3215_v37 = vrot.slane %v4078_v34, 7 }
 0x7b9   : > { %3903 = vpush %v2554_v4 }
 0x7ba   : > { %3905 = vpush %v2563_v20  ;;  %v5304_v20 = vld [vmem:[#allocation9_spill] sm:$0xff] }
 0x7bb   : > { %3907 = vpush %v2572_v32 }
 0x7bc   : > { %3909 = vpush %v4078_v34 }
 0x7bd   : > { %3911 = vpush %v2604_v16 }
 0x7be   : > { %3913 = vpush %v2752_v13 }
 0x7bf   : > { %3915 = vpush %v2847_v33 }
 0x7c0   : > { %3917 = vpush %v2940_v42  ;;  %v5305_v42 = vld [vmem:[#allocation7_spill] sm:$0xff] }
 0x7c1   : > { %3919 = vpush %v3027_v43 }
 0x7c2   : > { %3921 = vpush %v3122_v9 }
 0x7c3   : > { %3923 = vpush %v3215_v37 }
 0x7c4   : > { %3925 = vpush %v4080_v52  ;;  %v5307_v52 = vld [vmem:[#allocation10_spill] sm:$0xff] }
 0x7e9   : > { %s3902_s21 = spop %3901 }
 0x7ea   : > { %s3904_s23 = spop %3903  ;;  %v4972_v7 = vstv %s3902_s21 }
 0x7eb   : > { %s3906_s19 = spop %3905  ;;  %v4974_v56 = vstv %s3904_s23  ;;  %v3106_v18 = vmul.f32 %v3105_v3, %v4972_v7  ;;  %v3199_v44 = vmul.f32 %v3198_v29, %v4972_v7  ;;  %v3286_v21 = vmul.f32 %v3285_v62, %v4972_v7  ;;  %v5308_v3 = vld [vmem:[#allocation8_spill] sm:$0xff]  ;;  %v5311_v29 = vld [vmem:[#allocation13_spill] sm:$0xff]  ;;  %s5314_s23 = smov 110  }
 0x7ec   : > { %s3908_s27 = spop %3907  ;;  %v4976_v0 = vstv %s3906_s19  ;;  %v3110_v30 = vmul.f32 %v3109_v10, %v4974_v56  ;;  %v3203_v61 = vmul.f32 %v3202_v15, %v4974_v56  ;;  %v3290_v24 = vmul.f32 %v3289_v58, %v4974_v56  ;;  %v5315_v58 = vld [vmem:[#allocation12_spill] sm:$0xff] }
 0x7ed   : > { %v4981_v57 = vstv %s3908_s27  ;;  %v3115_v60 = vmul.f32 %v3114_v36, %v4976_v0  ;;  %v3208_v48 = vmul.f32 %v3207_v27, %v4976_v0  ;;  %v3295_v2 = vmul.f32 %v3294_v49, %v4976_v0  ;;  %s5306_s27 = smov 126  }
 0x7ee   : > { %v3111_v19 = vadd.f32 %v3110_v30, %v3106_v18  ;;  %v3120_v12 = vmul.f32 %v3119_v25, %v4981_v57  ;;  %v3204_v17 = vadd.f32 %v3203_v61, %v3199_v44  ;;  %v3213_v40 = vmul.f32 %v3212_v22, %v4981_v57  ;;  %v5312_v18 = vld [vmem:[#allocation14_spill] sm:$0xff]  ;;  %v5316_v61 = vld [vmem:[#allocation16_spill] sm:$0xff] }
 0x7ef   : > { %v3291_v50 = vadd.f32 %v3290_v24, %v3286_v21  ;;  %v3300_v28 = vmul.f32 %v3299_v47, %v4981_v57  ;;  %v2422_v25 = vadd.f32 %v4946_v51, %v2335_v5 }
 0x7f0   : > { %v3116_v26 = vadd.f32 %v3115_v60, %v3111_v19  ;;  %v3209_v11 = vadd.f32 %v3208_v48, %v3204_v17  ;;  %v5313_v60 = vld [vmem:[#allocation11_spill] sm:$0xff] }
 0x7f1   : > { %v3296_v31 = vadd.f32 %v3295_v2, %v3291_v50  ;;  %v3735_v15 = vmul.f32 -1.442695, %v2422_v25  ;;  %v5317_v17 = vld [vmem:[#allocation15_spill] sm:$0xff]  ;;  %v5058_v2 = vld [vmem:[%s5234_s3] sm:$0xff]  }
 0x7f2   : > { %v4996_v39 = vadd.f32 %v3120_v12, %v3116_v26  ;;  %v5000_v14 = vadd.f32 %v3213_v40, %v3209_v11  ;;  %v537_v11 = vld [vmem:[%s5233_s2] sm:$0xff] }
 0x7f3   : > { %v5003_v59 = vadd.f32 %v3300_v28, %v3296_v31  ;;  %4081 = vpow2.f32 %v3735_v15  ;;  %v3558_v28 = vld [vmem:[%s5235_s4] sm:$0xff] }
 0x7fd   : > { %v4082_v49 = vpop.eup %4081 }
 0x7fe   : > { %v2444_v47 = vadd.f32 1.0, %v4082_v49 }
 0x800   : > { %4083 = vrcp.f32 %v2444_v47 }
 0x80a   : > { %v4084_v50 = vpop.eup %4083 }
 0x811   : > { %v2498_v38 = vpop.permute.xlu1 %2497 }
 0x812   : > { %v2499_v1 = vrot.slane %v2498_v38, 4 }
 0x814   : > { %v2500_v23 = vsel %vm639_vm9, %v2499_v1, %v2498_v38  ;;  %2508 = vst.msk [vmem:[#allocation2 + $0x8] sm:$0x3] %vm2507_vm2, %v2499_v1  ;;  %v3743_v38 = vld [vmem:[%s5243_s12 + $0x4] ss:$36 sps:$4 sm:$0xff]  }
 0x815   : > { %2506 = vst.msk [vmem:[#allocation2] sm:$0x33] %vm2505_vm8, %v2500_v23  ;;  %v2587_v1 = vunpack.c.l.bf16 %v3743_v38  ;;  %v2591_v31 = vunpack.c.h.bf16 %v3743_v38  ;;  %v3745_v23 = vld [vmem:[%s5243_s12 + $0x4c] ss:$36 sps:$4 sm:$0xff]   ;;  %vm5332_vm8 = vcmask 769024  }
 0x816   : > { %vm5333_vm10 = vmmov %vm5332_vm8 }
 0x817   : > { %v2530_v41 = vpop.permute.xlu1 %2529 }
 0x818   : > { %v2531_v53 = vrot.slane %v2530_v41, 4 }
 0x81a   : > { %v2532_v63 = vsel %vm639_vm9, %v2531_v53, %v2530_v41  ;;  %2540 = vst.msk [vmem:[#allocation2 + $0x8] sm:$0xc] %vm2539_vm0, %v2531_v53  ;;  %v2588_v41 = vmul.f32 %v2587_v1, %v4972_v7  ;;  %v2592_v53 = vmul.f32 %v2591_v31, %v4974_v56  ;;  %vm5320_vm9 = vcmask 64512  }
 0x81b   : > { %2538 = vst.msk [vmem:[#allocation2] sm:$0xcc] %vm2537_vm13, %v2532_v63  ;;  %v2596_v63 = vunpack.c.l.bf16 %v3745_v23 }
 0x821   : > { %v2584_v16 = vld [vmem:[#allocation2 + $0x8] sm:$0xf] }
 0x822   : > { %v5006_v34 = vld [vmem:[#allocation2] sm:$0xff]  ;;  %v3749_v33 = vcombine.low %v2584_v16, %v2584_v16  ;;  %v2732_v43 = vmul.bf16 %v2584_v16, %v5305_v42  ;;  %v2827_v10 = vmul.bf16 %v2584_v16, %v5308_v3  ;;  %v3007_v22 = vmul.bf16 %v2584_v16, %v5313_v60 }
 0x823   : > { %v3748_v6 = vcombine.high %v5006_v34, %v5006_v34  ;;  %v3747_v4 = vcombine.low %v5006_v34, %v5006_v34  ;;  %v2731_v32 = vmul.bf16 %v5006_v34, %v5304_v20  ;;  %v2826_v8 = vmul.bf16 %v5006_v34, %v5307_v52 }
 0x824   : > { %v3762_v9 = vcombine.low %v2732_v43, %v2732_v43  ;;  %v3771_v36 = vcombine.low %v2827_v10, %v2827_v10  ;;  %v3006_v46 = vmul.bf16 %v5006_v34, %v5311_v29  ;;  %v3101_v30 = vmul.bf16 %v5006_v34, %v5312_v18  ;;  %v3741_v43 = vld [vmem:[%s5243_s12 + $0x48] ss:$36 sps:$4 sm:$0xff]   ;;  %v5319_v10 = vld [vmem:[#allocation4_spill] sm:$0xff] }
 0x825   : > { %2620 = vrot.lane.b32.xlu1 %v3748_v6, %s4125_s24  ;;  %2618 = vrot.lane.b32.xlu0 %v3747_v4, %s4125_s24  ;;  %v3760_v13 = vcombine.low %v2731_v32, %v2731_v32  ;;  %v3761_v37 = vcombine.high %v2731_v32, %v2731_v32  ;;  %v3770_v54 = vcombine.high %v2826_v8, %v2826_v8  ;;  %v2601_v20 = vunpack.c.h.bf16 %v3745_v23  ;;  %v2543_v32 = vld [vmem:[%s5243_s12] ss:$36 sps:$4 sm:$0xff]   ;;  %v3765_v23 = vld [vmem:[%s5243_s12 + $0xc] ss:$36 sps:$4 sm:$0xff]  }
 0x826   : > { %v3769_v45 = vcombine.low %v2826_v8, %v2826_v8  ;;  %v3785_v27 = vcombine.high %v3006_v46, %v3006_v46  ;;  %v3784_v35 = vcombine.low %v3006_v46, %v3006_v46  ;;  %v3793_v51 = vcombine.low %v3101_v30, %v3101_v30 }
 0x827   : > { %v3786_v62 = vcombine.low %v3007_v22, %v3007_v22  ;;  %v3102_v19 = vmul.bf16 %v2584_v16, %v5315_v58  ;;  %v3794_v44 = vcombine.high %v3101_v30, %v3101_v30  ;;  %v3281_v48 = vmul.bf16 %v5006_v34, %v5316_v61  ;;  %v3758_v61 = vld [vmem:[%s5243_s12 + $0x50] ss:$36 sps:$4 sm:$0xff]  }
 0x828   : > { %v3282_v40 = vmul.bf16 %v2584_v16, %v5317_v17  ;;  %v2544_v16 = vunpack.c.l.bf16 %v2543_v32  ;;  %v2602_v42 = vmul.f32 %v2601_v20, %v4981_v57  ;;  %v2562_v52 = vunpack.c.l.bf16 %v3741_v43 }
 0x829   : > { %2766 = vrot.lane.b32.xlu1 %v3760_v13, %s5306_s27  ;;  %2622 = vrot.lane.b32.xlu0 %v3749_v33, %s4125_s24  ;;  %s5310_s24 = smov 111   ;;  %v3795_v12 = vcombine.low %v3102_v19, %v3102_v19  ;;  %v3808_v26 = vcombine.low %v3281_v48, %v3281_v48  ;;  %v3809_v24 = vcombine.high %v3281_v48, %v3281_v48  ;;  %v2553_v13 = vunpack.c.h.bf16 %v2543_v32 }
 0x82a   : > { %v3810_v21 = vcombine.low %v3282_v40, %v3282_v40  ;;  %v2542_v5 = vmul.bf16 %v5319_v10, %v5006_v34  ;;  %v2567_v29 = vmul.f32 %v4976_v0, %v2562_v52  ;;  %v2571_v46 = vunpack.c.h.bf16 %v3741_v43 }
 0x82b   : > { %v2749_v31 = vunpack.c.h.bf16 %v3758_v61 }
 0x82c   : > { %v3753_v34 = vcombine.high %v2542_v5, %v2542_v5  ;;  %v3752_v22 = vcombine.low %v2542_v5, %v2542_v5  ;;  %v2576_v58 = vmul.f32 %v4981_v57, %v2571_v46  ;;  %v3774_v46 = vld [vmem:[%s5243_s12 + $0x10] ss:$36 sps:$4 sm:$0xff]  }
 0x82d   : > { %2770 = vrot.lane.b32.xlu1 %v3762_v9, %s5306_s27  ;;  %2768 = vrot.lane.b32.xlu0 %v3761_v37, %s5306_s27  ;;  %v2550_v9 = vmul.f32 %v4972_v7, %v2544_v16  ;;  %v2558_v37 = vmul.f32 %v4974_v56, %v2553_v13  ;;  %v2750_v32 = vmul.f32 %v2749_v31, %v4981_v57  ;;  %v2834_v16 = vunpack.c.h.bf16 %v3765_v23 }
 0x82e   : > { %v2685_v48 = vsel %vm687_vm1, %v3752_v22, 0 }
 0x82f   : > { %v2559_v25 = vadd.f32 %v2558_v37, %v2550_v9 }
 0x831   : > { %2863 = vrot.lane.b32.xlu1 %v3770_v54, %s5309_s30  ;;  %2861 = vrot.lane.b32.xlu0 %v3769_v45, %s5309_s30 }
 0x835   : > { %2946 = vrot.lane.b32.xlu1 %v3747_v4, %s5310_s24  ;;  %2865 = vrot.lane.b32.xlu0 %v3771_v36, %s5309_s30 }
 0x839   : > { %2950 = vrot.lane.b32.xlu1 %v3749_v33, %s5310_s24  ;;  %2948 = vrot.lane.b32.xlu0 %v3748_v6, %s5310_s24  ;;  %s5338_s24 = sshll.u32 %s5340_s26, 5 }
 0x83d   : > { %3043 = vrot.lane.b32.xlu1 %v3785_v27, %s5314_s23  ;;  %3041 = vrot.lane.b32.xlu0 %v3784_v35, %s5314_s23  ;;  %v3756_v27 = vld [vmem:[%s5243_s12 + $0x8] ss:$36 sps:$4 sm:$0xff]  }
 0x841   : > { %3136 = vrot.lane.b32.xlu1 %v3793_v51, %s5293_s29  ;;  %3045 = vrot.lane.b32.xlu0 %v3786_v62, %s5314_s23  ;;  %s5081_s23 = spop %3909  ;;  %v2735_v51 = vunpack.c.l.bf16 %v3756_v27  ;;  %v2568_v62 = vadd.f32 %v2567_v29, %v2559_v25 }
 0x842   : > { %s3912_s20 = spop %3911 }
 0x843   : > { %v2606_v3 = vstv %s3912_s20  ;;  %v2736_v17 = vmul.f32 %v2735_v51, %v4972_v7  ;;  %s3914_s21 = spop %3913  ;;  %v3776_v51 = vld [vmem:[%s5243_s12 + $0x58] ss:$36 sps:$4 sm:$0xff]  }
 0x845   : > { %3140 = vrot.lane.b32.xlu1 %v3795_v12, %s5293_s29  ;;  %3138 = vrot.lane.b32.xlu0 %v3794_v44, %s5293_s29  ;;  %v2739_v12 = vunpack.c.h.bf16 %v3756_v27  ;;  %v2923_v27 = vunpack.c.l.bf16 %v3774_v46  ;;  %s3916_s29 = spop %3915 }
 0x847   : > { %v2740_v40 = vmul.f32 %v2739_v12, %v4974_v56 }
 0x849   : > { %3223 = vrot.lane.b32.xlu1 %v3748_v6, %s5295_s14  ;;  %3221 = vrot.lane.b32.xlu0 %v3747_v4, %s5295_s14  ;;  %v2593_v6 = vadd.f32 %v2592_v53, %v2588_v41  ;;  %v2597_v4 = vmul.f32 %v2596_v63, %v4976_v0  ;;  %v2741_v38 = vadd.f32 %v2740_v40, %v2736_v17  ;;  %v2830_v63 = vunpack.c.l.bf16 %v3765_v23 }
 0x84b   : > { %v2831_v52 = vmul.f32 %v2830_v63, %v4972_v7 }
 0x84d   : > { %3316 = vrot.lane.b32.xlu1 %v3808_v26, %s5318_s22  ;;  %3225 = vrot.lane.b32.xlu0 %v3749_v33, %s5295_s14  ;;  %v2598_v33 = vadd.f32 %v2597_v4, %v2593_v6  ;;  %v2577_v26 = vadd.f32 %v2576_v58, %v2568_v62  ;;  %s3918_s14 = spop %3917 }
 0x84e   : > { %s3920_s15 = spop %3919 }
 0x84f   : > { %v2603_v8 = vadd.f32 %v2602_v42, %v2598_v33  ;;  %v3767_v33 = vld [vmem:[%s5243_s12 + $0x54] ss:$36 sps:$4 sm:$0xff]   ;;  %s3922_s28 = spop %3921 }
 0x850   : > { %v2844_v29 = vunpack.c.h.bf16 %v3767_v33  ;;  %s3924_s27 = spop %3923 }
 0x851   : > { %3320 = vrot.lane.b32.xlu1 %v3810_v21, %s5318_s22  ;;  %3318 = vrot.lane.b32.xlu0 %v3809_v24, %s5318_s22  ;;  %v2608_v15 = vmul.f32 %v2606_v3, %v2603_v8  ;;  %v2744_v21 = vunpack.c.l.bf16 %v3758_v61  ;;  %v2835_v8 = vmul.f32 %v2834_v16, %v4974_v56  ;;  %v2754_v3 = vstv %s3914_s21  ;;  %s3926_s17 = spop %3925 }
 0x852   : > { %v2932_v61 = vunpack.c.l.bf16 %v3776_v51 }
 0x853   : > { %v2609_v19 = vpack.c.bf16 %v2608_v15, %v2608_v15  ;;  %v2745_v1 = vmul.f32 %v2744_v21, %v4976_v0 }
 0x854   : > { %v2933_v21 = vmul.f32 %v2932_v61, %v4976_v0 }
 0x855   : > { %541 = vperm.xlu0 %4035, %v537_v11   ;;  %3392 = vrot.lane.b32.xlu1 %v5058_v2, %s4190_s16  ;;  %v2746_v20 = vadd.f32 %v2745_v1, %v2741_v38 }
 0x857   : > { %v2751_v37 = vadd.f32 %v2750_v32, %v2746_v20 }
 0x859   : > { %3378 = vperm.xlu0 %4035, %v4084_v50   ;;  %3500 = vrot.lane.b32.xlu1 %v5058_v2, %s5309_s30  ;;  %v2580_v50 = vstv %s5081_s23  ;;  %v2756_v5 = vmul.f32 %v2754_v3, %v2751_v37 }
 0x85d   : > { %3562 = vperm.xlu0 %4035, %v3558_v28   ;;  %v2582_v28 = vmul.f32 %v2580_v50, %v2577_v26 }
 0x85f   : > { %v2583_v4 = vpack.c.bf16 %v2582_v28, %v2582_v28 }
 0x897   : > { %v2621_v54 = vpop.permute.xlu1 %2620  ;;  %v2619_v45 = vpop.permute.xlu0 %2618 }
 0x898   : > { %v2624_v36 = vsel %vm680_vm15, %v2619_v45, %v2621_v54 }
 0x899   : > { %v2630_v60 = vsel %vm687_vm1, %v2624_v36, 0  ;;  %v2836_v36 = vadd.f32 %v2835_v8, %v2831_v52 }
 0x89b   : > { %v2767_v35 = vpop.permute.xlu1 %2766  ;;  %v2623_v18 = vpop.permute.xlu0 %2622 }
 0x89c   : > { %v2625_v30 = vsel %vm680_vm15, %v2621_v54, %v2623_v18  ;;  %vm5321_vm15 = vmmov %vm5320_vm9  ;;  %v2839_v54 = vunpack.c.l.bf16 %v3767_v33  ;;  %v2757_v18 = vpack.c.bf16 %v2756_v5, %v2756_v5 }
 0x89d   : > { %3750 = vmatprep.subr.msk.bf16.mxu0 %vm687_vm1, %v2625_v30 }
 0x89e   : > { %2636 = vmatpush1.bf16.msra.mxu0 %v2630_v60  ;;  %v2840_v25 = vmul.f32 %v2839_v54, %v4976_v0  ;;  %v2845_v60 = vmul.f32 %v2844_v29, %v4981_v57 }
 0x89f   : > { %v2771_v44 = vpop.permute.xlu1 %2770  ;;  %v2769_v49 = vpop.permute.xlu0 %2768  ;;  %3754 = vmatprep.subr.msk.bf16.mxu0 %vm687_vm1, %v3753_v34  ;;  %v2927_v34 = vunpack.c.h.bf16 %v3774_v46  ;;  %v3029_v46 = vstv %s3920_s15 }
 0x8a0   : > { %v2773_v47 = vsel %vm818_vm3, %v2769_v49, %v2771_v44  ;;  %v2772_v6 = vsel %vm818_vm3, %v2767_v35, %v2769_v49  ;;  %v2841_v30 = vadd.f32 %v2840_v25, %v2836_v36  ;;  %vm5322_vm3 = vmmov %vm5320_vm9  ;;  %v2924_v44 = vmul.f32 %v2923_v27, %v4972_v7 }
 0x8a1   : > { %3751 = vmatmul.mubr.msk.bf16.vlgmr.msra.gmra.mrb[12].mxu0 %vm5320_vm9, %v2609_v19  ;;  %v2778_v43 = vsel %vm687_vm1, %v2772_v6, 0  ;;  %v2928_v49 = vmul.f32 %v2927_v34, %v4974_v56  ;;  %v3782_v6 = vld [vmem:[%s5243_s12 + $0x5c] ss:$36 sps:$4 sm:$0xff]   ;;  %vm5325_vm12 = vmmov %vm5322_vm3 }
 0x8a2   : > { %2691 = vmatpush1.bf16.msra.mxu0 %v2685_v48  ;;  %2722 = vmatprep.mubr.bf16.mxu0 %v5303_v55  ;;  %v2846_v12 = vadd.f32 %v2845_v60, %v2841_v30  ;;  %v3019_v33 = vunpack.c.l.bf16 %v3782_v6  ;;  %v3024_v54 = vunpack.c.h.bf16 %v3782_v6  ;;  %vm5331_vm2 = vmmov %vm5322_vm3  ;;  %v3559_v6 = vld [vmem:[%s5235_s4 + $0x8] sm:$0xff] }
 0x8a3   : > { %v2864_v24 = vpop.permute.xlu1 %2863  ;;  %v2862_v11 = vpop.permute.xlu0 %2861  ;;  %3763 = vmatprep.subr.msk.bf16.mxu0 %vm687_vm1, %v2773_v47  ;;  %v2849_v47 = vstv %s3916_s29  ;;  %v2929_v40 = vadd.f32 %v2928_v49, %v2924_v44  ;;  %vm5334_vm11 = vmmov %vm5331_vm2  ;;  %3567 = vperm.xlu1 %4036, %v3559_v6   ;;  %s440_s29 = scalar_lea.vmem %s5244_s13, %s5338_s24 }
 0x8a4   : > { %v2867_v35 = vsel %vm896_vm4, %v2862_v11, %v2864_v24  ;;  %v2851_v17 = vmul.f32 %v2849_v47, %v2846_v12  ;;  %v3780_v11 = vld [vmem:[%s5243_s12 + $0x14] ss:$36 sps:$4 sm:$0xff]   ;;  %v3020_v8 = vmul.f32 %v3019_v33, %v4976_v0  ;;  %v3025_v5 = vmul.f32 %v3024_v54, %v4981_v57  ;;  %vm5335_vm0 = vmmov %vm5331_vm2 }
 0x8a5   : > { %v2873_v58 = vsel %vm687_vm1, %v2867_v35, 0  ;;  %v3010_v28 = vunpack.c.l.bf16 %v3780_v11  ;;  %v2934_v31 = vadd.f32 %v2933_v21, %v2929_v40  ;;  %v5327_v35 = vld [vmem:[#allocation6_spill] sm:$0xff]  ;;  %vm5336_vm13 = vmmov %vm5335_vm0 }
 0x8a6   : > { %v2852_v1 = vpack.c.bf16 %v2851_v17, %v2851_v17  ;;  %vm5337_vm9 = vmmov %vm5335_vm0 }
 0x8a7   : > { %v2947_v41 = vpop.permute.xlu1 %2946  ;;  %v2866_v53 = vpop.permute.xlu0 %2865  ;;  %v3011_v16 = vmul.f32 %v3010_v28, %v4972_v7 }
 0x8a8   : > { %v2868_v9 = vsel %vm896_vm4, %v2864_v24, %v2866_v53  ;;  %v2937_v24 = vunpack.c.h.bf16 %v3776_v51  ;;  %v3014_v53 = vunpack.c.h.bf16 %v3780_v11  ;;  %vm5323_vm4 = vmmov %vm5322_vm3 }
 0x8aa   : > { %v2938_v23 = vmul.f32 %v2937_v24, %v4981_v57 }
 0x8ab   : > { %v2951_v13 = vpop.permute.xlu1 %2950  ;;  %v2949_v42 = vpop.permute.xlu0 %2948 }
 0x8ac   : > { %v2953_v19 = vsel %vm957_vm5, %v2949_v42, %v2951_v13  ;;  %v2952_v38 = vsel %vm957_vm5, %v2947_v41, %v2949_v42  ;;  %v2939_v32 = vadd.f32 %v2938_v23, %v2934_v31  ;;  %v3015_v13 = vmul.f32 %v3014_v53, %v4974_v56  ;;  %vm5324_vm5 = vmmov %vm5322_vm3 }
 0x8ad   : > { %3755 = vmatmul.mubr.msk.bf16.vlgmr.msra.gmra.mrb[12].mxu0 %vm5321_vm15, %v2583_v4  ;;  %v2958_v20 = vsel %vm687_vm1, %v2952_v38, 0 }
 0x8ae   : > { %2784 = vmatpush1.bf16.msra.mxu0 %v2778_v43  ;;  %2815 = vmatprep.mubr.bf16.mxu0 %v5303_v55  ;;  %v2942_v43 = vstv %s3918_s14  ;;  %v3016_v52 = vadd.f32 %v3015_v13, %v3011_v16 }
 0x8af   : > { %3772 = vmatprep.subr.msk.bf16.mxu0 %vm687_vm1, %v2868_v9  ;;  %v5128_v45 = vpop.permute.xlu1 %3043  ;;  %v5130_v10 = vpop.permute.xlu0 %3041  ;;  %v2944_v37 = vmul.f32 %v2942_v43, %v2939_v32 }
 0x8b0   : > { %v3047_v7 = vsel %vm1035_vm6, %v5130_v10, %v5128_v45  ;;  %v3021_v3 = vadd.f32 %v3020_v8, %v3016_v52  ;;  %v5326_v10 = vld [vmem:[#allocation5_spill] sm:$0xff] }
 0x8b1   : > { %v2945_v56 = vpack.c.bf16 %v2944_v37, %v2944_v37  ;;  %v3053_v25 = vsel %vm687_vm1, %v3047_v7, 0 }
 0x8b2   : > { %v3026_v0 = vadd.f32 %v3025_v5, %v3021_v3 }
 0x8b3   : > { %v5136_v15 = vpop.permute.xlu1 %3136  ;;  %v3046_v62 = vpop.permute.xlu0 %3045 }
 0x8b4   : > { %v3048_v41 = vsel %vm1035_vm6, %v5128_v45, %v3046_v62  ;;  %vm5328_vm6 = vmmov %vm5322_vm3 }
 0x8b7   : > { %v3141_v22 = vpop.permute.xlu1 %3140  ;;  %v3139_v26 = vpop.permute.xlu0 %3138 }
 0x8b8   : > { %v3143_v29 = vsel %vm1113_vm7, %v3139_v26, %v3141_v22  ;;  %v3142_v34 = vsel %vm1113_vm7, %v5136_v15, %v3139_v26  ;;  %vm5330_vm7 = vmmov %vm5329_vm14 }
 0x8b9   : > { %3764 = vmatmul.mubr.msk.bf16.vlgmr.msra.gmra.mrb[12].mxu0 %vm5322_vm3, %v2757_v18  ;;  %v3031_v18 = vmul.f32 %v3029_v46, %v3026_v0  ;;  %v3148_v51 = vsel %vm687_vm1, %v3142_v34, 0 }
 0x8ba   : > { %2879 = vmatpush1.bf16.msra.mxu0 %v2873_v58  ;;  %2910 = vmatprep.mubr.bf16.mxu0 %v5303_v55  ;;  %v3124_v58 = vstv %s3922_s28 }
 0x8bb   : > { %3778 = vmatprep.subr.msk.bf16.mxu0 %vm687_vm1, %v2953_v19  ;;  %v5150_v48 = vpop.permute.xlu1 %3223  ;;  %v3222_v4 = vpop.permute.xlu0 %3221  ;;  %v3032_v22 = vpack.c.bf16 %v3031_v18, %v3031_v18  ;;  %v3126_v12 = vmul.f32 %v3124_v58, %v4996_v39  ;;  %v3217_v39 = vstv %s3924_s27 }
 0x8bc   : > { %v3227_v61 = vsel %vm5330_vm7, %v3222_v4, %v5150_v48  ;;  %v3219_v40 = vmul.f32 %v3217_v39, %v5000_v14  ;;  %v3304_v14 = vstv %s3926_s17 }
 0x8bd   : > { %v3127_v47 = vpack.c.bf16 %v3126_v12, %v3126_v12  ;;  %v3233_v26 = vsel %vm687_vm1, %v3227_v61, 0 }
 0x8be   : > { %v3220_v38 = vpack.c.bf16 %v3219_v40, %v3219_v40 }
 0x8bf   : > { %v5156_v50 = vpop.permute.xlu1 %3316  ;;  %v3226_v9 = vpop.permute.xlu0 %3225 }
 0x8c0   : > { %v3228_v62 = vsel %vm5329_vm14, %v5150_v48, %v3226_v9 }
 0x8c3   : > { %v5160_v63 = vpop.permute.xlu1 %3320  ;;  %v3319_v36 = vpop.permute.xlu0 %3318 }
 0x8c4   : > { %v3323_v17 = vsel %vm5332_vm8, %v3319_v36, %v5160_v63  ;;  %v3322_v11 = vsel %vm5333_vm10, %v5156_v50, %v3319_v36  ;;  %v3306_v50 = vmul.f32 %v3304_v14, %v5003_v59 }
 0x8c5   : > { %3773 = vmatmul.mubr.msk.bf16.vlgmr.msra.gmra.mrb[12].mxu0 %vm5323_vm4, %v2852_v1  ;;  %v3328_v23 = vsel %vm687_vm1, %v3322_v11, 0 }
 0x8c6   : > { %2964 = vmatpush1.bf16.msra.mxu0 %v2958_v20  ;;  %2995 = vmatprep.mubr.bf16.mxu0 %v5303_v55  ;;  %v3307_v63 = vpack.c.bf16 %v3306_v50, %v3306_v50 }
 0x8c7   : > { %3787 = vmatprep.subr.msk.bf16.mxu0 %vm687_vm1, %v3048_v41  ;;  %v3393_v42 = vpop.permute.xlu1 %3392 }
 0x8c8   : > { %3815 = vmatmul.mubr.msk.bf16.vlgmr.msra.gmra.mrb[36].mxu1 %vm5324_vm5, %v3393_v42 }
 0x8c9   : > { %3487 = vmatprep.mubr.bf16.mxu1 %v5303_v55 }
 0x8d1   : > { %3779 = vmatmul.mubr.msk.bf16.vlgmr.msra.gmra.mrb[12].mxu0 %vm5325_vm12, %v2945_v56 }
 0x8d2   : > { %3059 = vmatpush1.bf16.msra.mxu0 %v3053_v25  ;;  %3090 = vmatprep.mubr.bf16.mxu0 %v5303_v55 }
 0x8d3   : > { %3796 = vmatprep.subr.msk.bf16.mxu0 %vm687_vm1, %v3143_v29 }
 0x8d4   : > { %v542_v45 = vpop.permute.xlu0 %541 }
 0x8d5   : > { %v593_v27 = vadd.f32 %v5326_v10, %v542_v45  ;;  %v595_v57 = vadd.f32 %v5327_v35, %v542_v45 }
 0x8d7   : > { %v3680_v30 = vmul.f32 -1.442695, %v593_v27  ;;  %v3681_v60 = vmul.f32 -1.442695, %v595_v57 }
 0x8d8   : > { %v3379_v4 = vpop.permute.xlu0 %3378 }
 0x8d9   : > { %4085 = vpow2.f32 %v3680_v30 }
 0x8da   : > { %4087 = vpow2.f32 %v3681_v60 }
 0x8dc   : > { %v3563_v43 = vpop.permute.xlu0 %3562 }
 0x8dd   : > { %3788 = vmatmul.mubr.msk.bf16.vlgmr.msra.gmra.mrb[12].mxu0 %vm5328_vm6, %v3032_v22 }
 0x8de   : > { %3154 = vmatpush1.bf16.msra.mxu0 %v3148_v51  ;;  %3185 = vmatprep.mubr.bf16.mxu0 %v5303_v55 }
 0x8df   : > { %3802 = vmatprep.subr.msk.bf16.mxu0 %vm687_vm1, %v3228_v62 }
 0x8e3   : > { %v4086_v19 = vpop.eup %4085 }
 0x8e4   : > { %v4088_v15 = vpop.eup %4087  ;;  %v613_v44 = vadd.f32 1.0, %v4086_v19 }
 0x8e5   : > { %v614_v49 = vadd.f32 1.0, %v4088_v15 }
 0x8e6   : > { %4089 = vrcp.f32 %v613_v44 }
 0x8e7   : > { %4091 = vrcp.f32 %v614_v49 }
 0x8e9   : > { %3797 = vmatmul.mubr.msk.bf16.vlgmr.msra.gmra.mrb[12].mxu0 %vm5331_vm2, %v3127_v47 }
 0x8ea   : > { %3239 = vmatpush1.bf16.msra.mxu0 %v3233_v26  ;;  %3270 = vmatprep.mubr.bf16.mxu0 %v5303_v55 }
 0x8eb   : > { %3811 = vmatprep.subr.msk.bf16.mxu0 %vm687_vm1, %v3323_v17 }
 0x8f0   : > { %v4090_v48 = vpop.eup %4089 }
 0x8f1   : > { %v4092_v21 = vpop.eup %4091  ;;  %v625_v24 = vmul.f32 %v4090_v48, %v593_v27 }
 0x8f2   : > { %v626_v28 = vmul.f32 %v4092_v21, %v595_v57 }
 0x8f3   : > { %v3385_v1 = vpack.c.bf16 %v625_v24, %v625_v24 }
 0x8f4   : > { %v3386_v31 = vpack.c.bf16 %v626_v28, %v626_v28 }
 0x8f5   : > { %3803 = vmatmul.mubr.msk.bf16.vlgmr.msra.gmra.mrb[12].mxu0 %vm5334_vm11, %v3220_v38  ;;  %v3450_v53 = vsel %vm687_vm1, %v3385_v1, 0 }
 0x8f6   : > { %3334 = vmatpush1.bf16.msra.mxu0 %v3328_v23  ;;  %3816 = vmatprep.subr.msk.bf16.mxu1 %vm687_vm1, %v3386_v31 }
 0x8f7   : > { %3456 = vmatpush1.bf16.msra.mxu1 %v3450_v53  ;;  %3365 = vmatprep.mubr.bf16.mxu0 %v5303_v55 }
 0x8fa   : > { %3817 = vmatmul.mubr.msk.bf16.vlgmr.msra.gmra.mrb[36].mxu1 %vm5335_vm0, %v5058_v2 }
 0x8fb   : > { %3543 = vmatprep.mubr.bf16.mxu1 %v5303_v55  ;;  %v3501_v55 = vpop.permute.xlu1 %3500 }
 0x901   : > { %3812 = vmatmul.mubr.msk.bf16.vlgmr.msra.gmra.mrb[12].mxu0 %vm5336_vm13, %v3307_v63 }
 0x922   : > { %v3568_v37 = vpop.permute.xlu1 %3567 }
 0x9d4   : > { %v3367_v20 = vpop.f32.mrb[12].mxu0 }
 0x9d5   : > { %v3381_v41 = vmul.f32 %v3379_v4, %v3367_v20  ;;  %v3369_v32 = vpop.f32.mrb[13].mxu0 }
 0x9d6   : > { %v3382_v16 = vmul.f32 %v3379_v4, %v3369_v32  ;;  %v3371_v13 = vpop.f32.mrb[14].mxu0 }
 0x9d7   : > { %v3498_v33 = vpack.c.bf16 %v3381_v41, %v3381_v41  ;;  %v3372_v2 = vpop.f32.mrb[15].mxu0 }
 0x9d8   : > { %v3499_v42 = vpack.c.bf16 %v3382_v16, %v3382_v16 }
 0x9d9   : > { %v3506_v59 = vsel %vm687_vm1, %v3498_v33, 0 }
 0x9da   : > { %3818 = vmatprep.subr.msk.bf16.mxu1 %vm687_vm1, %v3499_v42 }
 0x9db   : > { %3512 = vmatpush1.bf16.msra.mxu1 %v3506_v59 }
 0x9de   : > { %3819 = vmatmul.mubr.msk.bf16.vlgmr.msra.gmra.mrb[36].mxu1 %vm5337_vm9, %v3501_v55 }
 0xab1   : > { %v3545_v9 = vpop.f32.mrb[36].mxu1 }
 0xab2   : > { %v3570_v52 = vadd.f32 %v3563_v43, %v3545_v9  ;;  %v3547_v8 = vpop.f32.mrb[37].mxu1 }
 0xab3   : > { %v3571_v54 = vadd.f32 %v3563_v43, %v3547_v8  ;;  %v3549_v7 = vpop.f32.mrb[38].mxu1 }
 0xab4   : > { %v3820_v56 = vmul.f32 -1.442695, %v3570_v52  ;;  %v3572_v3 = vadd.f32 %v3568_v37, %v3549_v7  ;;  %v3551_v5 = vpop.f32.mrb[39].mxu1 }
 0xab5   : > { %v3821_v36 = vmul.f32 -1.442695, %v3571_v54  ;;  %v3573_v25 = vadd.f32 %v3568_v37, %v3551_v5 }
 0xab6   : > { %4093 = vpow2.f32 %v3820_v56  ;;  %v3822_v29 = vmul.f32 -1.442695, %v3572_v3 }
 0xab7   : > { %4095 = vpow2.f32 %v3821_v36  ;;  %v3823_v0 = vmul.f32 -1.442695, %v3573_v25 }
 0xab8   : > { %4097 = vpow2.f32 %v3822_v29 }
 0xab9   : > { %4099 = vpow2.f32 %v3823_v0 }
 0xac0   : > { %v4094_v46 = vpop.eup %4093 }
 0xac1   : > { %v4096_v45 = vpop.eup %4095  ;;  %v3586_v10 = vadd.f32 1.0, %v4094_v46 }
 0xac2   : > { %v4098_v27 = vpop.eup %4097  ;;  %v3587_v35 = vadd.f32 1.0, %v4096_v45 }
 0xac3   : > { %v4100_v57 = vpop.eup %4099  ;;  %4101 = vrcp.f32 %v3586_v10  ;;  %v3588_v18 = vadd.f32 1.0, %v4098_v27 }
 0xac4   : > { %4103 = vrcp.f32 %v3587_v35  ;;  %v3589_v30 = vadd.f32 1.0, %v4100_v57 }
 0xac5   : > { %4105 = vrcp.f32 %v3588_v18 }
 0xac6   : > { %4107 = vrcp.f32 %v3589_v30 }
 0xacd   : > { %v4102_v60 = vpop.eup %4101 }
 0xace   : > { %v4104_v34 = vpop.eup %4103  ;;  %v3598_v22 = vmul.f32 %v4102_v60, %v3570_v52 }
 0xacf   : > { %v4106_v51 = vpop.eup %4105  ;;  %v3599_v62 = vmul.f32 %v4104_v34, %v3571_v54 }
 0xad0   : > { %v4108_v58 = vpop.eup %4107  ;;  %3602 = vst [vmem:[%s440_s29] sm:$0xff] %v3598_v22  ;;  %v3600_v19 = vmul.f32 %v4106_v51, %v3572_v3 }
 0xad1   : > { %3603 = vst [vmem:[%s440_s29 + $0x8] sm:$0xff] %v3599_v62  ;;  %v3601_v12 = vmul.f32 %v4108_v58, %v3573_v25 }
 0xad2   : > { %3604 = vst [vmem:[%s440_s29 + $0x10] sm:$0xff] %v3600_v19 }
 0xad3   : > { %3605 = vst [vmem:[%s440_s29 + $0x18] sm:$0xff] %v3601_v12 }
 0xad4 PF: > { %s23_s25 = sadd.s32 1, %s4115_s25  }
 0xad5   : > { %p20_p4 = scmp.ge.s32.totalorder %s23_s25, 4  }
 0xad7   :  { %22 = sbr.rel (!%p20_p4) target bundleno = 1 (0x1), region = 137 }

</bundles_post_ra>
